<compile_context>
chip_gen: v5e
topology: v5e:2x2
jax: 0.10.0
libtpu: 0.0.40
codegen_flags: <defaults>
</compile_context>

<pallas_src>
import functools

import jax
import jax.numpy as jnp
from jax.experimental import pallas as pl
from jax.experimental.pallas import tpu as pltpu

NUM_NEIGHBORS = 16
BN_EPS = 1e-5


def _round_up(v, m):
    return (v + m - 1) // m * m


# --------------------------------------------------------------------------- #
# Kernel 1: kNN selection + fused gather/subtract (one batch per grid step).
# --------------------------------------------------------------------------- #
def knn_rel_kernel(xyz_ref, xyzt_ref, pf_ref, rel_ref, oh_ref):
    # xyz_ref  : (1, N, 3)    point coordinates
    # xyzt_ref : (1, 3, N)    coordinates, pre-transposed in the wrapper
    # pf_ref   : (1, N, Dp)   [xyz | features] zero-padded to Dp lanes
    # rel_ref  : (1, K*N, Dp) output relative features, row (k*N + n)
    # oh_ref   : (K*N, N)     VMEM scratch holding (onehot - I) selection rows
    N = xyz_ref.shape[1]
    KN = oh_ref.shape[0]
    K = KN // N

    x = xyz_ref[0]                    # (N, 3)
    xt = xyzt_ref[0]                  # (3, N)
    pf = pf_ref[0]                    # (N, Dp)

    # Squared-distance proxy (row-constant |x_i|^2 dropped; monotone per row).
    gram = jnp.dot(x, xt, preferred_element_type=jnp.float32)        # (N, N)
    norms_row = jnp.sum(xt * xt, axis=0, keepdims=True)              # (1, N)
    work = norms_row - 2.0 * gram                                    # (N, N)

    col = jax.lax.broadcasted_iota(jnp.int32, (N, N), 1)
    row = jax.lax.broadcasted_iota(jnp.int32, (N, N), 0)
    neg_eye = -(row == col).astype(jnp.float32)                      # -I, for fused subtract

    # K rounds of vectorized first-min selection; only record selection rows.
    for k in range(K):
        m = jnp.min(work, axis=1, keepdims=True)                     # (N, 1)
        masked_col = jnp.where(work <= m, col, N)
        idx = jnp.min(masked_col, axis=1, keepdims=True)             # first min (tie-break)
        onehot = col == idx                                          # (N, N)
        # (onehot - I): the single gather matmul below yields pf[idx] - pf[n].
        oh_ref[pl.ds(k * N, N), :] = onehot.astype(jnp.float32) + neg_eye
        work = jnp.where(onehot, jnp.inf, work)

    # One big MXU matmul per batch: gather AND relative-feature subtract fused.
    rel_ref[0] = jnp.dot(oh_ref[...], pf, preferred_element_type=jnp.float32)


# --------------------------------------------------------------------------- #
# Kernel 2: Linear -> BN(batch stats) -> ReLU, x2, then max over K neighbors.
# --------------------------------------------------------------------------- #
def mlp_max_kernel(rel_ref, w1_ref, b1_ref, g1_ref, be1_ref,
                   w2_ref, b2_ref, g2_ref, be2_ref, out_ref, *, num_neighbors):
    B, KN, Dp = rel_ref.shape
    K = num_neighbors
    N = KN // K
    Hp = out_ref.shape[-1]

    comb = rel_ref[...].reshape(B * KN, Dp)                          # (B*K*N, Dp)

    h = jnp.dot(comb, w1_ref[...], preferred_element_type=jnp.float32) + b1_ref[...]
    mu = jnp.mean(h, axis=0, keepdims=True)
    var = jnp.mean((h - mu) * (h - mu), axis=0, keepdims=True)
    h = jnp.maximum((h - mu) * jax.lax.rsqrt(var + BN_EPS) * g1_ref[...] + be1_ref[...], 0.0)

    h = jnp.dot(h, w2_ref[...], preferred_element_type=jnp.float32) + b2_ref[...]
    mu = jnp.mean(h, axis=0, keepdims=True)
    var = jnp.mean((h - mu) * (h - mu), axis=0, keepdims=True)
    h = jnp.maximum((h - mu) * jax.lax.rsqrt(var + BN_EPS) * g2_ref[...] + be2_ref[...], 0.0)

    # Vectorized max over the K neighbors, one contiguous lane-dense store.
    out_ref[...] = jnp.max(h.reshape(B, K, N, Hp), axis=1)


# --------------------------------------------------------------------------- #
# Wrapper
# --------------------------------------------------------------------------- #
def neighborhood_embedding(xyz, features, params, num_neighbors=NUM_NEIGHBORS):
    """xyz: (B, N, 3) f32, features: (B, N, C) f32 -> (B, N, out_channels) f32."""
    B, N, _ = xyz.shape
    assert num_neighbors <= N, "num_neighbors must not exceed the number of points"
    K = num_neighbors

    xyz = xyz.astype(jnp.float32)
    feat = features.astype(jnp.float32)
    D = 3 + feat.shape[-1]
    H = params["w1"].shape[1]
    Dp = _round_up(D, 128)
    Hp = _round_up(H, 128)

    pf = jnp.concatenate([xyz, feat], axis=-1)                       # (B, N, D)
    pf_p = jnp.pad(pf, ((0, 0), (0, 0), (0, Dp - D)))                # lane-dense (B, N, Dp)
    xyzt = jnp.transpose(xyz, (0, 2, 1))                             # (B, 3, N)

    # ---- Kernel 1: per-batch kNN + fused gather/subtract --------------------
    rel = pl.pallas_call(
        knn_rel_kernel,
        out_shape=jax.ShapeDtypeStruct((B, K * N, Dp), jnp.float32),
        grid=(B,),
        in_specs=[
            pl.BlockSpec((1, N, 3), lambda b: (b, 0, 0)),
            pl.BlockSpec((1, 3, N), lambda b: (b, 0, 0)),
            pl.BlockSpec((1, N, Dp), lambda b: (b, 0, 0)),
        ],
        out_specs=pl.BlockSpec((1, K * N, Dp), lambda b: (b, 0, 0)),
        scratch_shapes=[pltpu.VMEM((K * N, N), jnp.float32)],
        compiler_params=pltpu.CompilerParams(dimension_semantics=("parallel",)),
    )(xyz, xyzt, pf_p)

    # ---- Lane-dense (zero-padded) MLP parameters ----------------------------
    f32 = jnp.float32
    w1p = jnp.zeros((Dp, Hp), f32).at[:D, :H].set(params["w1"].astype(f32))
    w2p = jnp.zeros((Hp, Hp), f32).at[:H, :H].set(params["w2"].astype(f32))

    def pad_row(v):
        return jnp.zeros((1, Hp), f32).at[:, :H].set(v.astype(f32))

    b1p, g1p, be1p = pad_row(params["b1"]), pad_row(params["g1"]), pad_row(params["be1"])
    b2p, g2p, be2p = pad_row(params["b2"]), pad_row(params["g2"]), pad_row(params["be2"])

    # ---- Kernel 2: MLP + exact full-batch BatchNorm + neighbor max ----------
    out_p = pl.pallas_call(
        functools.partial(mlp_max_kernel, num_neighbors=K),
        out_shape=jax.ShapeDtypeStruct((B, N, Hp), jnp.float32),
        in_specs=[pl.BlockSpec(memory_space=pltpu.MemorySpace.VMEM)] * 9,
        out_specs=pl.BlockSpec(memory_space=pltpu.MemorySpace.VMEM),
    )(rel, w1p, b1p, g1p, be1p, w2p, b2p, g2p, be2p)

    return out_p[..., :H]


# --------------------------------------------------------------------------- #
# Pure-JAX reference (mirror of the PyTorch training-mode forward)
# --------------------------------------------------------------------------- #
def reference(xyz, features, params, num_neighbors=NUM_NEIGHBORS):
    B, N, _ = xyz.shape
    K = num_neighbors
    d = jnp.sqrt(jnp.maximum(
        jnp.sum((xyz[:, :, None, :] - xyz[:, None, :, :]) ** 2, axis=-1), 0.0))
    _, idx = jax.lax.top_k(-d, K)                          # (B, N, K) smallest dists
    pf = jnp.concatenate([xyz, features], axis=-1)         # (B, N, D)
    knn = jax.vmap(lambda p, i: p[i])(pf, idx)             # (B, N, K, D)
    rel = knn - pf[:, :, None, :]
    D = pf.shape[-1]
    comb = rel.reshape(B * N * K, D)

    def bn_relu(x, g, be):
        mu = jnp.mean(x, axis=0, keepdims=True)
        var = jnp.mean((x - mu) ** 2, axis=0, keepdims=True)
        return jnp.maximum((x - mu) / jnp.sqrt(var + BN_EPS) * g + be, 0.0)

    h = bn_relu(comb @ params["w1"] + params["b1"], params["g1"], params["be1"])
    h = bn_relu(h @ params["w2"] + params["b2"], params["g2"], params["be2"])
    return jnp.max(h.reshape(B, N, K, -1), axis=2)


if __name__ == "__main__":
    B, N = 2, 32
    in_channels, out_channels = 8, 32
    C = 2 * in_channels - 3          # feature width so [dxyz | dfeat] == 2 * in_channels
    Din, H = 2 * in_channels, out_channels

    key = jax.random.PRNGKey(0)
    ks = jax.random.split(key, 10)
    xyz = jax.random.normal(ks[0], (B, N, 3), jnp.float32)
    features = jax.random.normal(ks[1], (B, N, C), jnp.float32)

    # Deterministic synthetic parameters (Linear stored as (in, out); BN affine).
    params = dict(
        w1=0.2 * jax.random.normal(ks[2], (Din, H), jnp.float32),
        b1=0.1 * jax.random.normal(ks[3], (1, H), jnp.float32),
        g1=1.0 + 0.1 * jax.random.normal(ks[4], (1, H), jnp.float32),
        be1=0.1 * jax.random.normal(ks[5], (1, H), jnp.float32),
        w2=0.2 * jax.random.normal(ks[6], (H, H), jnp.float32),
        b2=0.1 * jax.random.normal(ks[7], (1, H), jnp.float32),
        g2=1.0 + 0.1 * jax.random.normal(ks[8], (1, H), jnp.float32),
        be2=0.1 * jax.random.normal(ks[9], (1, H), jnp.float32),
    )

    out = jax.block_until_ready(neighborhood_embedding(xyz, features, params))
    ref = jax.block_until_ready(reference(xyz, features, params))

    assert out.shape == (B, N, out_channels), out.shape
    err = float(jnp.max(jnp.abs(out - ref)))
    if err > 1e-3:
        raise AssertionError(f"mismatch vs reference: max abs err = {err}")
    print("KERNEL_OK")
</pallas_src>

<mosaic_0001>
module attributes {stable_mosaic.version = 11 : i64} {
  func.func @knn_rel_kernel(%arg0: i32, %arg1: memref<1x32x3xf32, #tpu.memory_space<vmem>>, %arg2: memref<1x3x32xf32, #tpu.memory_space<vmem>>, %arg3: memref<1x32x128xf32, #tpu.memory_space<vmem>>, %arg4: memref<1x512x128xf32, #tpu.memory_space<vmem>>, %arg5: memref<512x32xf32, #tpu.memory_space<vmem>>) attributes {dimension_semantics = [#tpu.dimension_semantics<parallel>], iteration_bounds = array<i64: 2>, scalar_prefetch = 0 : i64, scratch_operands = 1 : i64, tpu.core_type = #tpu.core_type<tc>, window_params = [{transform_indices = @transform_0, window_bounds = array<i64: 1, 32, 3>}, {transform_indices = @transform_1, window_bounds = array<i64: 1, 3, 32>}, {transform_indices = @transform_2, window_bounds = array<i64: 1, 32, 128>}, {transform_indices = @transform_3, window_bounds = array<i64: 1, 512, 128>}]} {
    %c0 = arith.constant 0 : index
    %c0_0 = arith.constant 0 : index
    %c0_1 = arith.constant 0 : index
    %0 = vector.load %arg1[%c0, %c0_0, %c0_1] : memref<1x32x3xf32, #tpu.memory_space<vmem>>, vector<1x32x3xf32>
    %1 = vector.shape_cast %0 : vector<1x32x3xf32> to vector<32x3xf32>
    %c0_2 = arith.constant 0 : index
    %c0_3 = arith.constant 0 : index
    %c0_4 = arith.constant 0 : index
    %2 = vector.load %arg2[%c0_2, %c0_3, %c0_4] : memref<1x3x32xf32, #tpu.memory_space<vmem>>, vector<1x3x32xf32>
    %3 = vector.shape_cast %2 : vector<1x3x32xf32> to vector<3x32xf32>
    %c0_5 = arith.constant 0 : index
    %c0_6 = arith.constant 0 : index
    %c0_7 = arith.constant 0 : index
    %4 = vector.load %arg3[%c0_5, %c0_6, %c0_7] : memref<1x32x128xf32, #tpu.memory_space<vmem>>, vector<1x32x128xf32>
    %5 = vector.shape_cast %4 : vector<1x32x128xf32> to vector<32x128xf32>
    %cst = arith.constant dense<0.000000e+00> : vector<32x32xf32>
    %6 = tpu.matmul %1, %3, %cst {dimension_numbers = #tpu.dot_dimension_numbers<[1], [0], [0], [1], [0, 0, 1, 1], [], []>} : vector<32x3xf32>, vector<3x32xf32>, vector<32x32xf32> -> vector<32x32xf32>
    %7 = arith.mulf %3, %3 : vector<3x32xf32>
    %cst_8 = arith.constant dense<0.000000e+00> : vector<32xf32>
    %8 = vector.multi_reduction <add>, %7, %cst_8 [0] : vector<3x32xf32> to vector<32xf32>
    %9 = vector.shape_cast %8 : vector<32xf32> to vector<1x32xf32>
    %cst_9 = arith.constant 2.000000e+00 : f32
    %10 = vector.broadcast %cst_9 : f32 to vector<32x32xf32>
    %11 = arith.mulf %10, %6 : vector<32x32xf32>
    %12 = vector.broadcast %9 : vector<1x32xf32> to vector<32x32xf32>
    %13 = arith.subf %12, %11 : vector<32x32xf32>
    %14 = tpu.iota {dimensions = array<i32: 1>} : vector<32x32xi32>
    %15 = tpu.iota {dimensions = array<i32: 0>} : vector<32x32xi32>
    %16 = arith.cmpi eq, %15, %14 : vector<32x32xi32>
    %17 = arith.extui %16 : vector<32x32xi1> to vector<32x32xi32>
    %18 = arith.sitofp %17 : vector<32x32xi32> to vector<32x32xf32>
    %cst_10 = arith.constant 0.000000e+00 : f32
    %19 = vector.broadcast %cst_10 : f32 to vector<32x32xf32>
    %20 = arith.subf %19, %18 : vector<32x32xf32>
    %cst_11 = arith.constant dense<0x7F800000> : vector<32xf32>
    %21 = vector.multi_reduction <minimumf>, %13, %cst_11 [1] : vector<32x32xf32> to vector<32xf32>
    %22 = vector.shape_cast %21 : vector<32xf32> to vector<32x1xf32>
    %23 = vector.broadcast %22 : vector<32x1xf32> to vector<32x32xf32>
    %24 = arith.cmpf ole, %13, %23 : vector<32x32xf32>
    %c32_i32 = arith.constant 32 : i32
    %25 = vector.broadcast %c32_i32 : i32 to vector<32x32xi32>
    %26 = arith.select %24, %14, %25 : vector<32x32xi1>, vector<32x32xi32>
    %cst_12 = arith.constant dense<2147483647> : vector<32xi32>
    %27 = vector.multi_reduction <minsi>, %26, %cst_12 [1] : vector<32x32xi32> to vector<32xi32>
    %28 = vector.shape_cast %27 : vector<32xi32> to vector<32x1xi32>
    %29 = vector.broadcast %28 : vector<32x1xi32> to vector<32x32xi32>
    %30 = arith.cmpi eq, %14, %29 : vector<32x32xi32>
    %31 = arith.extui %30 : vector<32x32xi1> to vector<32x32xi32>
    %32 = arith.sitofp %31 : vector<32x32xi32> to vector<32x32xf32>
    %33 = arith.addf %32, %20 : vector<32x32xf32>
    %c0_13 = arith.constant 0 : index
    %c0_14 = arith.constant 0 : index
    %34 = vector.load %arg5[%c0_13, %c0_14] : memref<512x32xf32, #tpu.memory_space<vmem>>, vector<32x32xf32>
    tpu.vector_store %arg5[%c0_13, %c0_14], %33 {strides = array<i32>} : memref<512x32xf32, #tpu.memory_space<vmem>>, vector<32x32xf32>,
    %cst_15 = arith.constant 0x7F800000 : f32
    %35 = vector.broadcast %cst_15 : f32 to vector<32x32xf32>
    %36 = arith.select %30, %35, %13 : vector<32x32xi1>, vector<32x32xf32>
    %cst_16 = arith.constant dense<0x7F800000> : vector<32xf32>
    %37 = vector.multi_reduction <minimumf>, %36, %cst_16 [1] : vector<32x32xf32> to vector<32xf32>
    %38 = vector.shape_cast %37 : vector<32xf32> to vector<32x1xf32>
    %39 = vector.broadcast %38 : vector<32x1xf32> to vector<32x32xf32>
    %40 = arith.cmpf ole, %36, %39 : vector<32x32xf32>
    %c32_i32_17 = arith.constant 32 : i32
    %41 = vector.broadcast %c32_i32_17 : i32 to vector<32x32xi32>
    %42 = arith.select %40, %14, %41 : vector<32x32xi1>, vector<32x32xi32>
    %cst_18 = arith.constant dense<2147483647> : vector<32xi32>
    %43 = vector.multi_reduction <minsi>, %42, %cst_18 [1] : vector<32x32xi32> to vector<32xi32>
    %44 = vector.shape_cast %43 : vector<32xi32> to vector<32x1xi32>
    %45 = vector.broadcast %44 : vector<32x1xi32> to vector<32x32xi32>
    %46 = arith.cmpi eq, %14, %45 : vector<32x32xi32>
    %47 = arith.extui %46 : vector<32x32xi1> to vector<32x32xi32>
    %48 = arith.sitofp %47 : vector<32x32xi32> to vector<32x32xf32>
    %49 = arith.addf %48, %20 : vector<32x32xf32>
    %c32 = arith.constant 32 : index
    %c0_19 = arith.constant 0 : index
    %50 = vector.load %arg5[%c32, %c0_19] : memref<512x32xf32, #tpu.memory_space<vmem>>, vector<32x32xf32>
    tpu.vector_store %arg5[%c32, %c0_19], %49 {strides = array<i32>} : memref<512x32xf32, #tpu.memory_space<vmem>>, vector<32x32xf32>,
    %cst_20 = arith.constant 0x7F800000 : f32
    %51 = vector.broadcast %cst_20 : f32 to vector<32x32xf32>
    %52 = arith.select %46, %51, %36 : vector<32x32xi1>, vector<32x32xf32>
    %cst_21 = arith.constant dense<0x7F800000> : vector<32xf32>
    %53 = vector.multi_reduction <minimumf>, %52, %cst_21 [1] : vector<32x32xf32> to vector<32xf32>
    %54 = vector.shape_cast %53 : vector<32xf32> to vector<32x1xf32>
    %55 = vector.broadcast %54 : vector<32x1xf32> to vector<32x32xf32>
    %56 = arith.cmpf ole, %52, %55 : vector<32x32xf32>
    %c32_i32_22 = arith.constant 32 : i32
    %57 = vector.broadcast %c32_i32_22 : i32 to vector<32x32xi32>
    %58 = arith.select %56, %14, %57 : vector<32x32xi1>, vector<32x32xi32>
    %cst_23 = arith.constant dense<2147483647> : vector<32xi32>
    %59 = vector.multi_reduction <minsi>, %58, %cst_23 [1] : vector<32x32xi32> to vector<32xi32>
    %60 = vector.shape_cast %59 : vector<32xi32> to vector<32x1xi32>
    %61 = vector.broadcast %60 : vector<32x1xi32> to vector<32x32xi32>
    %62 = arith.cmpi eq, %14, %61 : vector<32x32xi32>
    %63 = arith.extui %62 : vector<32x32xi1> to vector<32x32xi32>
    %64 = arith.sitofp %63 : vector<32x32xi32> to vector<32x32xf32>
    %65 = arith.addf %64, %20 : vector<32x32xf32>
    %c64 = arith.constant 64 : index
    %c0_24 = arith.constant 0 : index
    %66 = vector.load %arg5[%c64, %c0_24] : memref<512x32xf32, #tpu.memory_space<vmem>>, vector<32x32xf32>
    tpu.vector_store %arg5[%c64, %c0_24], %65 {strides = array<i32>} : memref<512x32xf32, #tpu.memory_space<vmem>>, vector<32x32xf32>,
    %cst_25 = arith.constant 0x7F800000 : f32
    %67 = vector.broadcast %cst_25 : f32 to vector<32x32xf32>
    %68 = arith.select %62, %67, %52 : vector<32x32xi1>, vector<32x32xf32>
    %cst_26 = arith.constant dense<0x7F800000> : vector<32xf32>
    %69 = vector.multi_reduction <minimumf>, %68, %cst_26 [1] : vector<32x32xf32> to vector<32xf32>
    %70 = vector.shape_cast %69 : vector<32xf32> to vector<32x1xf32>
    %71 = vector.broadcast %70 : vector<32x1xf32> to vector<32x32xf32>
    %72 = arith.cmpf ole, %68, %71 : vector<32x32xf32>
    %c32_i32_27 = arith.constant 32 : i32
    %73 = vector.broadcast %c32_i32_27 : i32 to vector<32x32xi32>
    %74 = arith.select %72, %14, %73 : vector<32x32xi1>, vector<32x32xi32>
    %cst_28 = arith.constant dense<2147483647> : vector<32xi32>
    %75 = vector.multi_reduction <minsi>, %74, %cst_28 [1] : vector<32x32xi32> to vector<32xi32>
    %76 = vector.shape_cast %75 : vector<32xi32> to vector<32x1xi32>
    %77 = vector.broadcast %76 : vector<32x1xi32> to vector<32x32xi32>
    %78 = arith.cmpi eq, %14, %77 : vector<32x32xi32>
    %79 = arith.extui %78 : vector<32x32xi1> to vector<32x32xi32>
    %80 = arith.sitofp %79 : vector<32x32xi32> to vector<32x32xf32>
    %81 = arith.addf %80, %20 : vector<32x32xf32>
    %c96 = arith.constant 96 : index
    %c0_29 = arith.constant 0 : index
    %82 = vector.load %arg5[%c96, %c0_29] : memref<512x32xf32, #tpu.memory_space<vmem>>, vector<32x32xf32>
    tpu.vector_store %arg5[%c96, %c0_29], %81 {strides = array<i32>} : memref<512x32xf32, #tpu.memory_space<vmem>>, vector<32x32xf32>,
    %cst_30 = arith.constant 0x7F800000 : f32
    %83 = vector.broadcast %cst_30 : f32 to vector<32x32xf32>
    %84 = arith.select %78, %83, %68 : vector<32x32xi1>, vector<32x32xf32>
    %cst_31 = arith.constant dense<0x7F800000> : vector<32xf32>
    %85 = vector.multi_reduction <minimumf>, %84, %cst_31 [1] : vector<32x32xf32> to vector<32xf32>
    %86 = vector.shape_cast %85 : vector<32xf32> to vector<32x1xf32>
    %87 = vector.broadcast %86 : vector<32x1xf32> to vector<32x32xf32>
    %88 = arith.cmpf ole, %84, %87 : vector<32x32xf32>
    %c32_i32_32 = arith.constant 32 : i32
    %89 = vector.broadcast %c32_i32_32 : i32 to vector<32x32xi32>
    %90 = arith.select %88, %14, %89 : vector<32x32xi1>, vector<32x32xi32>
    %cst_33 = arith.constant dense<2147483647> : vector<32xi32>
    %91 = vector.multi_reduction <minsi>, %90, %cst_33 [1] : vector<32x32xi32> to vector<32xi32>
    %92 = vector.shape_cast %91 : vector<32xi32> to vector<32x1xi32>
    %93 = vector.broadcast %92 : vector<32x1xi32> to vector<32x32xi32>
    %94 = arith.cmpi eq, %14, %93 : vector<32x32xi32>
    %95 = arith.extui %94 : vector<32x32xi1> to vector<32x32xi32>
    %96 = arith.sitofp %95 : vector<32x32xi32> to vector<32x32xf32>
    %97 = arith.addf %96, %20 : vector<32x32xf32>
    %c128 = arith.constant 128 : index
    %c0_34 = arith.constant 0 : index
    %98 = vector.load %arg5[%c128, %c0_34] : memref<512x32xf32, #tpu.memory_space<vmem>>, vector<32x32xf32>
    tpu.vector_store %arg5[%c128, %c0_34], %97 {strides = array<i32>} : memref<512x32xf32, #tpu.memory_space<vmem>>, vector<32x32xf32>,
    %cst_35 = arith.constant 0x7F800000 : f32
    %99 = vector.broadcast %cst_35 : f32 to vector<32x32xf32>
    %100 = arith.select %94, %99, %84 : vector<32x32xi1>, vector<32x32xf32>
    %cst_36 = arith.constant dense<0x7F800000> : vector<32xf32>
    %101 = vector.multi_reduction <minimumf>, %100, %cst_36 [1] : vector<32x32xf32> to vector<32xf32>
    %102 = vector.shape_cast %101 : vector<32xf32> to vector<32x1xf32>
    %103 = vector.broadcast %102 : vector<32x1xf32> to vector<32x32xf32>
    %104 = arith.cmpf ole, %100, %103 : vector<32x32xf32>
    %c32_i32_37 = arith.constant 32 : i32
    %105 = vector.broadcast %c32_i32_37 : i32 to vector<32x32xi32>
    %106 = arith.select %104, %14, %105 : vector<32x32xi1>, vector<32x32xi32>
    %cst_38 = arith.constant dense<2147483647> : vector<32xi32>
    %107 = vector.multi_reduction <minsi>, %106, %cst_38 [1] : vector<32x32xi32> to vector<32xi32>
    %108 = vector.shape_cast %107 : vector<32xi32> to vector<32x1xi32>
    %109 = vector.broadcast %108 : vector<32x1xi32> to vector<32x32xi32>
    %110 = arith.cmpi eq, %14, %109 : vector<32x32xi32>
    %111 = arith.extui %110 : vector<32x32xi1> to vector<32x32xi32>
    %112 = arith.sitofp %111 : vector<32x32xi32> to vector<32x32xf32>
    %113 = arith.addf %112, %20 : vector<32x32xf32>
    %c160 = arith.constant 160 : index
    %c0_39 = arith.constant 0 : index
    %114 = vector.load %arg5[%c160, %c0_39] : memref<512x32xf32, #tpu.memory_space<vmem>>, vector<32x32xf32>
    tpu.vector_store %arg5[%c160, %c0_39], %113 {strides = array<i32>} : memref<512x32xf32, #tpu.memory_space<vmem>>, vector<32x32xf32>,
    %cst_40 = arith.constant 0x7F800000 : f32
    %115 = vector.broadcast %cst_40 : f32 to vector<32x32xf32>
    %116 = arith.select %110, %115, %100 : vector<32x32xi1>, vector<32x32xf32>
    %cst_41 = arith.constant dense<0x7F800000> : vector<32xf32>
    %117 = vector.multi_reduction <minimumf>, %116, %cst_41 [1] : vector<32x32xf32> to vector<32xf32>
    %118 = vector.shape_cast %117 : vector<32xf32> to vector<32x1xf32>
    %119 = vector.broadcast %118 : vector<32x1xf32> to vector<32x32xf32>
    %120 = arith.cmpf ole, %116, %119 : vector<32x32xf32>
    %c32_i32_42 = arith.constant 32 : i32
    %121 = vector.broadcast %c32_i32_42 : i32 to vector<32x32xi32>
    %122 = arith.select %120, %14, %121 : vector<32x32xi1>, vector<32x32xi32>
    %cst_43 = arith.constant dense<2147483647> : vector<32xi32>
    %123 = vector.multi_reduction <minsi>, %122, %cst_43 [1] : vector<32x32xi32> to vector<32xi32>
    %124 = vector.shape_cast %123 : vector<32xi32> to vector<32x1xi32>
    %125 = vector.broadcast %124 : vector<32x1xi32> to vector<32x32xi32>
    %126 = arith.cmpi eq, %14, %125 : vector<32x32xi32>
    %127 = arith.extui %126 : vector<32x32xi1> to vector<32x32xi32>
    %128 = arith.sitofp %127 : vector<32x32xi32> to vector<32x32xf32>
    %129 = arith.addf %128, %20 : vector<32x32xf32>
    %c192 = arith.constant 192 : index
    %c0_44 = arith.constant 0 : index
    %130 = vector.load %arg5[%c192, %c0_44] : memref<512x32xf32, #tpu.memory_space<vmem>>, vector<32x32xf32>
    tpu.vector_store %arg5[%c192, %c0_44], %129 {strides = array<i32>} : memref<512x32xf32, #tpu.memory_space<vmem>>, vector<32x32xf32>,
    %cst_45 = arith.constant 0x7F800000 : f32
    %131 = vector.broadcast %cst_45 : f32 to vector<32x32xf32>
    %132 = arith.select %126, %131, %116 : vector<32x32xi1>, vector<32x32xf32>
    %cst_46 = arith.constant dense<0x7F800000> : vector<32xf32>
    %133 = vector.multi_reduction <minimumf>, %132, %cst_46 [1] : vector<32x32xf32> to vector<32xf32>
    %134 = vector.shape_cast %133 : vector<32xf32> to vector<32x1xf32>
    %135 = vector.broadcast %134 : vector<32x1xf32> to vector<32x32xf32>
    %136 = arith.cmpf ole, %132, %135 : vector<32x32xf32>
    %c32_i32_47 = arith.constant 32 : i32
    %137 = vector.broadcast %c32_i32_47 : i32 to vector<32x32xi32>
    %138 = arith.select %136, %14, %137 : vector<32x32xi1>, vector<32x32xi32>
    %cst_48 = arith.constant dense<2147483647> : vector<32xi32>
    %139 = vector.multi_reduction <minsi>, %138, %cst_48 [1] : vector<32x32xi32> to vector<32xi32>
    %140 = vector.shape_cast %139 : vector<32xi32> to vector<32x1xi32>
    %141 = vector.broadcast %140 : vector<32x1xi32> to vector<32x32xi32>
    %142 = arith.cmpi eq, %14, %141 : vector<32x32xi32>
    %143 = arith.extui %142 : vector<32x32xi1> to vector<32x32xi32>
    %144 = arith.sitofp %143 : vector<32x32xi32> to vector<32x32xf32>
    %145 = arith.addf %144, %20 : vector<32x32xf32>
    %c224 = arith.constant 224 : index
    %c0_49 = arith.constant 0 : index
    %146 = vector.load %arg5[%c224, %c0_49] : memref<512x32xf32, #tpu.memory_space<vmem>>, vector<32x32xf32>
    tpu.vector_store %arg5[%c224, %c0_49], %145 {strides = array<i32>} : memref<512x32xf32, #tpu.memory_space<vmem>>, vector<32x32xf32>,
    %cst_50 = arith.constant 0x7F800000 : f32
    %147 = vector.broadcast %cst_50 : f32 to vector<32x32xf32>
    %148 = arith.select %142, %147, %132 : vector<32x32xi1>, vector<32x32xf32>
    %cst_51 = arith.constant dense<0x7F800000> : vector<32xf32>
    %149 = vector.multi_reduction <minimumf>, %148, %cst_51 [1] : vector<32x32xf32> to vector<32xf32>
    %150 = vector.shape_cast %149 : vector<32xf32> to vector<32x1xf32>
    %151 = vector.broadcast %150 : vector<32x1xf32> to vector<32x32xf32>
    %152 = arith.cmpf ole, %148, %151 : vector<32x32xf32>
    %c32_i32_52 = arith.constant 32 : i32
    %153 = vector.broadcast %c32_i32_52 : i32 to vector<32x32xi32>
    %154 = arith.select %152, %14, %153 : vector<32x32xi1>, vector<32x32xi32>
    %cst_53 = arith.constant dense<2147483647> : vector<32xi32>
    %155 = vector.multi_reduction <minsi>, %154, %cst_53 [1] : vector<32x32xi32> to vector<32xi32>
    %156 = vector.shape_cast %155 : vector<32xi32> to vector<32x1xi32>
    %157 = vector.broadcast %156 : vector<32x1xi32> to vector<32x32xi32>
    %158 = arith.cmpi eq, %14, %157 : vector<32x32xi32>
    %159 = arith.extui %158 : vector<32x32xi1> to vector<32x32xi32>
    %160 = arith.sitofp %159 : vector<32x32xi32> to vector<32x32xf32>
    %161 = arith.addf %160, %20 : vector<32x32xf32>
    %c256 = arith.constant 256 : index
    %c0_54 = arith.constant 0 : index
    %162 = vector.load %arg5[%c256, %c0_54] : memref<512x32xf32, #tpu.memory_space<vmem>>, vector<32x32xf32>
    tpu.vector_store %arg5[%c256, %c0_54], %161 {strides = array<i32>} : memref<512x32xf32, #tpu.memory_space<vmem>>, vector<32x32xf32>,
    %cst_55 = arith.constant 0x7F800000 : f32
    %163 = vector.broadcast %cst_55 : f32 to vector<32x32xf32>
    %164 = arith.select %158, %163, %148 : vector<32x32xi1>, vector<32x32xf32>
    %cst_56 = arith.constant dense<0x7F800000> : vector<32xf32>
    %165 = vector.multi_reduction <minimumf>, %164, %cst_56 [1] : vector<32x32xf32> to vector<32xf32>
    %166 = vector.shape_cast %165 : vector<32xf32> to vector<32x1xf32>
    %167 = vector.broadcast %166 : vector<32x1xf32> to vector<32x32xf32>
    %168 = arith.cmpf ole, %164, %167 : vector<32x32xf32>
    %c32_i32_57 = arith.constant 32 : i32
    %169 = vector.broadcast %c32_i32_57 : i32 to vector<32x32xi32>
    %170 = arith.select %168, %14, %169 : vector<32x32xi1>, vector<32x32xi32>
    %cst_58 = arith.constant dense<2147483647> : vector<32xi32>
    %171 = vector.multi_reduction <minsi>, %170, %cst_58 [1] : vector<32x32xi32> to vector<32xi32>
    %172 = vector.shape_cast %171 : vector<32xi32> to vector<32x1xi32>
    %173 = vector.broadcast %172 : vector<32x1xi32> to vector<32x32xi32>
    %174 = arith.cmpi eq, %14, %173 : vector<32x32xi32>
    %175 = arith.extui %174 : vector<32x32xi1> to vector<32x32xi32>
    %176 = arith.sitofp %175 : vector<32x32xi32> to vector<32x32xf32>
    %177 = arith.addf %176, %20 : vector<32x32xf32>
    %c288 = arith.constant 288 : index
    %c0_59 = arith.constant 0 : index
    %178 = vector.load %arg5[%c288, %c0_59] : memref<512x32xf32, #tpu.memory_space<vmem>>, vector<32x32xf32>
    tpu.vector_store %arg5[%c288, %c0_59], %177 {strides = array<i32>} : memref<512x32xf32, #tpu.memory_space<vmem>>, vector<32x32xf32>,
    %cst_60 = arith.constant 0x7F800000 : f32
    %179 = vector.broadcast %cst_60 : f32 to vector<32x32xf32>
    %180 = arith.select %174, %179, %164 : vector<32x32xi1>, vector<32x32xf32>
    %cst_61 = arith.constant dense<0x7F800000> : vector<32xf32>
    %181 = vector.multi_reduction <minimumf>, %180, %cst_61 [1] : vector<32x32xf32> to vector<32xf32>
    %182 = vector.shape_cast %181 : vector<32xf32> to vector<32x1xf32>
    %183 = vector.broadcast %182 : vector<32x1xf32> to vector<32x32xf32>
    %184 = arith.cmpf ole, %180, %183 : vector<32x32xf32>
    %c32_i32_62 = arith.constant 32 : i32
    %185 = vector.broadcast %c32_i32_62 : i32 to vector<32x32xi32>
    %186 = arith.select %184, %14, %185 : vector<32x32xi1>, vector<32x32xi32>
    %cst_63 = arith.constant dense<2147483647> : vector<32xi32>
    %187 = vector.multi_reduction <minsi>, %186, %cst_63 [1] : vector<32x32xi32> to vector<32xi32>
    %188 = vector.shape_cast %187 : vector<32xi32> to vector<32x1xi32>
    %189 = vector.broadcast %188 : vector<32x1xi32> to vector<32x32xi32>
    %190 = arith.cmpi eq, %14, %189 : vector<32x32xi32>
    %191 = arith.extui %190 : vector<32x32xi1> to vector<32x32xi32>
    %192 = arith.sitofp %191 : vector<32x32xi32> to vector<32x32xf32>
    %193 = arith.addf %192, %20 : vector<32x32xf32>
    %c320 = arith.constant 320 : index
    %c0_64 = arith.constant 0 : index
    %194 = vector.load %arg5[%c320, %c0_64] : memref<512x32xf32, #tpu.memory_space<vmem>>, vector<32x32xf32>
    tpu.vector_store %arg5[%c320, %c0_64], %193 {strides = array<i32>} : memref<512x32xf32, #tpu.memory_space<vmem>>, vector<32x32xf32>,
    %cst_65 = arith.constant 0x7F800000 : f32
    %195 = vector.broadcast %cst_65 : f32 to vector<32x32xf32>
    %196 = arith.select %190, %195, %180 : vector<32x32xi1>, vector<32x32xf32>
    %cst_66 = arith.constant dense<0x7F800000> : vector<32xf32>
    %197 = vector.multi_reduction <minimumf>, %196, %cst_66 [1] : vector<32x32xf32> to vector<32xf32>
    %198 = vector.shape_cast %197 : vector<32xf32> to vector<32x1xf32>
    %199 = vector.broadcast %198 : vector<32x1xf32> to vector<32x32xf32>
    %200 = arith.cmpf ole, %196, %199 : vector<32x32xf32>
    %c32_i32_67 = arith.constant 32 : i32
    %201 = vector.broadcast %c32_i32_67 : i32 to vector<32x32xi32>
    %202 = arith.select %200, %14, %201 : vector<32x32xi1>, vector<32x32xi32>
    %cst_68 = arith.constant dense<2147483647> : vector<32xi32>
    %203 = vector.multi_reduction <minsi>, %202, %cst_68 [1] : vector<32x32xi32> to vector<32xi32>
    %204 = vector.shape_cast %203 : vector<32xi32> to vector<32x1xi32>
    %205 = vector.broadcast %204 : vector<32x1xi32> to vector<32x32xi32>
    %206 = arith.cmpi eq, %14, %205 : vector<32x32xi32>
    %207 = arith.extui %206 : vector<32x32xi1> to vector<32x32xi32>
    %208 = arith.sitofp %207 : vector<32x32xi32> to vector<32x32xf32>
    %209 = arith.addf %208, %20 : vector<32x32xf32>
    %c352 = arith.constant 352 : index
    %c0_69 = arith.constant 0 : index
    %210 = vector.load %arg5[%c352, %c0_69] : memref<512x32xf32, #tpu.memory_space<vmem>>, vector<32x32xf32>
    tpu.vector_store %arg5[%c352, %c0_69], %209 {strides = array<i32>} : memref<512x32xf32, #tpu.memory_space<vmem>>, vector<32x32xf32>,
    %cst_70 = arith.constant 0x7F800000 : f32
    %211 = vector.broadcast %cst_70 : f32 to vector<32x32xf32>
    %212 = arith.select %206, %211, %196 : vector<32x32xi1>, vector<32x32xf32>
    %cst_71 = arith.constant dense<0x7F800000> : vector<32xf32>
    %213 = vector.multi_reduction <minimumf>, %212, %cst_71 [1] : vector<32x32xf32> to vector<32xf32>
    %214 = vector.shape_cast %213 : vector<32xf32> to vector<32x1xf32>
    %215 = vector.broadcast %214 : vector<32x1xf32> to vector<32x32xf32>
    %216 = arith.cmpf ole, %212, %215 : vector<32x32xf32>
    %c32_i32_72 = arith.constant 32 : i32
    %217 = vector.broadcast %c32_i32_72 : i32 to vector<32x32xi32>
    %218 = arith.select %216, %14, %217 : vector<32x32xi1>, vector<32x32xi32>
    %cst_73 = arith.constant dense<2147483647> : vector<32xi32>
    %219 = vector.multi_reduction <minsi>, %218, %cst_73 [1] : vector<32x32xi32> to vector<32xi32>
    %220 = vector.shape_cast %219 : vector<32xi32> to vector<32x1xi32>
    %221 = vector.broadcast %220 : vector<32x1xi32> to vector<32x32xi32>
    %222 = arith.cmpi eq, %14, %221 : vector<32x32xi32>
    %223 = arith.extui %222 : vector<32x32xi1> to vector<32x32xi32>
    %224 = arith.sitofp %223 : vector<32x32xi32> to vector<32x32xf32>
    %225 = arith.addf %224, %20 : vector<32x32xf32>
    %c384 = arith.constant 384 : index
    %c0_74 = arith.constant 0 : index
    %226 = vector.load %arg5[%c384, %c0_74] : memref<512x32xf32, #tpu.memory_space<vmem>>, vector<32x32xf32>
    tpu.vector_store %arg5[%c384, %c0_74], %225 {strides = array<i32>} : memref<512x32xf32, #tpu.memory_space<vmem>>, vector<32x32xf32>,
    %cst_75 = arith.constant 0x7F800000 : f32
    %227 = vector.broadcast %cst_75 : f32 to vector<32x32xf32>
    %228 = arith.select %222, %227, %212 : vector<32x32xi1>, vector<32x32xf32>
    %cst_76 = arith.constant dense<0x7F800000> : vector<32xf32>
    %229 = vector.multi_reduction <minimumf>, %228, %cst_76 [1] : vector<32x32xf32> to vector<32xf32>
    %230 = vector.shape_cast %229 : vector<32xf32> to vector<32x1xf32>
    %231 = vector.broadcast %230 : vector<32x1xf32> to vector<32x32xf32>
    %232 = arith.cmpf ole, %228, %231 : vector<32x32xf32>
    %c32_i32_77 = arith.constant 32 : i32
    %233 = vector.broadcast %c32_i32_77 : i32 to vector<32x32xi32>
    %234 = arith.select %232, %14, %233 : vector<32x32xi1>, vector<32x32xi32>
    %cst_78 = arith.constant dense<2147483647> : vector<32xi32>
    %235 = vector.multi_reduction <minsi>, %234, %cst_78 [1] : vector<32x32xi32> to vector<32xi32>
    %236 = vector.shape_cast %235 : vector<32xi32> to vector<32x1xi32>
    %237 = vector.broadcast %236 : vector<32x1xi32> to vector<32x32xi32>
    %238 = arith.cmpi eq, %14, %237 : vector<32x32xi32>
    %239 = arith.extui %238 : vector<32x32xi1> to vector<32x32xi32>
    %240 = arith.sitofp %239 : vector<32x32xi32> to vector<32x32xf32>
    %241 = arith.addf %240, %20 : vector<32x32xf32>
    %c416 = arith.constant 416 : index
    %c0_79 = arith.constant 0 : index
    %242 = vector.load %arg5[%c416, %c0_79] : memref<512x32xf32, #tpu.memory_space<vmem>>, vector<32x32xf32>
    tpu.vector_store %arg5[%c416, %c0_79], %241 {strides = array<i32>} : memref<512x32xf32, #tpu.memory_space<vmem>>, vector<32x32xf32>,
    %cst_80 = arith.constant 0x7F800000 : f32
    %243 = vector.broadcast %cst_80 : f32 to vector<32x32xf32>
    %244 = arith.select %238, %243, %228 : vector<32x32xi1>, vector<32x32xf32>
    %cst_81 = arith.constant dense<0x7F800000> : vector<32xf32>
    %245 = vector.multi_reduction <minimumf>, %244, %cst_81 [1] : vector<32x32xf32> to vector<32xf32>
    %246 = vector.shape_cast %245 : vector<32xf32> to vector<32x1xf32>
    %247 = vector.broadcast %246 : vector<32x1xf32> to vector<32x32xf32>
    %248 = arith.cmpf ole, %244, %247 : vector<32x32xf32>
    %c32_i32_82 = arith.constant 32 : i32
    %249 = vector.broadcast %c32_i32_82 : i32 to vector<32x32xi32>
    %250 = arith.select %248, %14, %249 : vector<32x32xi1>, vector<32x32xi32>
    %cst_83 = arith.constant dense<2147483647> : vector<32xi32>
    %251 = vector.multi_reduction <minsi>, %250, %cst_83 [1] : vector<32x32xi32> to vector<32xi32>
    %252 = vector.shape_cast %251 : vector<32xi32> to vector<32x1xi32>
    %253 = vector.broadcast %252 : vector<32x1xi32> to vector<32x32xi32>
    %254 = arith.cmpi eq, %14, %253 : vector<32x32xi32>
    %255 = arith.extui %254 : vector<32x32xi1> to vector<32x32xi32>
    %256 = arith.sitofp %255 : vector<32x32xi32> to vector<32x32xf32>
    %257 = arith.addf %256, %20 : vector<32x32xf32>
    %c448 = arith.constant 448 : index
    %c0_84 = arith.constant 0 : index
    %258 = vector.load %arg5[%c448, %c0_84] : memref<512x32xf32, #tpu.memory_space<vmem>>, vector<32x32xf32>
    tpu.vector_store %arg5[%c448, %c0_84], %257 {strides = array<i32>} : memref<512x32xf32, #tpu.memory_space<vmem>>, vector<32x32xf32>,
    %cst_85 = arith.constant 0x7F800000 : f32
    %259 = vector.broadcast %cst_85 : f32 to vector<32x32xf32>
    %260 = arith.select %254, %259, %244 : vector<32x32xi1>, vector<32x32xf32>
    %cst_86 = arith.constant dense<0x7F800000> : vector<32xf32>
    %261 = vector.multi_reduction <minimumf>, %260, %cst_86 [1] : vector<32x32xf32> to vector<32xf32>
    %262 = vector.shape_cast %261 : vector<32xf32> to vector<32x1xf32>
    %263 = vector.broadcast %262 : vector<32x1xf32> to vector<32x32xf32>
    %264 = arith.cmpf ole, %260, %263 : vector<32x32xf32>
    %c32_i32_87 = arith.constant 32 : i32
    %265 = vector.broadcast %c32_i32_87 : i32 to vector<32x32xi32>
    %266 = arith.select %264, %14, %265 : vector<32x32xi1>, vector<32x32xi32>
    %cst_88 = arith.constant dense<2147483647> : vector<32xi32>
    %267 = vector.multi_reduction <minsi>, %266, %cst_88 [1] : vector<32x32xi32> to vector<32xi32>
    %268 = vector.shape_cast %267 : vector<32xi32> to vector<32x1xi32>
    %269 = vector.broadcast %268 : vector<32x1xi32> to vector<32x32xi32>
    %270 = arith.cmpi eq, %14, %269 : vector<32x32xi32>
    %271 = arith.extui %270 : vector<32x32xi1> to vector<32x32xi32>
    %272 = arith.sitofp %271 : vector<32x32xi32> to vector<32x32xf32>
    %273 = arith.addf %272, %20 : vector<32x32xf32>
    %c480 = arith.constant 480 : index
    %c0_89 = arith.constant 0 : index
    %274 = vector.load %arg5[%c480, %c0_89] : memref<512x32xf32, #tpu.memory_space<vmem>>, vector<32x32xf32>
    tpu.vector_store %arg5[%c480, %c0_89], %273 {strides = array<i32>} : memref<512x32xf32, #tpu.memory_space<vmem>>, vector<32x32xf32>,
    %c0_90 = arith.constant 0 : index
    %c0_91 = arith.constant 0 : index
    %275 = vector.load %arg5[%c0_90, %c0_91] : memref<512x32xf32, #tpu.memory_space<vmem>>, vector<512x32xf32>
    %cst_92 = arith.constant dense<0.000000e+00> : vector<512x128xf32>
    %276 = tpu.matmul %275, %5, %cst_92 {dimension_numbers = #tpu.dot_dimension_numbers<[1], [0], [0], [1], [0, 0, 1, 1], [], []>} : vector<512x32xf32>, vector<32x128xf32>, vector<512x128xf32> -> vector<512x128xf32>
    %c0_93 = arith.constant 0 : index
    %c0_94 = arith.constant 0 : index
    %c0_95 = arith.constant 0 : index
    %277 = vector.load %arg4[%c0_93, %c0_94, %c0_95] : memref<1x512x128xf32, #tpu.memory_space<vmem>>, vector<1x512x128xf32>
    %278 = vector.shape_cast %277 : vector<1x512x128xf32> to vector<512x128xf32>
    %279 = vector.shape_cast %276 : vector<512x128xf32> to vector<1x512x128xf32>
    tpu.vector_store %arg4[%c0_93, %c0_94, %c0_95], %279 {strides = array<i32>} : memref<1x512x128xf32, #tpu.memory_space<vmem>>, vector<1x512x128xf32>,
    return
  }
  func.func @transform_0(%arg0: i32) -> (i32, i32, i32) {
    %c0_i32 = arith.constant 0 : i32
    %c0_i32_0 = arith.constant 0 : i32
    %c0_i32_1 = arith.constant 0 : i32
    return %arg0, %c0_i32, %c0_i32_0 : i32, i32, i32
  }
  func.func @transform_1(%arg0: i32) -> (i32, i32, i32) {
    %c0_i32 = arith.constant 0 : i32
    %c0_i32_0 = arith.constant 0 : i32
    %c0_i32_1 = arith.constant 0 : i32
    return %arg0, %c0_i32, %c0_i32_0 : i32, i32, i32
  }
  func.func @transform_2(%arg0: i32) -> (i32, i32, i32) {
    %c0_i32 = arith.constant 0 : i32
    %c0_i32_0 = arith.constant 0 : i32
    %c0_i32_1 = arith.constant 0 : i32
    return %arg0, %c0_i32, %c0_i32_0 : i32, i32, i32
  }
  func.func @transform_3(%arg0: i32) -> (i32, i32, i32) {
    %c0_i32 = arith.constant 0 : i32
    %c0_i32_0 = arith.constant 0 : i32
    %c0_i32_1 = arith.constant 0 : i32
    return %arg0, %c0_i32, %c0_i32_0 : i32, i32, i32
  }
}

</mosaic_0001>

<bundles_post_ra>
// kernel: tpu_custom_call.1
= control target key start
LH: loop header
LB: loop body
LE: loop exit
PB: predicated region body
PF: predicated region fallthrough
CT: control target
= control target key end

     0   :  { %8 = vsyncpa [#allocation4], 0  ;;  %s3899_s0 = inlined_call_operand.vmem [shape: f32[2,32,3], index: 0, kind: input, shape index: {}]   ;;  %s3900_s1 = inlined_call_operand.vmem [shape: f32[2,3,32], index: 1, kind: input, shape index: {}]   ;;  %s3901_s2 = inlined_call_operand.vmem [shape: f32[2,32,128], index: 2, kind: input, shape index: {}]   ;;  %s3902_s3 = inlined_call_operand.hbm [shape: f32[2,512,128], index: 3, kind: output, shape index: {}]  }
   0x1   :  { %10 = vsyncpa [#allocation4 + $0x1], 0  ;;  %s2889_s12 = smov 0   ;;  %s2891_s13 = smov 0  }
   0x2   :  { %s2893_s14 = smov 0   ;;  %s2895_s15 = smov 0  }
   0x3 LB: > { %s2910_s16 = sadd.s32 4294967295, %s2864_s15   ;;  %s2593_s17 = sadd.s32 4294967294, %s2864_s15   ;;  %s2864_s15 = sphi %s2895_s15, %s3908_s15   ;;  %s2860_s14 = sphi %s2893_s14, %s3907_s14   ;;  %s2856_s13 = sphi %s2891_s13, %s3906_s13   ;;  %s2852_s12 = sphi %s2889_s12, %s3905_s12  }
   0x4   : > { %s2914_s18 = sadd.s32 1, %s2864_s15   ;;  %s101_s19 = sadd.s32 1, %s2860_s14 }
   0x5   : > { %s98_s20 = ssub.s32 %s2864_s15, %s2914_s18  ;;  %p111_p0 = scmp.ne.s32.totalorder %s2860_s14, %s2856_s13 }
   0x6   : > { %p99_p1 = scmp.eq.s32.totalorder %s98_s20, 0  ;;  %p112_p2 = scmp.eq.s32.totalorder %s2910_s16, 1 }
   0x7   : > { %p117_p3 = scmp.ne.s32.totalorder %s2856_s13, %s2852_s12  ;;  %p118_p4 = scmp.eq.s32.totalorder %s2593_s17, 1 }
   0x8   : > { %s2925_s21 = scalar_select %p99_p1, %s2860_s14, %s101_s19  }
   0x9   : > { %p2927_p5 = por %p112_p2, %p111_p0  ;;  %p2931_p6 = por %p118_p4, %p117_p3 }
   0xa   : > { %p2596_p7 = scmp.ge.s32.totalorder %s2864_s15, 1  ;;  %p159_p8 = scmp.lt.s32.totalorder %s2864_s15, 3 }
   0xc   : > { %p160_p9 = pnand %p2596_p7, %p159_p8 }
   0xd   : > { %p192_p10 = scmp.lt.s32.totalorder (!%p160_p9), %s2910_s16, 1  ;;  %s189_s9 = sand.u32 (!%p160_p9), 1, %s2856_s13  }
   0xe   : > { %163 = sbr.rel (%p160_p9) target bundleno = 6149 (0x1805), region = 32  ;;  %s2597_s10 = sshll.u32 (!%p160_p9), %s189_s9, 9 }
   0xf   : > { %s3064_s11 = scalar_lea.vmem (!%p160_p9), [#allocation3], %s2597_s10  ;;  %s2747_s17 = sshll.u32 (!%p160_p9), %s2910_s16, 9 }
  0x10   : > { %s2492_s27 = scalar_lea.sflag (!%p160_p9), [#allocation4], %s189_s9  ;;  %s2822_s4 = scalar_lea.hbm (!%p160_p9), %s3902_s3, 1024 }
  0x13   : > { %s2939_s24 = scalar_select %p192_p10, %s2910_s16, 1  ;;  %vm228_vm0 = vcmask 1042432   ;;  %vm215_vm1 = vcmask 23552   ;;  %vm262_vm2 = vcmask 256000   ;;  %vm301_vm3 = vcmask 261120  }
  0x14   : > { %v278_v29 = vlaneseq }
  0x15   : > { %s2745_s25 = sshll.u32 %s2939_s24, 5  ;;  %s2600_s26 = sshll.u32 %s2939_s24, 2 }
  0x16   : > { %s200_s29 = scalar_lea.vmem %s3900_s1, %s2600_s26  ;;  %s196_s5 = scalar_lea.vmem %s3899_s0, %s2745_s25  ;;  %v2968_v30 = vand.u32 127, %v278_v29 }
  0x17   : > { %v210_v0 = vld [vmem:[%s200_s29] sm:$0x7]  ;;  %v207_v2 = vld [vmem:[%s196_s5 + $0x8] sm:$0xff]  ;;  %v208_v3 = vld [vmem:[%s196_s5 + $0x10] sm:$0xff]  ;;  %s205_s8 = scalar_lea.vmem %s3901_s2, %s2745_s25  ;;  %s2503_s24 = scalar_lea.hbm %s3902_s3, %s2747_s17 }
  0x18   : > { %2603 = vmatpush.msk.msra.mxu0 %vm228_vm0, %v210_v0  ;;  %v206_v1 = vld [vmem:[%s196_s5] sm:$0xff]  ;;  %v209_v4 = vld [vmem:[%s196_s5 + $0x18] sm:$0xff]  ;;  %v261_v5 = vmul.f32 %v210_v0, %v210_v0  ;;  %s2504_s25 = sshll.u32 %s3064_s11, 4  ;;  %s2506_s26 = sshll.u32 %s2503_s24, 4  ;;  %s2505_s25 = int_to_ptr.vmem [resolvable:$true] %s2504_s25  ;;  %s2507_s26 = int_to_ptr.hbm [resolvable:$true] %s2506_s26 }
  0x19   : > { %2604 = vmatmul.msk.f32.vlgmr.msra.gmra.mxu0 %vm215_vm1, %v206_v1  ;;  %s2816_s28 = sshra.s32 %s2507_s26, 4  ;;  %s2817_s28 = int_to_ptr.hbm [resolvable:$true] %s2816_s28 }
  0x1a   : > { %v263_v6 = vsel %vm262_vm2, %v261_v5, 0.0  ;;  %v212_v5 = vld [vmem:[%s205_s8 + $0x8] sm:$0xff]  ;;  %s2818_s29 = scalar_lea.hbm %s2817_s28, 512  ;;  %p2823_p0 = scmp.lt.s32.totalorder %s2817_s28, %s3902_s3 }
  0x1b   : > { %v264_v7 = vrot.slane %v263_v6, 4  ;;  %p2819_p11 = scmp.ne.s32.totalorder %s2817_s28, %s2818_s29  ;;  %p2824_p1 = scmp.lt.s32.totalorder %s2822_s4, %s2818_s29 }
  0x1d   : > { %v265_v8 = vadd.f32 %v264_v7, %v263_v6  ;;  %v211_v6 = vld [vmem:[%s205_s8] sm:$0xff]  ;;  %v281_v7 = vshrl.u32 %v278_v29, 7  ;;  %p2820_p12 = pnand %p2819_p11, %p2927_p5  ;;  %p2825_p2 = por %p2824_p1, %p2823_p0 }
  0x1f   : > { %v266_v9 = vrot.slane %v265_v8, 2  ;;  %vm285_vm12 = vcmp.eq.s32.totalorder %v281_v7, %v2968_v30  ;;  %p2821_p13 = pneg %p2820_p12 }
  0x21   : > { %2605 = vmatmul.msk.f32.gmra.mxu0 %vm215_vm1, %v207_v2  ;;  %v267_v10 = vadd.f32 %v266_v9, %v265_v8  ;;  %p2826_p3 = pnand %p2825_p2, %p2821_p13 }
  0x23   : > { %v268_v11 = vrot.slane %v267_v10, 1 }
  0x25   : > { %v269_v12 = vadd.f32 %v268_v11, %v267_v10  ;;  %v2866_v10 = vmov 0.0  }
  0x26   : > { %v2608_v11 = vsel %vm285_vm12, 1.0, %v2866_v10 }
  0x29   : > { %2606 = vmatmul.msk.f32.gmra.mxu0 %vm215_vm1, %v208_v3  ;;  %v214_v3 = vld [vmem:[%s205_s8 + $0x18] sm:$0xff] }
  0x2a   : > { %2230 = vmatpush.msrb.mxu0 %v214_v3  ;;  %2748 = vmatpush.msra.mxu1 %v214_v3 }
  0x2b   : > { %2749 = vmatpush.msra.mxu2 %v214_v3  ;;  %2750 = vmatpush.msra.mxu3 %v214_v3 }
  0x31   : > { %2607 = vmatmul.msk.f32.gmra.mxu0 %vm215_vm1, %v209_v4  ;;  %v213_v4 = vld [vmem:[%s205_s8 + $0x10] sm:$0xff] }
  0x32   : > { %2231 = vmatpush.msrb.mxu0 %v213_v4  ;;  %2751 = vmatpush.msra.mxu1 %v213_v4 }
  0x33   : > { %2752 = vmatpush.msra.mxu2 %v213_v4  ;;  %2753 = vmatpush.msra.mxu3 %v213_v4 }
  0x34   : > { %2232 = vmatpush.msrb.mxu0 %v212_v5  ;;  %2754 = vmatpush.msra.mxu1 %v212_v5 }
  0x35   : > { %2755 = vmatpush.msra.mxu2 %v212_v5  ;;  %2756 = vmatpush.msra.mxu3 %v212_v5 }
  0x36   : > { %2233 = vmatpush.msrb.mxu0 %v211_v6  ;;  %2757 = vmatpush.msra.mxu1 %v211_v6 }
  0x37   : > { %2758 = vmatpush.msra.mxu2 %v211_v6  ;;  %2759 = vmatpush.msra.mxu3 %v211_v6 }
  0x96   : > { %v249_v13 = vpop.f32.mrf.mxu0 }
  0x97   : > { %v270_v14 = vmul.f32 2.0, %v249_v13 }
  0x99   : > { %v2951_v15 = vsub.f32 %v269_v12, %v270_v14  ;;  %v282_v14 = vadd.s32 8, %v281_v7 }
  0x9b   : > { %v302_v16 = vsel %vm301_vm3, %v2951_v15, inf  ;;  %vm286_vm14 = vcmp.eq.s32.totalorder %v282_v14, %v2968_v30 }
  0x9c   : > { %303 = vmin.xlane.f32.xlu0 %v302_v16 }
  0x9e   : > { %v252_v17 = vpop.f32.mrf.mxu0 }
  0x9f   : > { %v271_v18 = vmul.f32 2.0, %v252_v17  ;;  %v2996_v17 = vsub.f32 0.0, %v2608_v11 }
  0xa1   : > { %v2955_v19 = vsub.f32 %v269_v12, %v271_v18 }
  0xa3   : > { %v305_v20 = vsel %vm301_vm3, %v2955_v19, inf }
  0xa4   : > { %306 = vmin.xlane.f32.xlu0 %v305_v20 }
  0xa6   : > { %v255_v21 = vpop.f32.mrf.mxu0 }
  0xa7   : > { %v272_v22 = vmul.f32 2.0, %v255_v21 }
  0xa9   : > { %v2959_v23 = vsub.f32 %v269_v12, %v272_v22 }
  0xab   : > { %v308_v24 = vsel %vm301_vm3, %v2959_v23, inf }
  0xac   : > { %309 = vmin.xlane.f32.xlu1 %v308_v24 }
  0xae   : > { %v258_v25 = vpop.f32.mrf.mxu0 }
  0xaf   : > { %v273_v26 = vmul.f32 2.0, %v258_v25 }
  0xb1   : > { %v2963_v27 = vsub.f32 %v269_v12, %v273_v26  ;;  %v2609_v26 = vsel %vm286_vm14, 1.0, %v2866_v10 }
  0xb3   : > { %v311_v28 = vsel %vm301_vm3, %v2963_v27, inf }
  0xb4   : > { %312 = vmin.xlane.f32.xlu1 %v311_v28 }
 0x10f   : > { %v304_v31 = vpop.xlane.xlu0 %303 }
 0x110   : > { %vm314_vm4 = vcmp.le.f32.partialorder %v2951_v15, %v304_v31  ;;  %v283_v31 = vadd.s32 16, %v281_v7 }
 0x111   : > { %v318_v32 = vsel %vm314_vm4, %v2968_v30, 32 }
 0x112   : > { %v322_v33 = vsel %vm301_vm3, %v318_v32, 2147483647  ;;  %vm287_vm0 = vcmp.eq.s32.totalorder %v283_v31, %v2968_v30 }
 0x113   : > { %v324_v34 = vshra.s32 %v322_v33, 16  ;;  %v323_v51 = vand.u32 65535, %v322_v33  ;;  %v3009_v33 = vsub.f32 0.0, %v2609_v26 }
 0x115   : > { %v326_v35 = vcvt.s32.f32 %v324_v34  ;;  %v325_v53 = vcvt.s32.f32 %v323_v51 }
 0x117   : > { %327 = vmin.xlane.f32.xlu2 %v326_v35  ;;  %v307_v36 = vpop.xlane.xlu0 %306 }
 0x118   : > { %vm315_vm5 = vcmp.le.f32.partialorder %v2955_v19, %v307_v36 }
 0x119   : > { %v319_v37 = vsel %vm315_vm5, %v2968_v30, 32 }
 0x11a   : > { %v337_v38 = vsel %vm301_vm3, %v319_v37, 2147483647 }
 0x11b   : > { %v339_v39 = vshra.s32 %v337_v38, 16  ;;  %v338_v55 = vand.u32 65535, %v337_v38 }
 0x11d   : > { %v341_v40 = vcvt.s32.f32 %v339_v39  ;;  %v340_v57 = vcvt.s32.f32 %v338_v55 }
 0x11f   : > { %342 = vmin.xlane.f32.xlu2 %v341_v40  ;;  %v310_v41 = vpop.xlane.xlu1 %309 }
 0x120   : > { %vm316_vm6 = vcmp.le.f32.partialorder %v2959_v23, %v310_v41 }
 0x121   : > { %v320_v42 = vsel %vm316_vm6, %v2968_v30, 32 }
 0x122   : > { %v352_v43 = vsel %vm301_vm3, %v320_v42, 2147483647 }
 0x123   : > { %v354_v44 = vshra.s32 %v352_v43, 16  ;;  %v353_v59 = vand.u32 65535, %v352_v43  ;;  %v284_v43 = vadd.s32 24, %v281_v7 }
 0x125   : > { %v356_v45 = vcvt.s32.f32 %v354_v44  ;;  %v355_v61 = vcvt.s32.f32 %v353_v59  ;;  %vm288_vm2 = vcmp.eq.s32.totalorder %v284_v43, %v2968_v30 }
 0x127   : > { %357 = vmin.xlane.f32.xlu0 %v356_v45  ;;  %v313_v46 = vpop.xlane.xlu1 %312 }
 0x128   : > { %vm317_vm7 = vcmp.le.f32.partialorder %v2963_v27, %v313_v46 }
 0x129   : > { %v321_v47 = vsel %vm317_vm7, %v2968_v30, 32 }
 0x12a   : > { %v367_v48 = vsel %vm301_vm3, %v321_v47, 2147483647 }
 0x12b   : > { %v369_v49 = vshra.s32 %v367_v48, 16  ;;  %v368_v63 = vand.u32 65535, %v367_v48 }
 0x12d   : > { %v371_v50 = vcvt.s32.f32 %v369_v49  ;;  %v370_v1 = vcvt.s32.f32 %v368_v63 }
 0x12f   : > { %372 = vmin.xlane.f32.xlu1 %v371_v50 }
 0x18a   : > { %v328_v52 = vpop.xlane.xlu2 %327 }
 0x18b   : > { %vm329_vm8 = vcmp.eq.f32.partialorder %v326_v35, %v328_v52  ;;  %v334_v8 = vcvt.f32.s32 %v328_v52  ;;  %v2611_v52 = vsel %vm288_vm2, 1.0, %v2866_v10 }
 0x18c   : > { %v330_v54 = vsel %vm329_vm8, %v325_v53, inf }
 0x18d   : > { %331 = vmin.xlane.f32.xlu2 %v330_v54  ;;  %v335_v12 = vshll.u32 %v334_v8, 16 }
 0x192   : > { %v343_v56 = vpop.xlane.xlu2 %342 }
 0x193   : > { %vm344_vm9 = vcmp.eq.f32.partialorder %v341_v40, %v343_v56  ;;  %v349_v18 = vcvt.f32.s32 %v343_v56  ;;  %v2610_v40 = vsel %vm287_vm0, 1.0, %v2866_v10  ;;  %v3039_v56 = vsub.f32 0.0, %v2611_v52 }
 0x194   : > { %v345_v58 = vsel %vm344_vm9, %v340_v57, inf }
 0x195   : > { %346 = vmin.xlane.f32.xlu0 %v345_v58  ;;  %v350_v28 = vshll.u32 %v349_v18, 16 }
 0x19a   : > { %v2982_v60 = vpop.xlane.xlu0 %357 }
 0x19b   : > { %vm359_vm10 = vcmp.eq.f32.partialorder %v356_v45, %v2982_v60 }
 0x19c   : > { %v360_v62 = vsel %vm359_vm10, %v355_v61, inf }
 0x19d   : > { %361 = vmin.xlane.f32.xlu1 %v360_v62 }
 0x1a2   : > { %v2985_v0 = vpop.xlane.xlu1 %372 }
 0x1a3   : > { %vm374_vm11 = vcmp.eq.f32.partialorder %v371_v50, %v2985_v0  ;;  %v379_v45 = vcvt.f32.s32 %v2985_v0 }
 0x1a4   : > { %v375_v2 = vsel %vm374_vm11, %v370_v1, inf }
 0x1a5   : > { %376 = vmin.xlane.f32.xlu2 %v375_v2  ;;  %v380_v53 = vshll.u32 %v379_v45, 16 }
 0x200   : > { %v332_v9 = vpop.xlane.xlu2 %331 }
 0x201   : > { %v333_v13 = vcvt.f32.s32 %v332_v9 }
 0x203   : > { %v336_v16 = vadd.s32 %v335_v12, %v333_v13 }
 0x205   : > { %vm382_vm13 = vcmp.eq.s32.totalorder %v2968_v30, %v336_v16 }
 0x206   : > { %v2612_v20 = vsel %vm382_vm13, 1.0, %v2866_v10  ;;  %v3002_v21 = vsel %vm382_vm13, inf, %v2951_v15  ;;  %v364_v15 = vcvt.f32.s32 %v2982_v60 }
 0x207   : > { %v394_v22 = vadd.f32 %v2612_v20, %v2996_v17  ;;  %v406_v24 = vsel %vm301_vm3, %v3002_v21, inf }
 0x208   : > { %407 = vmin.xlane.f32.xlu0 %v406_v24  ;;  %v347_v25 = vpop.xlane.xlu0 %346  ;;  %v365_v41 = vshll.u32 %v364_v15, 16 }
 0x209   : > { %398 = vst.msk [vmem:[#allocation2] sm:$0xff] %vm301_vm3, %v394_v22  ;;  %v348_v29 = vcvt.f32.s32 %v347_v25 }
 0x20b   : > { %v351_v32 = vadd.s32 %v350_v28, %v348_v29 }
 0x20d   : > { %vm383_vm15 = vcmp.eq.s32.totalorder %v2968_v30, %v351_v32 }
 0x20e   : > { %v2613_v34 = vsel %vm383_vm15, 1.0, %v2866_v10  ;;  %v3016_v35 = vsel %vm383_vm15, inf, %v2955_v19  ;;  %v3024_v19 = vsub.f32 0.0, %v2610_v40 }
 0x20f   : > { %v395_v36 = vadd.f32 %v2613_v34, %v3009_v33  ;;  %v409_v37 = vsel %vm301_vm3, %v3016_v35, inf }
 0x210   : > { %410 = vmin.xlane.f32.xlu1 %v409_v37  ;;  %v362_v38 = vpop.xlane.xlu1 %361  ;;  %v1962_v39 = vld [vmem:[#allocation2] sm:$0xff] }
 0x211   : > { %399 = vst.msk [vmem:[#allocation2 + $0x8] sm:$0xff] %vm301_vm3, %v395_v36  ;;  %v363_v42 = vcvt.f32.s32 %v362_v38  ;;  %2676 = vmatmul.msk.f32.vlgmr.msrb.gmra.mxu0 %vm301_vm3, %v1962_v39 }
 0x213   : > { %v366_v44 = vadd.s32 %v365_v41, %v363_v42 }
 0x215   : > { %vm384_vm1 = vcmp.eq.s32.totalorder %v2968_v30, %v366_v44 }
 0x216   : > { %v2614_v46 = vsel %vm384_vm1, 1.0, %v2866_v10  ;;  %v3031_v47 = vsel %vm384_vm1, inf, %v2959_v23 }
 0x217   : > { %v396_v48 = vadd.f32 %v2614_v46, %v3024_v19  ;;  %v412_v49 = vsel %vm301_vm3, %v3031_v47, inf }
 0x218   : > { %413 = vmin.xlane.f32.xlu2 %v412_v49  ;;  %v377_v50 = vpop.xlane.xlu2 %376  ;;  %v1963_v51 = vld [vmem:[#allocation2 + $0x8] sm:$0xff] }
 0x219   : > { %400 = vst.msk [vmem:[#allocation2 + $0x10] sm:$0xff] %vm301_vm3, %v396_v48  ;;  %v378_v54 = vcvt.f32.s32 %v377_v50  ;;  %2677 = vmatmul.msk.f32.gmra.mxu0 %vm301_vm3, %v1963_v51 }
 0x21b   : > { %v381_v55 = vadd.s32 %v380_v53, %v378_v54 }
 0x21d   : > { %vm385_vm4 = vcmp.eq.s32.totalorder %v2968_v30, %v381_v55 }
 0x21e   : > { %v3043_v23 = vsel %vm385_vm4, inf, %v2963_v27  ;;  %v2615_v57 = vsel %vm385_vm4, 1.0, %v2866_v10 }
 0x21f   : > { %v415_v58 = vsel %vm301_vm3, %v3043_v23, inf  ;;  %v397_v59 = vadd.f32 %v2615_v57, %v3039_v56 }
 0x220   : > { %416 = vmin.xlane.f32.xlu0 %v415_v58  ;;  %v1964_v60 = vld [vmem:[#allocation2 + $0x10] sm:$0xff] }
 0x221   : > { %401 = vst.msk [vmem:[#allocation2 + $0x18] sm:$0xff] %vm301_vm3, %v397_v59  ;;  %2678 = vmatmul.msk.f32.gmra.mxu0 %vm301_vm3, %v1964_v60 }
 0x228   : > { %v1965_v61 = vld [vmem:[#allocation2 + $0x18] sm:$0xff] }
 0x229   : > { %2679 = vmatmul.msk.f32.gmra.mxu0 %vm301_vm3, %v1965_v61 }
 0x27b   : > { %v408_v27 = vpop.xlane.xlu0 %407 }
 0x27c   : > { %vm418_vm5 = vcmp.le.f32.partialorder %v3002_v21, %v408_v27 }
 0x27d   : > { %v422_v62 = vsel %vm418_vm5, %v2968_v30, 32 }
 0x27e   : > { %v426_v63 = vsel %vm301_vm3, %v422_v62, 2147483647 }
 0x27f   : > { %v428_v0 = vshra.s32 %v426_v63, 16  ;;  %v427_v28 = vand.u32 65535, %v426_v63 }
 0x281   : > { %v430_v1 = vcvt.s32.f32 %v428_v0  ;;  %v429_v31 = vcvt.s32.f32 %v427_v28 }
 0x283   : > { %431 = vmin.xlane.f32.xlu1 %v430_v1  ;;  %v411_v2 = vpop.xlane.xlu1 %410 }
 0x284   : > { %vm419_vm6 = vcmp.le.f32.partialorder %v3016_v35, %v411_v2 }
 0x285   : > { %v423_v3 = vsel %vm419_vm6, %v2968_v30, 32 }
 0x286   : > { %v441_v4 = vsel %vm301_vm3, %v423_v3, 2147483647 }
 0x287   : > { %v443_v5 = vshra.s32 %v441_v4, 16  ;;  %v442_v15 = vand.u32 65535, %v441_v4 }
 0x289   : > { %v445_v6 = vcvt.s32.f32 %v443_v5  ;;  %v444_v36 = vcvt.s32.f32 %v442_v15 }
 0x28b   : > { %446 = vmin.xlane.f32.xlu2 %v445_v6  ;;  %v414_v7 = vpop.xlane.xlu2 %413 }
 0x28c   : > { %vm420_vm7 = vcmp.le.f32.partialorder %v3031_v47, %v414_v7 }
 0x28d   : > { %v424_v8 = vsel %vm420_vm7, %v2968_v30, 32 }
 0x28e   : > { %v2235_v9 = vpop.f32.mrf.mxu0  ;;  %v456_v11 = vsel %vm301_vm3, %v424_v8, 2147483647 }
 0x28f   : > { %2427 = vst [vmem:[%s3064_s11] sm:$0xff] %v2235_v9  ;;  %v458_v12 = vshra.s32 %v456_v11, 16  ;;  %v457_v38 = vand.u32 65535, %v456_v11 }
 0x291   : > { %v460_v13 = vcvt.s32.f32 %v458_v12  ;;  %v459_v40 = vcvt.s32.f32 %v457_v38 }
 0x293   : > { %v417_v14 = vpop.xlane.xlu0 %416  ;;  %461 = vmin.xlane.f32.xlu0 %v460_v13 }
 0x294   : > { %vm421_vm8 = vcmp.le.f32.partialorder %v3043_v23, %v417_v14 }
 0x295   : > { %v425_v16 = vsel %vm421_vm8, %v2968_v30, 32 }
 0x296   : > { %v2238_v18 = vpop.f32.mrf.mxu0  ;;  %v471_v20 = vsel %vm301_vm3, %v425_v16, 2147483647 }
 0x297   : > { %2428 = vst [vmem:[%s3064_s11 + $0x8] sm:$0xff] %v2238_v18  ;;  %v473_v22 = vshra.s32 %v471_v20, 16  ;;  %v472_v42 = vand.u32 65535, %v471_v20 }
 0x299   : > { %v475_v24 = vcvt.s32.f32 %v473_v22  ;;  %v474_v44 = vcvt.s32.f32 %v472_v42 }
 0x29b   : > { %476 = vmin.xlane.f32.xlu1 %v475_v24 }
 0x29e   : > { %v2241_v25 = vpop.f32.mrf.mxu0 }
 0x29f   : > { %2429 = vst [vmem:[%s3064_s11 + $0x10] sm:$0xff] %v2241_v25 }
 0x2a6   : > { %v2244_v26 = vpop.f32.mrf.mxu0 }
 0x2a7   : > { %2430 = vst [vmem:[%s3064_s11 + $0x18] sm:$0xff] %v2244_v26 }
 0x2f6   : > { %v432_v29 = vpop.xlane.xlu1 %431 }
 0x2f7   : > { %vm433_vm9 = vcmp.eq.f32.partialorder %v430_v1, %v432_v29  ;;  %v438_v46 = vcvt.f32.s32 %v432_v29 }
 0x2f8   : > { %v434_v32 = vsel %vm433_vm9, %v429_v31, inf }
 0x2f9   : > { %435 = vmin.xlane.f32.xlu2 %v434_v32  ;;  %v439_v49 = vshll.u32 %v438_v46, 16 }
 0x2fe   : > { %v447_v34 = vpop.xlane.xlu2 %446 }
 0x2ff   : > { %vm448_vm10 = vcmp.eq.f32.partialorder %v445_v6, %v447_v34  ;;  %v453_v52 = vcvt.f32.s32 %v447_v34 }
 0x300   : > { %v449_v37 = vsel %vm448_vm10, %v444_v36, inf }
 0x301   : > { %450 = vmin.xlane.f32.xlu0 %v449_v37  ;;  %v454_v59 = vshll.u32 %v453_v52, 16 }
 0x306   : > { %v462_v39 = vpop.xlane.xlu0 %461 }
 0x307   : > { %vm463_vm11 = vcmp.eq.f32.partialorder %v460_v13, %v462_v39  ;;  %v468_v27 = vcvt.f32.s32 %v462_v39 }
 0x308   : > { %v464_v41 = vsel %vm463_vm11, %v459_v40, inf }
 0x309   : > { %465 = vmin.xlane.f32.xlu1 %v464_v41  ;;  %v469_v3 = vshll.u32 %v468_v27, 16 }
 0x30e   : > { %v477_v43 = vpop.xlane.xlu1 %476 }
 0x30f   : > { %vm478_vm12 = vcmp.eq.f32.partialorder %v475_v24, %v477_v43  ;;  %v483_v6 = vcvt.f32.s32 %v477_v43 }
 0x310   : > { %v479_v45 = vsel %vm478_vm12, %v474_v44, inf }
 0x311   : > { %480 = vmin.xlane.f32.xlu2 %v479_v45  ;;  %v484_v13 = vshll.u32 %v483_v6, 16 }
 0x36c   : > { %v436_v48 = vpop.xlane.xlu2 %435 }
 0x36d   : > { %v437_v50 = vcvt.f32.s32 %v436_v48 }
 0x36f   : > { %v440_v51 = vadd.s32 %v439_v49, %v437_v50 }
 0x371   : > { %vm486_vm13 = vcmp.eq.s32.totalorder %v2968_v30, %v440_v51 }
 0x372   : > { %v3075_v53 = vsel %vm486_vm13, inf, %v3002_v21  ;;  %v2616_v54 = vsel %vm486_vm13, 1.0, %v2866_v10 }
 0x373   : > { %v510_v55 = vsel %vm301_vm3, %v3075_v53, inf  ;;  %v498_v57 = vadd.f32 %v2616_v54, %v2996_v17 }
 0x374   : > { %v451_v58 = vpop.xlane.xlu0 %450  ;;  %511 = vmin.xlane.f32.xlu0 %v510_v55 }
 0x375   : > { %v452_v60 = vcvt.f32.s32 %v451_v58  ;;  %502 = vst.msk [vmem:[#allocation2 + $0x20] sm:$0xff] %vm301_vm3, %v498_v57 }
 0x377   : > { %v455_v61 = vadd.s32 %v454_v59, %v452_v60 }
 0x379   : > { %vm487_vm14 = vcmp.eq.s32.totalorder %v2968_v30, %v455_v61 }
 0x37a   : > { %v3084_v21 = vsel %vm487_vm14, inf, %v3016_v35  ;;  %v2617_v62 = vsel %vm487_vm14, 1.0, %v2866_v10 }
 0x37b   : > { %v513_v63 = vsel %vm301_vm3, %v3084_v21, inf  ;;  %v499_v0 = vadd.f32 %v2617_v62, %v3009_v33 }
 0x37c   : > { %v466_v1 = vpop.xlane.xlu1 %465  ;;  %514 = vmin.xlane.f32.xlu1 %v513_v63  ;;  %v1966_v2 = vld [vmem:[#allocation2 + $0x20] sm:$0xff] }
 0x37d   : > { %v467_v4 = vcvt.f32.s32 %v466_v1  ;;  %503 = vst.msk [vmem:[#allocation2 + $0x28] sm:$0xff] %vm301_vm3, %v499_v0  ;;  %2680 = vmatmul.msk.f32.gmra.mxu0 %vm301_vm3, %v1966_v2 }
 0x37f   : > { %v470_v5 = vadd.s32 %v469_v3, %v467_v4 }
 0x381   : > { %vm488_vm15 = vcmp.eq.s32.totalorder %v2968_v30, %v470_v5 }
 0x382   : > { %v3094_v35 = vsel %vm488_vm15, inf, %v3031_v47  ;;  %v2618_v7 = vsel %vm488_vm15, 1.0, %v2866_v10 }
 0x383   : > { %v516_v8 = vsel %vm301_vm3, %v3094_v35, inf  ;;  %v500_v9 = vadd.f32 %v2618_v7, %v3024_v19 }
 0x384   : > { %517 = vmin.xlane.f32.xlu2 %v516_v8  ;;  %v481_v11 = vpop.xlane.xlu2 %480  ;;  %v1967_v12 = vld [vmem:[#allocation2 + $0x28] sm:$0xff] }
 0x385   : > { %504 = vst.msk [vmem:[#allocation2 + $0x30] sm:$0xff] %vm301_vm3, %v500_v9  ;;  %v482_v14 = vcvt.f32.s32 %v481_v11  ;;  %2681 = vmatmul.msk.f32.gmra.mxu0 %vm301_vm3, %v1967_v12 }
 0x387   : > { %v485_v16 = vadd.s32 %v484_v13, %v482_v14 }
 0x389   : > { %vm489_vm0 = vcmp.eq.s32.totalorder %v2968_v30, %v485_v16 }
 0x38a   : > { %v3104_v47 = vsel %vm489_vm0, inf, %v3043_v23  ;;  %v2619_v18 = vsel %vm489_vm0, 1.0, %v2866_v10 }
 0x38b   : > { %v519_v20 = vsel %vm301_vm3, %v3104_v47, inf  ;;  %v501_v22 = vadd.f32 %v2619_v18, %v3039_v56 }
 0x38c   : > { %520 = vmin.xlane.f32.xlu0 %v519_v20  ;;  %v1968_v24 = vld [vmem:[#allocation2 + $0x30] sm:$0xff] }
 0x38d   : > { %505 = vst.msk [vmem:[#allocation2 + $0x38] sm:$0xff] %vm301_vm3, %v501_v22  ;;  %2682 = vmatmul.msk.f32.gmra.mxu0 %vm301_vm3, %v1968_v24 }
 0x394   : > { %v1969_v25 = vld [vmem:[#allocation2 + $0x38] sm:$0xff] }
 0x395   : > { %2683 = vmatmul.msk.f32.gmra.mxu0 %vm301_vm3, %v1969_v25 }
 0x3e7   : > { %v512_v26 = vpop.xlane.xlu0 %511 }
 0x3e8   : > { %vm522_vm1 = vcmp.le.f32.partialorder %v3075_v53, %v512_v26 }
 0x3e9   : > { %v526_v23 = vsel %vm522_vm1, %v2968_v30, 32 }
 0x3ea   : > { %v530_v28 = vsel %vm301_vm3, %v526_v23, 2147483647 }
 0x3eb   : > { %v532_v29 = vshra.s32 %v530_v28, 16  ;;  %v531_v54 = vand.u32 65535, %v530_v28 }
 0x3ed   : > { %v534_v31 = vcvt.s32.f32 %v532_v29  ;;  %v533_v57 = vcvt.s32.f32 %v531_v54 }
 0x3ef   : > { %v515_v32 = vpop.xlane.xlu1 %514  ;;  %535 = vmin.xlane.f32.xlu1 %v534_v31 }
 0x3f0   : > { %vm523_vm2 = vcmp.le.f32.partialorder %v3084_v21, %v515_v32 }
 0x3f1   : > { %v527_v15 = vsel %vm523_vm2, %v2968_v30, 32 }
 0x3f2   : > { %v545_v34 = vsel %vm301_vm3, %v527_v15, 2147483647 }
 0x3f3   : > { %v547_v36 = vshra.s32 %v545_v34, 16  ;;  %v546_v59 = vand.u32 65535, %v545_v34 }
 0x3f5   : > { %v549_v37 = vcvt.s32.f32 %v547_v36  ;;  %v548_v61 = vcvt.s32.f32 %v546_v59 }
 0x3f7   : > { %550 = vmin.xlane.f32.xlu2 %v549_v37  ;;  %v518_v38 = vpop.xlane.xlu2 %517 }
 0x3f8   : > { %vm524_vm4 = vcmp.le.f32.partialorder %v3094_v35, %v518_v38 }
 0x3f9   : > { %v528_v39 = vsel %vm524_vm4, %v2968_v30, 32 }
 0x3fa   : > { %v2247_v40 = vpop.f32.mrf.mxu0  ;;  %v560_v41 = vsel %vm301_vm3, %v528_v39, 2147483647 }
 0x3fb   : > { %2431 = vst [vmem:[%s3064_s11 + $0x20] sm:$0xff] %v2247_v40  ;;  %v562_v42 = vshra.s32 %v560_v41, 16  ;;  %v561_v62 = vand.u32 65535, %v560_v41 }
 0x3fd   : > { %v564_v43 = vcvt.s32.f32 %v562_v42  ;;  %v563_v0 = vcvt.s32.f32 %v561_v62 }
 0x3ff   : > { %v521_v44 = vpop.xlane.xlu0 %520  ;;  %565 = vmin.xlane.f32.xlu0 %v564_v43 }
 0x400   : > { %vm525_vm5 = vcmp.le.f32.partialorder %v3104_v47, %v521_v44 }
 0x401   : > { %v529_v45 = vsel %vm525_vm5, %v2968_v30, 32 }
 0x402   : > { %v2250_v46 = vpop.f32.mrf.mxu0  ;;  %v575_v48 = vsel %vm301_vm3, %v529_v45, 2147483647 }
 0x403   : > { %2432 = vst [vmem:[%s3064_s11 + $0x28] sm:$0xff] %v2250_v46  ;;  %v577_v49 = vshra.s32 %v575_v48, 16  ;;  %v576_v2 = vand.u32 65535, %v575_v48 }
 0x405   : > { %v579_v50 = vcvt.s32.f32 %v577_v49  ;;  %v578_v4 = vcvt.s32.f32 %v576_v2 }
 0x407   : > { %580 = vmin.xlane.f32.xlu1 %v579_v50 }
 0x40a   : > { %v2253_v51 = vpop.f32.mrf.mxu0 }
 0x40b   : > { %2433 = vst [vmem:[%s3064_s11 + $0x30] sm:$0xff] %v2253_v51 }
 0x412   : > { %v2256_v52 = vpop.f32.mrf.mxu0 }
 0x413   : > { %2434 = vst [vmem:[%s3064_s11 + $0x38] sm:$0xff] %v2256_v52 }
 0x462   : > { %v536_v55 = vpop.xlane.xlu1 %535 }
 0x463   : > { %vm537_vm6 = vcmp.eq.f32.partialorder %v534_v31, %v536_v55  ;;  %v542_v6 = vcvt.f32.s32 %v536_v55 }
 0x464   : > { %v538_v58 = vsel %vm537_vm6, %v533_v57, inf }
 0x465   : > { %539 = vmin.xlane.f32.xlu2 %v538_v58  ;;  %v543_v8 = vshll.u32 %v542_v6, 16 }
 0x46a   : > { %v551_v60 = vpop.xlane.xlu2 %550 }
 0x46b   : > { %vm552_vm7 = vcmp.eq.f32.partialorder %v549_v37, %v551_v60  ;;  %v557_v12 = vcvt.f32.s32 %v551_v60 }
 0x46c   : > { %v553_v27 = vsel %vm552_vm7, %v548_v61, inf }
 0x46d   : > { %554 = vmin.xlane.f32.xlu0 %v553_v27  ;;  %v558_v22 = vshll.u32 %v557_v12, 16 }
 0x472   : > { %v566_v63 = vpop.xlane.xlu0 %565 }
 0x473   : > { %vm567_vm8 = vcmp.eq.f32.partialorder %v564_v43, %v566_v63  ;;  %v572_v26 = vcvt.f32.s32 %v566_v63 }
 0x474   : > { %v568_v1 = vsel %vm567_vm8, %v563_v0, inf }
 0x475   : > { %569 = vmin.xlane.f32.xlu1 %v568_v1  ;;  %v573_v15 = vshll.u32 %v572_v26, 16 }
 0x47a   : > { %v581_v3 = vpop.xlane.xlu1 %580 }
 0x47b   : > { %vm582_vm9 = vcmp.eq.f32.partialorder %v579_v50, %v581_v3  ;;  %v587_v37 = vcvt.f32.s32 %v581_v3 }
 0x47c   : > { %v583_v5 = vsel %vm582_vm9, %v578_v4, inf }
 0x47d   : > { %584 = vmin.xlane.f32.xlu2 %v583_v5  ;;  %v588_v43 = vshll.u32 %v587_v37, 16 }
 0x4d8   : > { %v540_v7 = vpop.xlane.xlu2 %539 }
 0x4d9   : > { %v541_v9 = vcvt.f32.s32 %v540_v7 }
 0x4db   : > { %v544_v11 = vadd.s32 %v543_v8, %v541_v9 }
 0x4dd   : > { %vm590_vm10 = vcmp.eq.s32.totalorder %v2968_v30, %v544_v11 }
 0x4de   : > { %v3131_v13 = vsel %vm590_vm10, inf, %v3075_v53  ;;  %v2620_v14 = vsel %vm590_vm10, 1.0, %v2866_v10 }
 0x4df   : > { %v614_v16 = vsel %vm301_vm3, %v3131_v13, inf  ;;  %v602_v18 = vadd.f32 %v2620_v14, %v2996_v17 }
 0x4e0   : > { %v555_v20 = vpop.xlane.xlu0 %554  ;;  %615 = vmin.xlane.f32.xlu0 %v614_v16 }
 0x4e1   : > { %v556_v24 = vcvt.f32.s32 %v555_v20  ;;  %606 = vst.msk [vmem:[#allocation2 + $0x40] sm:$0xff] %vm301_vm3, %v602_v18 }
 0x4e3   : > { %v559_v25 = vadd.s32 %v558_v22, %v556_v24 }
 0x4e5   : > { %vm591_vm11 = vcmp.eq.s32.totalorder %v2968_v30, %v559_v25 }
 0x4e6   : > { %v3140_v53 = vsel %vm591_vm11, inf, %v3084_v21  ;;  %v2621_v23 = vsel %vm591_vm11, 1.0, %v2866_v10 }
 0x4e7   : > { %v617_v28 = vsel %vm301_vm3, %v3140_v53, inf  ;;  %v603_v29 = vadd.f32 %v2621_v23, %v3009_v33 }
 0x4e8   : > { %v570_v31 = vpop.xlane.xlu1 %569  ;;  %618 = vmin.xlane.f32.xlu1 %v617_v28  ;;  %v1970_v32 = vld [vmem:[#allocation2 + $0x40] sm:$0xff] }
 0x4e9   : > { %v571_v34 = vcvt.f32.s32 %v570_v31  ;;  %607 = vst.msk [vmem:[#allocation2 + $0x48] sm:$0xff] %vm301_vm3, %v603_v29  ;;  %2684 = vmatmul.msk.f32.gmra.mxu0 %vm301_vm3, %v1970_v32 }
 0x4eb   : > { %v574_v36 = vadd.s32 %v573_v15, %v571_v34 }
 0x4ed   : > { %vm592_vm12 = vcmp.eq.s32.totalorder %v2968_v30, %v574_v36 }
 0x4ee   : > { %v3150_v21 = vsel %vm592_vm12, inf, %v3094_v35  ;;  %v2622_v38 = vsel %vm592_vm12, 1.0, %v2866_v10 }
 0x4ef   : > { %v620_v39 = vsel %vm301_vm3, %v3150_v21, inf  ;;  %v604_v40 = vadd.f32 %v2622_v38, %v3024_v19 }
 0x4f0   : > { %621 = vmin.xlane.f32.xlu2 %v620_v39  ;;  %v585_v41 = vpop.xlane.xlu2 %584  ;;  %v1971_v42 = vld [vmem:[#allocation2 + $0x48] sm:$0xff] }
 0x4f1   : > { %608 = vst.msk [vmem:[#allocation2 + $0x50] sm:$0xff] %vm301_vm3, %v604_v40  ;;  %v586_v44 = vcvt.f32.s32 %v585_v41  ;;  %2685 = vmatmul.msk.f32.gmra.mxu0 %vm301_vm3, %v1971_v42 }
 0x4f3   : > { %v589_v45 = vadd.s32 %v588_v43, %v586_v44 }
 0x4f5   : > { %vm593_vm13 = vcmp.eq.s32.totalorder %v2968_v30, %v589_v45 }
 0x4f6   : > { %v3160_v35 = vsel %vm593_vm13, inf, %v3104_v47  ;;  %v2623_v46 = vsel %vm593_vm13, 1.0, %v2866_v10 }
 0x4f7   : > { %v623_v48 = vsel %vm301_vm3, %v3160_v35, inf  ;;  %v605_v49 = vadd.f32 %v2623_v46, %v3039_v56 }
 0x4f8   : > { %624 = vmin.xlane.f32.xlu0 %v623_v48  ;;  %v1972_v50 = vld [vmem:[#allocation2 + $0x50] sm:$0xff] }
 0x4f9   : > { %609 = vst.msk [vmem:[#allocation2 + $0x58] sm:$0xff] %vm301_vm3, %v605_v49  ;;  %2686 = vmatmul.msk.f32.gmra.mxu0 %vm301_vm3, %v1972_v50 }
 0x500   : > { %v1973_v51 = vld [vmem:[#allocation2 + $0x58] sm:$0xff] }
 0x501   : > { %2687 = vmatmul.msk.f32.gmra.mxu0 %vm301_vm3, %v1973_v51 }
 0x553   : > { %v616_v52 = vpop.xlane.xlu0 %615 }
 0x554   : > { %vm626_vm14 = vcmp.le.f32.partialorder %v3131_v13, %v616_v52 }
 0x555   : > { %v630_v47 = vsel %vm626_vm14, %v2968_v30, 32 }
 0x556   : > { %v634_v54 = vsel %vm301_vm3, %v630_v47, 2147483647 }
 0x557   : > { %v636_v55 = vshra.s32 %v634_v54, 16  ;;  %v635_v14 = vand.u32 65535, %v634_v54 }
 0x559   : > { %v638_v57 = vcvt.s32.f32 %v636_v55  ;;  %v637_v18 = vcvt.s32.f32 %v635_v14 }
 0x55b   : > { %v619_v58 = vpop.xlane.xlu1 %618  ;;  %639 = vmin.xlane.f32.xlu1 %v638_v57 }
 0x55c   : > { %vm627_vm15 = vcmp.le.f32.partialorder %v3140_v53, %v619_v58 }
 0x55d   : > { %v631_v59 = vsel %vm627_vm15, %v2968_v30, 32 }
 0x55e   : > { %v649_v60 = vsel %vm301_vm3, %v631_v59, 2147483647 }
 0x55f   : > { %v651_v61 = vshra.s32 %v649_v60, 16  ;;  %v650_v22 = vand.u32 65535, %v649_v60 }
 0x561   : > { %v653_v27 = vcvt.s32.f32 %v651_v61  ;;  %v652_v25 = vcvt.s32.f32 %v650_v22 }
 0x563   : > { %654 = vmin.xlane.f32.xlu2 %v653_v27  ;;  %v622_v62 = vpop.xlane.xlu2 %621 }
 0x564   : > { %vm628_vm0 = vcmp.le.f32.partialorder %v3150_v21, %v622_v62 }
 0x565   : > { %v632_v63 = vsel %vm628_vm0, %v2968_v30, 32 }
 0x566   : > { %v2259_v0 = vpop.f32.mrf.mxu0  ;;  %v664_v1 = vsel %vm301_vm3, %v632_v63, 2147483647 }
 0x567   : > { %2435 = vst [vmem:[%s3064_s11 + $0x40] sm:$0xff] %v2259_v0  ;;  %v666_v2 = vshra.s32 %v664_v1, 16  ;;  %v665_v23 = vand.u32 65535, %v664_v1 }
 0x569   : > { %v668_v3 = vcvt.s32.f32 %v666_v2  ;;  %v667_v29 = vcvt.s32.f32 %v665_v23 }
 0x56b   : > { %v625_v4 = vpop.xlane.xlu0 %624  ;;  %669 = vmin.xlane.f32.xlu0 %v668_v3 }
 0x56c   : > { %vm629_vm1 = vcmp.le.f32.partialorder %v3160_v35, %v625_v4 }
 0x56d   : > { %v633_v5 = vsel %vm629_vm1, %v2968_v30, 32 }
 0x56e   : > { %v2262_v6 = vpop.f32.mrf.mxu0  ;;  %v679_v7 = vsel %vm301_vm3, %v633_v5, 2147483647 }
 0x56f   : > { %2436 = vst [vmem:[%s3064_s11 + $0x48] sm:$0xff] %v2262_v6  ;;  %v681_v8 = vshra.s32 %v679_v7, 16  ;;  %v680_v32 = vand.u32 65535, %v679_v7 }
 0x571   : > { %v683_v9 = vcvt.s32.f32 %v681_v8  ;;  %v682_v34 = vcvt.s32.f32 %v680_v32 }
 0x573   : > { %684 = vmin.xlane.f32.xlu1 %v683_v9 }
 0x576   : > { %v2265_v11 = vpop.f32.mrf.mxu0 }
 0x577   : > { %2437 = vst [vmem:[%s3064_s11 + $0x50] sm:$0xff] %v2265_v11 }
 0x57e   : > { %v2268_v12 = vpop.f32.mrf.mxu0 }
 0x57f   : > { %2438 = vst [vmem:[%s3064_s11 + $0x58] sm:$0xff] %v2268_v12 }
 0x5ce   : > { %v640_v16 = vpop.xlane.xlu1 %639 }
 0x5cf   : > { %vm641_vm2 = vcmp.eq.f32.partialorder %v638_v57, %v640_v16  ;;  %v646_v37 = vcvt.f32.s32 %v640_v16 }
 0x5d0   : > { %v642_v20 = vsel %vm641_vm2, %v637_v18, inf }
 0x5d1   : > { %643 = vmin.xlane.f32.xlu2 %v642_v20  ;;  %v647_v39 = vshll.u32 %v646_v37, 16 }
 0x5d6   : > { %v655_v24 = vpop.xlane.xlu2 %654 }
 0x5d7   : > { %vm656_vm4 = vcmp.eq.f32.partialorder %v653_v27, %v655_v24  ;;  %v661_v42 = vcvt.f32.s32 %v655_v24 }
 0x5d8   : > { %v657_v26 = vsel %vm656_vm4, %v652_v25, inf }
 0x5d9   : > { %658 = vmin.xlane.f32.xlu0 %v657_v26  ;;  %v662_v49 = vshll.u32 %v661_v42, 16 }
 0x5de   : > { %v670_v28 = vpop.xlane.xlu0 %669 }
 0x5df   : > { %vm671_vm5 = vcmp.eq.f32.partialorder %v668_v3, %v670_v28  ;;  %v676_v52 = vcvt.f32.s32 %v670_v28 }
 0x5e0   : > { %v672_v31 = vsel %vm671_vm5, %v667_v29, inf }
 0x5e1   : > { %673 = vmin.xlane.f32.xlu1 %v672_v31  ;;  %v677_v59 = vshll.u32 %v676_v52, 16 }
 0x5e6   : > { %v685_v15 = vpop.xlane.xlu1 %684 }
 0x5e7   : > { %vm686_vm6 = vcmp.eq.f32.partialorder %v683_v9, %v685_v15  ;;  %v691_v27 = vcvt.f32.s32 %v685_v15 }
 0x5e8   : > { %v687_v36 = vsel %vm686_vm6, %v682_v34, inf }
 0x5e9   : > { %688 = vmin.xlane.f32.xlu2 %v687_v36  ;;  %v692_v3 = vshll.u32 %v691_v27, 16 }
 0x644   : > { %v644_v38 = vpop.xlane.xlu2 %643 }
 0x645   : > { %v645_v40 = vcvt.f32.s32 %v644_v38 }
 0x647   : > { %v648_v41 = vadd.s32 %v647_v39, %v645_v40 }
 0x649   : > { %vm694_vm7 = vcmp.eq.s32.totalorder %v2968_v30, %v648_v41 }
 0x64a   : > { %v3187_v43 = vsel %vm694_vm7, inf, %v3131_v13  ;;  %v2624_v44 = vsel %vm694_vm7, 1.0, %v2866_v10 }
 0x64b   : > { %v718_v45 = vsel %vm301_vm3, %v3187_v43, inf  ;;  %v706_v46 = vadd.f32 %v2624_v44, %v2996_v17 }
 0x64c   : > { %v659_v48 = vpop.xlane.xlu0 %658  ;;  %719 = vmin.xlane.f32.xlu0 %v718_v45 }
 0x64d   : > { %v660_v50 = vcvt.f32.s32 %v659_v48  ;;  %710 = vst.msk [vmem:[#allocation2 + $0x60] sm:$0xff] %vm301_vm3, %v706_v46 }
 0x64f   : > { %v663_v51 = vadd.s32 %v662_v49, %v660_v50 }
 0x651   : > { %vm695_vm8 = vcmp.eq.s32.totalorder %v2968_v30, %v663_v51 }
 0x652   : > { %v3196_v13 = vsel %vm695_vm8, inf, %v3140_v53  ;;  %v2625_v47 = vsel %vm695_vm8, 1.0, %v2866_v10 }
 0x653   : > { %v721_v54 = vsel %vm301_vm3, %v3196_v13, inf  ;;  %v707_v55 = vadd.f32 %v2625_v47, %v3009_v33 }
 0x654   : > { %v674_v57 = vpop.xlane.xlu1 %673  ;;  %722 = vmin.xlane.f32.xlu1 %v721_v54  ;;  %v1974_v58 = vld [vmem:[#allocation2 + $0x60] sm:$0xff] }
 0x655   : > { %v675_v60 = vcvt.f32.s32 %v674_v57  ;;  %711 = vst.msk [vmem:[#allocation2 + $0x68] sm:$0xff] %vm301_vm3, %v707_v55  ;;  %2688 = vmatmul.msk.f32.gmra.mxu0 %vm301_vm3, %v1974_v58 }
 0x657   : > { %v678_v61 = vadd.s32 %v677_v59, %v675_v60 }
 0x659   : > { %vm696_vm9 = vcmp.eq.s32.totalorder %v2968_v30, %v678_v61 }
 0x65a   : > { %v3206_v53 = vsel %vm696_vm9, inf, %v3150_v21  ;;  %v2626_v62 = vsel %vm696_vm9, 1.0, %v2866_v10 }
 0x65b   : > { %v724_v63 = vsel %vm301_vm3, %v3206_v53, inf  ;;  %v708_v0 = vadd.f32 %v2626_v62, %v3024_v19 }
 0x65c   : > { %725 = vmin.xlane.f32.xlu2 %v724_v63  ;;  %v689_v1 = vpop.xlane.xlu2 %688  ;;  %v1975_v2 = vld [vmem:[#allocation2 + $0x68] sm:$0xff] }
 0x65d   : > { %712 = vst.msk [vmem:[#allocation2 + $0x70] sm:$0xff] %vm301_vm3, %v708_v0  ;;  %v690_v4 = vcvt.f32.s32 %v689_v1  ;;  %2689 = vmatmul.msk.f32.vlgmr.msra.gmra.mxu1 %vm301_vm3, %v1975_v2 }
 0x65f   : > { %v693_v5 = vadd.s32 %v692_v3, %v690_v4 }
 0x661   : > { %vm697_vm10 = vcmp.eq.s32.totalorder %v2968_v30, %v693_v5 }
 0x662   : > { %v3216_v21 = vsel %vm697_vm10, inf, %v3160_v35  ;;  %v2627_v6 = vsel %vm697_vm10, 1.0, %v2866_v10 }
 0x663   : > { %v727_v7 = vsel %vm301_vm3, %v3216_v21, inf  ;;  %v709_v8 = vadd.f32 %v2627_v6, %v3039_v56 }
 0x664   : > { %728 = vmin.xlane.f32.xlu0 %v727_v7  ;;  %v1976_v9 = vld [vmem:[#allocation2 + $0x70] sm:$0xff] }
 0x665   : > { %713 = vst.msk [vmem:[#allocation2 + $0x78] sm:$0xff] %vm301_vm3, %v709_v8  ;;  %2690 = vmatmul.msk.f32.gmra.mxu1 %vm301_vm3, %v1976_v9 }
 0x66c   : > { %v1977_v11 = vld [vmem:[#allocation2 + $0x78] sm:$0xff] }
 0x66d   : > { %2691 = vmatmul.msk.f32.gmra.mxu1 %vm301_vm3, %v1977_v11 }
 0x6bf   : > { %v720_v12 = vpop.xlane.xlu0 %719 }
 0x6c0   : > { %vm730_vm11 = vcmp.le.f32.partialorder %v3187_v43, %v720_v12 }
 0x6c1   : > { %v734_v35 = vsel %vm730_vm11, %v2968_v30, 32 }
 0x6c2   : > { %v738_v14 = vsel %vm301_vm3, %v734_v35, 2147483647 }
 0x6c3   : > { %v740_v16 = vshra.s32 %v738_v14, 16  ;;  %v739_v44 = vand.u32 65535, %v738_v14 }
 0x6c5   : > { %v742_v18 = vcvt.s32.f32 %v740_v16  ;;  %v741_v46 = vcvt.s32.f32 %v739_v44 }
 0x6c7   : > { %v723_v20 = vpop.xlane.xlu1 %722  ;;  %743 = vmin.xlane.f32.xlu1 %v742_v18 }
 0x6c8   : > { %vm731_vm12 = vcmp.le.f32.partialorder %v3196_v13, %v723_v20 }
 0x6c9   : > { %v735_v22 = vsel %vm731_vm12, %v2968_v30, 32 }
 0x6ca   : > { %v753_v24 = vsel %vm301_vm3, %v735_v22, 2147483647 }
 0x6cb   : > { %v755_v25 = vshra.s32 %v753_v24, 16  ;;  %v754_v49 = vand.u32 65535, %v753_v24 }
 0x6cd   : > { %v757_v26 = vcvt.s32.f32 %v755_v25  ;;  %v756_v51 = vcvt.s32.f32 %v754_v49 }
 0x6cf   : > { %758 = vmin.xlane.f32.xlu2 %v757_v26  ;;  %v726_v23 = vpop.xlane.xlu2 %725 }
 0x6d0   : > { %vm732_vm13 = vcmp.le.f32.partialorder %v3206_v53, %v726_v23 }
 0x6d1   : > { %v736_v28 = vsel %vm732_vm13, %v2968_v30, 32 }
 0x6d2   : > { %v768_v29 = vsel %vm301_vm3, %v736_v28, 2147483647  ;;  %v2271_v31 = vpop.f32.mrf.mxu0 }
 0x6d3   : > { %2439 = vst [vmem:[%s3064_s11 + $0x60] sm:$0xff] %v2271_v31  ;;  %v770_v32 = vshra.s32 %v768_v29, 16  ;;  %v769_v47 = vand.u32 65535, %v768_v29 }
 0x6d5   : > { %v772_v15 = vcvt.s32.f32 %v770_v32  ;;  %v771_v55 = vcvt.s32.f32 %v769_v47 }
 0x6d7   : > { %v729_v34 = vpop.xlane.xlu0 %728  ;;  %773 = vmin.xlane.f32.xlu0 %v772_v15 }
 0x6d8   : > { %vm733_vm14 = vcmp.le.f32.partialorder %v3216_v21, %v729_v34 }
 0x6d9   : > { %v737_v36 = vsel %vm733_vm14, %v2968_v30, 32 }
 0x6da   : > { %v783_v37 = vsel %vm301_vm3, %v737_v36, 2147483647  ;;  %v2274_v38 = vpop.f32.mrf.mxu1 }
 0x6db   : > { %2440 = vst [vmem:[%s3064_s11 + $0x68] sm:$0xff] %v2274_v38  ;;  %v785_v39 = vshra.s32 %v783_v37, 16  ;;  %v784_v58 = vand.u32 65535, %v783_v37 }
 0x6dd   : > { %v787_v40 = vcvt.s32.f32 %v785_v39  ;;  %v786_v60 = vcvt.s32.f32 %v784_v58 }
 0x6df   : > { %788 = vmin.xlane.f32.xlu1 %v787_v40 }
 0x6e2   : > { %v2277_v41 = vpop.f32.mrf.mxu1 }
 0x6e3   : > { %2441 = vst [vmem:[%s3064_s11 + $0x70] sm:$0xff] %v2277_v41 }
 0x6ea   : > { %v2280_v42 = vpop.f32.mrf.mxu1 }
 0x6eb   : > { %2442 = vst [vmem:[%s3064_s11 + $0x78] sm:$0xff] %v2280_v42 }
 0x73a   : > { %v744_v45 = vpop.xlane.xlu1 %743 }
 0x73b   : > { %vm745_vm15 = vcmp.eq.f32.partialorder %v742_v18, %v744_v45  ;;  %v750_v27 = vcvt.f32.s32 %v744_v45 }
 0x73c   : > { %v746_v48 = vsel %vm745_vm15, %v741_v46, inf }
 0x73d   : > { %747 = vmin.xlane.f32.xlu2 %v746_v48  ;;  %v751_v63 = vshll.u32 %v750_v27, 16 }
 0x742   : > { %v759_v50 = vpop.xlane.xlu2 %758 }
 0x743   : > { %vm760_vm0 = vcmp.eq.f32.partialorder %v757_v26, %v759_v50  ;;  %v765_v2 = vcvt.f32.s32 %v759_v50 }
 0x744   : > { %v761_v52 = vsel %vm760_vm0, %v756_v51, inf }
 0x745   : > { %762 = vmin.xlane.f32.xlu0 %v761_v52  ;;  %v766_v8 = vshll.u32 %v765_v2, 16 }
 0x74a   : > { %v774_v54 = vpop.xlane.xlu0 %773 }
 0x74b   : > { %vm775_vm1 = vcmp.eq.f32.partialorder %v772_v15, %v774_v54  ;;  %v780_v12 = vcvt.f32.s32 %v774_v54 }
 0x74c   : > { %v776_v57 = vsel %vm775_vm1, %v771_v55, inf }
 0x74d   : > { %777 = vmin.xlane.f32.xlu1 %v776_v57  ;;  %v781_v22 = vshll.u32 %v780_v12, 16 }
 0x752   : > { %v789_v59 = vpop.xlane.xlu1 %788 }
 0x753   : > { %vm790_vm2 = vcmp.eq.f32.partialorder %v787_v40, %v789_v59  ;;  %v795_v26 = vcvt.f32.s32 %v789_v59 }
 0x754   : > { %v791_v61 = vsel %vm790_vm2, %v786_v60, inf }
 0x755   : > { %792 = vmin.xlane.f32.xlu2 %v791_v61  ;;  %v796_v15 = vshll.u32 %v795_v26, 16 }
 0x7b0   : > { %v748_v62 = vpop.xlane.xlu2 %747 }
 0x7b1   : > { %v749_v0 = vcvt.f32.s32 %v748_v62 }
 0x7b3   : > { %v752_v1 = vadd.s32 %v751_v63, %v749_v0 }
 0x7b5   : > { %vm798_vm4 = vcmp.eq.s32.totalorder %v2968_v30, %v752_v1 }
 0x7b6   : > { %v3243_v3 = vsel %vm798_vm4, inf, %v3187_v43  ;;  %v2628_v4 = vsel %vm798_vm4, 1.0, %v2866_v10 }
 0x7b7   : > { %v822_v5 = vsel %vm301_vm3, %v3243_v3, inf  ;;  %v810_v6 = vadd.f32 %v2628_v4, %v2996_v17 }
 0x7b8   : > { %v763_v7 = vpop.xlane.xlu0 %762  ;;  %823 = vmin.xlane.f32.xlu0 %v822_v5 }
 0x7b9   : > { %v764_v9 = vcvt.f32.s32 %v763_v7  ;;  %814 = vst.msk [vmem:[#allocation2 + $0x80] sm:$0xff] %vm301_vm3, %v810_v6 }
 0x7bb   : > { %v767_v11 = vadd.s32 %v766_v8, %v764_v9 }
 0x7bd   : > { %vm799_vm5 = vcmp.eq.s32.totalorder %v2968_v30, %v767_v11 }
 0x7be   : > { %v3252_v43 = vsel %vm799_vm5, inf, %v3196_v13  ;;  %v2629_v35 = vsel %vm799_vm5, 1.0, %v2866_v10 }
 0x7bf   : > { %v825_v14 = vsel %vm301_vm3, %v3252_v43, inf  ;;  %v811_v16 = vadd.f32 %v2629_v35, %v3009_v33 }
 0x7c0   : > { %v778_v18 = vpop.xlane.xlu1 %777  ;;  %826 = vmin.xlane.f32.xlu1 %v825_v14  ;;  %v1978_v20 = vld [vmem:[#allocation2 + $0x80] sm:$0xff] }
 0x7c1   : > { %v779_v24 = vcvt.f32.s32 %v778_v18  ;;  %815 = vst.msk [vmem:[#allocation2 + $0x88] sm:$0xff] %vm301_vm3, %v811_v16  ;;  %2692 = vmatmul.msk.f32.gmra.mxu1 %vm301_vm3, %v1978_v20 }
 0x7c3   : > { %v782_v25 = vadd.s32 %v781_v22, %v779_v24 }
 0x7c5   : > { %vm800_vm6 = vcmp.eq.s32.totalorder %v2968_v30, %v782_v25 }
 0x7c6   : > { %v3262_v13 = vsel %vm800_vm6, inf, %v3206_v53  ;;  %v2630_v23 = vsel %vm800_vm6, 1.0, %v2866_v10 }
 0x7c7   : > { %v828_v28 = vsel %vm301_vm3, %v3262_v13, inf  ;;  %v812_v29 = vadd.f32 %v2630_v23, %v3024_v19 }
 0x7c8   : > { %829 = vmin.xlane.f32.xlu2 %v828_v28  ;;  %v793_v31 = vpop.xlane.xlu2 %792  ;;  %v1979_v32 = vld [vmem:[#allocation2 + $0x88] sm:$0xff] }
 0x7c9   : > { %816 = vst.msk [vmem:[#allocation2 + $0x90] sm:$0xff] %vm301_vm3, %v812_v29  ;;  %v794_v34 = vcvt.f32.s32 %v793_v31  ;;  %2693 = vmatmul.msk.f32.gmra.mxu1 %vm301_vm3, %v1979_v32 }
 0x7cb   : > { %v797_v36 = vadd.s32 %v796_v15, %v794_v34 }
 0x7cd   : > { %vm801_vm7 = vcmp.eq.s32.totalorder %v2968_v30, %v797_v36 }
 0x7ce   : > { %v3272_v53 = vsel %vm801_vm7, inf, %v3216_v21  ;;  %v2631_v37 = vsel %vm801_vm7, 1.0, %v2866_v10 }
 0x7cf   : > { %v831_v38 = vsel %vm301_vm3, %v3272_v53, inf  ;;  %v813_v39 = vadd.f32 %v2631_v37, %v3039_v56 }
 0x7d0   : > { %832 = vmin.xlane.f32.xlu0 %v831_v38  ;;  %v1980_v40 = vld [vmem:[#allocation2 + $0x90] sm:$0xff] }
 0x7d1   : > { %817 = vst.msk [vmem:[#allocation2 + $0x98] sm:$0xff] %vm301_vm3, %v813_v39  ;;  %2694 = vmatmul.msk.f32.gmra.mxu1 %vm301_vm3, %v1980_v40 }
 0x7d8   : > { %v1981_v41 = vld [vmem:[#allocation2 + $0x98] sm:$0xff] }
 0x7d9   : > { %2695 = vmatmul.msk.f32.gmra.mxu1 %vm301_vm3, %v1981_v41 }
 0x82b   : > { %v824_v42 = vpop.xlane.xlu0 %823 }
 0x82c   : > { %vm834_vm8 = vcmp.le.f32.partialorder %v3243_v3, %v824_v42 }
 0x82d   : > { %v838_v21 = vsel %vm834_vm8, %v2968_v30, 32 }
 0x82e   : > { %v842_v44 = vsel %vm301_vm3, %v838_v21, 2147483647 }
 0x82f   : > { %v844_v45 = vshra.s32 %v842_v44, 16  ;;  %v843_v4 = vand.u32 65535, %v842_v44 }
 0x831   : > { %v846_v46 = vcvt.s32.f32 %v844_v45  ;;  %v845_v6 = vcvt.s32.f32 %v843_v4 }
 0x833   : > { %v827_v48 = vpop.xlane.xlu1 %826  ;;  %847 = vmin.xlane.f32.xlu1 %v846_v46 }
 0x834   : > { %vm835_vm9 = vcmp.le.f32.partialorder %v3252_v43, %v827_v48 }
 0x835   : > { %v839_v49 = vsel %vm835_vm9, %v2968_v30, 32 }
 0x836   : > { %v857_v50 = vsel %vm301_vm3, %v839_v49, 2147483647 }
 0x837   : > { %v859_v51 = vshra.s32 %v857_v50, 16  ;;  %v858_v8 = vand.u32 65535, %v857_v50 }
 0x839   : > { %v861_v52 = vcvt.s32.f32 %v859_v51  ;;  %v860_v11 = vcvt.s32.f32 %v858_v8 }
 0x83b   : > { %862 = vmin.xlane.f32.xlu2 %v861_v52  ;;  %v830_v47 = vpop.xlane.xlu2 %829 }
 0x83c   : > { %vm836_vm10 = vcmp.le.f32.partialorder %v3262_v13, %v830_v47 }
 0x83d   : > { %v840_v54 = vsel %vm836_vm10, %v2968_v30, 32 }
 0x83e   : > { %v872_v55 = vsel %vm301_vm3, %v840_v54, 2147483647  ;;  %v2283_v57 = vpop.f32.mrf.mxu1 }
 0x83f   : > { %2443 = vst [vmem:[%s3064_s11 + $0x80] sm:$0xff] %v2283_v57  ;;  %v874_v58 = vshra.s32 %v872_v55, 16  ;;  %v873_v35 = vand.u32 65535, %v872_v55 }
 0x841   : > { %v876_v59 = vcvt.s32.f32 %v874_v58  ;;  %v875_v16 = vcvt.s32.f32 %v873_v35 }
 0x843   : > { %v833_v60 = vpop.xlane.xlu0 %832  ;;  %877 = vmin.xlane.f32.xlu0 %v876_v59 }
 0x844   : > { %vm837_vm11 = vcmp.le.f32.partialorder %v3272_v53, %v833_v60 }
 0x845   : > { %v841_v61 = vsel %vm837_vm11, %v2968_v30, 32 }
 0x846   : > { %v887_v27 = vsel %vm301_vm3, %v841_v61, 2147483647  ;;  %v2286_v62 = vpop.f32.mrf.mxu1 }
 0x847   : > { %2444 = vst [vmem:[%s3064_s11 + $0x88] sm:$0xff] %v2286_v62  ;;  %v889_v63 = vshra.s32 %v887_v27, 16  ;;  %v888_v20 = vand.u32 65535, %v887_v27 }
 0x849   : > { %v891_v0 = vcvt.s32.f32 %v889_v63  ;;  %v890_v24 = vcvt.s32.f32 %v888_v20 }
 0x84b   : > { %892 = vmin.xlane.f32.xlu1 %v891_v0 }
 0x84e   : > { %v2289_v1 = vpop.f32.mrf.mxu1 }
 0x84f   : > { %2445 = vst [vmem:[%s3064_s11 + $0x90] sm:$0xff] %v2289_v1 }
 0x856   : > { %v2292_v2 = vpop.f32.mrf.mxu1 }
 0x857   : > { %2446 = vst [vmem:[%s3064_s11 + $0x98] sm:$0xff] %v2292_v2 }
 0x8a6   : > { %v848_v5 = vpop.xlane.xlu1 %847 }
 0x8a7   : > { %vm849_vm12 = vcmp.eq.f32.partialorder %v846_v46, %v848_v5  ;;  %v854_v26 = vcvt.f32.s32 %v848_v5 }
 0x8a8   : > { %v850_v7 = vsel %vm849_vm12, %v845_v6, inf }
 0x8a9   : > { %851 = vmin.xlane.f32.xlu2 %v850_v7  ;;  %v855_v28 = vshll.u32 %v854_v26, 16 }
 0x8ae   : > { %v863_v9 = vpop.xlane.xlu2 %862 }
 0x8af   : > { %vm864_vm13 = vcmp.eq.f32.partialorder %v861_v52, %v863_v9  ;;  %v869_v32 = vcvt.f32.s32 %v863_v9 }
 0x8b0   : > { %v865_v12 = vsel %vm864_vm13, %v860_v11, inf }
 0x8b1   : > { %866 = vmin.xlane.f32.xlu0 %v865_v12  ;;  %v870_v39 = vshll.u32 %v869_v32, 16 }
 0x8b6   : > { %v878_v14 = vpop.xlane.xlu0 %877 }
 0x8b7   : > { %vm879_vm14 = vcmp.eq.f32.partialorder %v876_v59, %v878_v14  ;;  %v884_v42 = vcvt.f32.s32 %v878_v14 }
 0x8b8   : > { %v880_v18 = vsel %vm879_vm14, %v875_v16, inf }
 0x8b9   : > { %881 = vmin.xlane.f32.xlu1 %v880_v18  ;;  %v885_v49 = vshll.u32 %v884_v42, 16 }
 0x8be   : > { %v893_v22 = vpop.xlane.xlu1 %892 }
 0x8bf   : > { %vm894_vm15 = vcmp.eq.f32.partialorder %v891_v0, %v893_v22  ;;  %v899_v52 = vcvt.f32.s32 %v893_v22 }
 0x8c0   : > { %v895_v25 = vsel %vm894_vm15, %v890_v24, inf }
 0x8c1   : > { %896 = vmin.xlane.f32.xlu2 %v895_v25  ;;  %v900_v59 = vshll.u32 %v899_v52, 16 }
 0x91c   : > { %v852_v23 = vpop.xlane.xlu2 %851 }
 0x91d   : > { %v853_v29 = vcvt.f32.s32 %v852_v23 }
 0x91f   : > { %v856_v31 = vadd.s32 %v855_v28, %v853_v29 }
 0x921   : > { %vm902_vm0 = vcmp.eq.s32.totalorder %v2968_v30, %v856_v31 }
 0x922   : > { %v3299_v15 = vsel %vm902_vm0, inf, %v3243_v3  ;;  %v2632_v34 = vsel %vm902_vm0, 1.0, %v2866_v10 }
 0x923   : > { %v926_v36 = vsel %vm301_vm3, %v3299_v15, inf  ;;  %v914_v37 = vadd.f32 %v2632_v34, %v2996_v17 }
 0x924   : > { %v867_v38 = vpop.xlane.xlu0 %866  ;;  %927 = vmin.xlane.f32.xlu0 %v926_v36 }
 0x925   : > { %v868_v40 = vcvt.f32.s32 %v867_v38  ;;  %918 = vst.msk [vmem:[#allocation2 + $0xa0] sm:$0xff] %vm301_vm3, %v914_v37 }
 0x927   : > { %v871_v41 = vadd.s32 %v870_v39, %v868_v40 }
 0x929   : > { %vm903_vm1 = vcmp.eq.s32.totalorder %v2968_v30, %v871_v41 }
 0x92a   : > { %v3308_v3 = vsel %vm903_vm1, inf, %v3252_v43  ;;  %v2633_v21 = vsel %vm903_vm1, 1.0, %v2866_v10 }
 0x92b   : > { %v929_v44 = vsel %vm301_vm3, %v3308_v3, inf  ;;  %v915_v45 = vadd.f32 %v2633_v21, %v3009_v33 }
 0x92c   : > { %v882_v46 = vpop.xlane.xlu1 %881  ;;  %930 = vmin.xlane.f32.xlu1 %v929_v44  ;;  %v1982_v48 = vld [vmem:[#allocation2 + $0xa0] sm:$0xff] }
 0x92d   : > { %v883_v50 = vcvt.f32.s32 %v882_v46  ;;  %919 = vst.msk [vmem:[#allocation2 + $0xa8] sm:$0xff] %vm301_vm3, %v915_v45  ;;  %2696 = vmatmul.msk.f32.gmra.mxu1 %vm301_vm3, %v1982_v48 }
 0x92f   : > { %v886_v51 = vadd.s32 %v885_v49, %v883_v50 }
 0x931   : > { %vm904_vm2 = vcmp.eq.s32.totalorder %v2968_v30, %v886_v51 }
 0x932   : > { %v3318_v43 = vsel %vm904_vm2, inf, %v3262_v13  ;;  %v2634_v47 = vsel %vm904_vm2, 1.0, %v2866_v10 }
 0x933   : > { %v932_v54 = vsel %vm301_vm3, %v3318_v43, inf  ;;  %v916_v55 = vadd.f32 %v2634_v47, %v3024_v19 }
 0x934   : > { %933 = vmin.xlane.f32.xlu2 %v932_v54  ;;  %v897_v57 = vpop.xlane.xlu2 %896  ;;  %v1983_v58 = vld [vmem:[#allocation2 + $0xa8] sm:$0xff] }
 0x935   : > { %920 = vst.msk [vmem:[#allocation2 + $0xb0] sm:$0xff] %vm301_vm3, %v916_v55  ;;  %v898_v60 = vcvt.f32.s32 %v897_v57  ;;  %2697 = vmatmul.msk.f32.gmra.mxu1 %vm301_vm3, %v1983_v58 }
 0x937   : > { %v901_v61 = vadd.s32 %v900_v59, %v898_v60 }
 0x939   : > { %vm905_vm4 = vcmp.eq.s32.totalorder %v2968_v30, %v901_v61 }
 0x93a   : > { %v3328_v13 = vsel %vm905_vm4, inf, %v3272_v53  ;;  %v2635_v27 = vsel %vm905_vm4, 1.0, %v2866_v10 }
 0x93b   : > { %v935_v62 = vsel %vm301_vm3, %v3328_v13, inf  ;;  %v917_v63 = vadd.f32 %v2635_v27, %v3039_v56 }
 0x93c   : > { %936 = vmin.xlane.f32.xlu0 %v935_v62  ;;  %v1984_v0 = vld [vmem:[#allocation2 + $0xb0] sm:$0xff] }
 0x93d   : > { %921 = vst.msk [vmem:[#allocation2 + $0xb8] sm:$0xff] %vm301_vm3, %v917_v63  ;;  %2698 = vmatmul.msk.f32.gmra.mxu1 %vm301_vm3, %v1984_v0 }
 0x944   : > { %v1985_v1 = vld [vmem:[#allocation2 + $0xb8] sm:$0xff] }
 0x945   : > { %2699 = vmatmul.msk.f32.gmra.mxu1 %vm301_vm3, %v1985_v1 }
 0x997   : > { %v928_v2 = vpop.xlane.xlu0 %927 }
 0x998   : > { %vm938_vm5 = vcmp.le.f32.partialorder %v3299_v15, %v928_v2 }
 0x999   : > { %v942_v53 = vsel %vm938_vm5, %v2968_v30, 32 }
 0x99a   : > { %v946_v4 = vsel %vm301_vm3, %v942_v53, 2147483647 }
 0x99b   : > { %v948_v5 = vshra.s32 %v946_v4, 16  ;;  %v947_v34 = vand.u32 65535, %v946_v4 }
 0x99d   : > { %v950_v6 = vcvt.s32.f32 %v948_v5  ;;  %v949_v37 = vcvt.s32.f32 %v947_v34 }
 0x99f   : > { %v931_v7 = vpop.xlane.xlu1 %930  ;;  %951 = vmin.xlane.f32.xlu1 %v950_v6 }
 0x9a0   : > { %vm939_vm6 = vcmp.le.f32.partialorder %v3308_v3, %v931_v7 }
 0x9a1   : > { %v943_v8 = vsel %vm939_vm6, %v2968_v30, 32 }
 0x9a2   : > { %v961_v9 = vsel %vm301_vm3, %v943_v8, 2147483647 }
 0x9a3   : > { %v963_v11 = vshra.s32 %v961_v9, 16  ;;  %v962_v39 = vand.u32 65535, %v961_v9 }
 0x9a5   : > { %v965_v12 = vcvt.s32.f32 %v963_v11  ;;  %v964_v41 = vcvt.s32.f32 %v962_v39 }
 0x9a7   : > { %966 = vmin.xlane.f32.xlu2 %v965_v12  ;;  %v934_v35 = vpop.xlane.xlu2 %933 }
 0x9a8   : > { %vm940_vm7 = vcmp.le.f32.partialorder %v3318_v43, %v934_v35 }
 0x9a9   : > { %v944_v14 = vsel %vm940_vm7, %v2968_v30, 32 }
 0x9aa   : > { %v976_v16 = vsel %vm301_vm3, %v944_v14, 2147483647  ;;  %v2295_v18 = vpop.f32.mrf.mxu1 }
 0x9ab   : > { %2447 = vst [vmem:[%s3064_s11 + $0xa0] sm:$0xff] %v2295_v18  ;;  %v978_v20 = vshra.s32 %v976_v16, 16  ;;  %v977_v21 = vand.u32 65535, %v976_v16 }
 0x9ad   : > { %v980_v22 = vcvt.s32.f32 %v978_v20  ;;  %v979_v45 = vcvt.s32.f32 %v977_v21 }
 0x9af   : > { %v937_v24 = vpop.xlane.xlu0 %936  ;;  %981 = vmin.xlane.f32.xlu0 %v980_v22 }
 0x9b0   : > { %vm941_vm8 = vcmp.le.f32.partialorder %v3328_v13, %v937_v24 }
 0x9b1   : > { %v945_v25 = vsel %vm941_vm8, %v2968_v30, 32 }
 0x9b2   : > { %v991_v26 = vsel %vm301_vm3, %v945_v25, 2147483647  ;;  %v2298_v23 = vpop.f32.mrf.mxu1 }
 0x9b3   : > { %2448 = vst [vmem:[%s3064_s11 + $0xa8] sm:$0xff] %v2298_v23  ;;  %v993_v28 = vshra.s32 %v991_v26, 16  ;;  %v992_v48 = vand.u32 65535, %v991_v26 }
 0x9b5   : > { %v995_v29 = vcvt.s32.f32 %v993_v28  ;;  %v994_v50 = vcvt.s32.f32 %v992_v48 }
 0x9b7   : > { %996 = vmin.xlane.f32.xlu1 %v995_v29 }
 0x9ba   : > { %v2301_v31 = vpop.f32.mrf.mxu1 }
 0x9bb   : > { %2449 = vst [vmem:[%s3064_s11 + $0xb0] sm:$0xff] %v2301_v31 }
 0x9c2   : > { %v2304_v32 = vpop.f32.mrf.mxu1 }
 0x9c3   : > { %2450 = vst [vmem:[%s3064_s11 + $0xb8] sm:$0xff] %v2304_v32 }
 0xa12   : > { %v952_v36 = vpop.xlane.xlu1 %951 }
 0xa13   : > { %vm953_vm9 = vcmp.eq.f32.partialorder %v950_v6, %v952_v36  ;;  %v958_v52 = vcvt.f32.s32 %v952_v36 }
 0xa14   : > { %v954_v38 = vsel %vm953_vm9, %v949_v37, inf }
 0xa15   : > { %955 = vmin.xlane.f32.xlu2 %v954_v38  ;;  %v959_v54 = vshll.u32 %v958_v52, 16 }
 0xa1a   : > { %v967_v40 = vpop.xlane.xlu2 %966 }
 0xa1b   : > { %vm968_vm10 = vcmp.eq.f32.partialorder %v965_v12, %v967_v40  ;;  %v973_v58 = vcvt.f32.s32 %v967_v40 }
 0xa1c   : > { %v969_v42 = vsel %vm968_vm10, %v964_v41, inf }
 0xa1d   : > { %970 = vmin.xlane.f32.xlu0 %v969_v42  ;;  %v974_v63 = vshll.u32 %v973_v58, 16 }
 0xa22   : > { %v982_v44 = vpop.xlane.xlu0 %981 }
 0xa23   : > { %vm983_vm11 = vcmp.eq.f32.partialorder %v980_v22, %v982_v44  ;;  %v988_v2 = vcvt.f32.s32 %v982_v44 }
 0xa24   : > { %v984_v46 = vsel %vm983_vm11, %v979_v45, inf }
 0xa25   : > { %985 = vmin.xlane.f32.xlu1 %v984_v46  ;;  %v989_v8 = vshll.u32 %v988_v2, 16 }
 0xa2a   : > { %v997_v49 = vpop.xlane.xlu1 %996 }
 0xa2b   : > { %vm998_vm12 = vcmp.eq.f32.partialorder %v995_v29, %v997_v49  ;;  %v1003_v12 = vcvt.f32.s32 %v997_v49 }
 0xa2c   : > { %v999_v51 = vsel %vm998_vm12, %v994_v50, inf }
 0xa2d   : > { %1000 = vmin.xlane.f32.xlu2 %v999_v51  ;;  %v1004_v22 = vshll.u32 %v1003_v12, 16 }
 0xa88   : > { %v956_v47 = vpop.xlane.xlu2 %955 }
 0xa89   : > { %v957_v55 = vcvt.f32.s32 %v956_v47 }
 0xa8b   : > { %v960_v57 = vadd.s32 %v959_v54, %v957_v55 }
 0xa8d   : > { %vm1006_vm13 = vcmp.eq.s32.totalorder %v2968_v30, %v960_v57 }
 0xa8e   : > { %v3355_v59 = vsel %vm1006_vm13, inf, %v3299_v15  ;;  %v2636_v60 = vsel %vm1006_vm13, 1.0, %v2866_v10 }
 0xa8f   : > { %v1030_v61 = vsel %vm301_vm3, %v3355_v59, inf  ;;  %v1018_v27 = vadd.f32 %v2636_v60, %v2996_v17 }
 0xa90   : > { %v971_v62 = vpop.xlane.xlu0 %970  ;;  %1031 = vmin.xlane.f32.xlu0 %v1030_v61 }
 0xa91   : > { %v972_v0 = vcvt.f32.s32 %v971_v62  ;;  %1022 = vst.msk [vmem:[#allocation2 + $0xc0] sm:$0xff] %vm301_vm3, %v1018_v27 }
 0xa93   : > { %v975_v1 = vadd.s32 %v974_v63, %v972_v0 }
 0xa95   : > { %vm1007_vm14 = vcmp.eq.s32.totalorder %v2968_v30, %v975_v1 }
 0xa96   : > { %v3364_v15 = vsel %vm1007_vm14, inf, %v3308_v3  ;;  %v2637_v53 = vsel %vm1007_vm14, 1.0, %v2866_v10 }
 0xa97   : > { %v1033_v4 = vsel %vm301_vm3, %v3364_v15, inf  ;;  %v1019_v5 = vadd.f32 %v2637_v53, %v3009_v33 }
 0xa98   : > { %v986_v6 = vpop.xlane.xlu1 %985  ;;  %1034 = vmin.xlane.f32.xlu1 %v1033_v4  ;;  %v1986_v7 = vld [vmem:[#allocation2 + $0xc0] sm:$0xff] }
 0xa99   : > { %v987_v9 = vcvt.f32.s32 %v986_v6  ;;  %1023 = vst.msk [vmem:[#allocation2 + $0xc8] sm:$0xff] %vm301_vm3, %v1019_v5  ;;  %2700 = vmatmul.msk.f32.gmra.mxu1 %vm301_vm3, %v1986_v7 }
 0xa9b   : > { %v990_v11 = vadd.s32 %v989_v8, %v987_v9 }
 0xa9d   : > { %vm1008_vm15 = vcmp.eq.s32.totalorder %v2968_v30, %v990_v11 }
 0xa9e   : > { %v3374_v3 = vsel %vm1008_vm15, inf, %v3318_v43  ;;  %v2638_v35 = vsel %vm1008_vm15, 1.0, %v2866_v10 }
 0xa9f   : > { %v1036_v14 = vsel %vm301_vm3, %v3374_v3, inf  ;;  %v1020_v16 = vadd.f32 %v2638_v35, %v3024_v19 }
 0xaa0   : > { %1037 = vmin.xlane.f32.xlu2 %v1036_v14  ;;  %v1001_v18 = vpop.xlane.xlu2 %1000  ;;  %v1987_v20 = vld [vmem:[#allocation2 + $0xc8] sm:$0xff] }
 0xaa1   : > { %1024 = vst.msk [vmem:[#allocation2 + $0xd0] sm:$0xff] %vm301_vm3, %v1020_v16  ;;  %v1002_v24 = vcvt.f32.s32 %v1001_v18  ;;  %2701 = vmatmul.msk.f32.gmra.mxu1 %vm301_vm3, %v1987_v20 }
 0xaa3   : > { %v1005_v25 = vadd.s32 %v1004_v22, %v1002_v24 }
 0xaa5   : > { %vm1009_vm0 = vcmp.eq.s32.totalorder %v2968_v30, %v1005_v25 }
 0xaa6   : > { %v3384_v43 = vsel %vm1009_vm0, inf, %v3328_v13  ;;  %v2639_v26 = vsel %vm1009_vm0, 1.0, %v2866_v10 }
 0xaa7   : > { %v1039_v23 = vsel %vm301_vm3, %v3384_v43, inf  ;;  %v1021_v28 = vadd.f32 %v2639_v26, %v3039_v56 }
 0xaa8   : > { %1040 = vmin.xlane.f32.xlu0 %v1039_v23  ;;  %v1988_v29 = vld [vmem:[#allocation2 + $0xd0] sm:$0xff] }
 0xaa9   : > { %1025 = vst.msk [vmem:[#allocation2 + $0xd8] sm:$0xff] %vm301_vm3, %v1021_v28  ;;  %2702 = vmatmul.msk.f32.gmra.mxu1 %vm301_vm3, %v1988_v29 }
 0xab0   : > { %v1989_v31 = vld [vmem:[#allocation2 + $0xd8] sm:$0xff] }
 0xab1   : > { %2703 = vmatmul.msk.f32.gmra.mxu1 %vm301_vm3, %v1989_v31 }
 0xb03   : > { %v1032_v32 = vpop.xlane.xlu0 %1031 }
 0xb04   : > { %vm1042_vm1 = vcmp.le.f32.partialorder %v3355_v59, %v1032_v32 }
 0xb05   : > { %v1046_v13 = vsel %vm1042_vm1, %v2968_v30, 32 }
 0xb06   : > { %v1050_v34 = vsel %vm301_vm3, %v1046_v13, 2147483647 }
 0xb07   : > { %v1052_v36 = vshra.s32 %v1050_v34, 16  ;;  %v1051_v60 = vand.u32 65535, %v1050_v34 }
 0xb09   : > { %v1054_v37 = vcvt.s32.f32 %v1052_v36  ;;  %v1053_v27 = vcvt.s32.f32 %v1051_v60 }
 0xb0b   : > { %v1035_v38 = vpop.xlane.xlu1 %1034  ;;  %1055 = vmin.xlane.f32.xlu1 %v1054_v37 }
 0xb0c   : > { %vm1043_vm2 = vcmp.le.f32.partialorder %v3364_v15, %v1035_v38 }
 0xb0d   : > { %v1047_v39 = vsel %vm1043_vm2, %v2968_v30, 32 }
 0xb0e   : > { %v1065_v40 = vsel %vm301_vm3, %v1047_v39, 2147483647 }
 0xb0f   : > { %v1067_v41 = vshra.s32 %v1065_v40, 16  ;;  %v1066_v63 = vand.u32 65535, %v1065_v40 }
 0xb11   : > { %v1069_v42 = vcvt.s32.f32 %v1067_v41  ;;  %v1068_v1 = vcvt.s32.f32 %v1066_v63 }
 0xb13   : > { %1070 = vmin.xlane.f32.xlu2 %v1069_v42  ;;  %v1038_v21 = vpop.xlane.xlu2 %1037 }
 0xb14   : > { %vm1044_vm4 = vcmp.le.f32.partialorder %v3374_v3, %v1038_v21 }
 0xb15   : > { %v1048_v44 = vsel %vm1044_vm4, %v2968_v30, 32 }
 0xb16   : > { %v1080_v45 = vsel %vm301_vm3, %v1048_v44, 2147483647  ;;  %v2307_v46 = vpop.f32.mrf.mxu1 }
 0xb17   : > { %2451 = vst [vmem:[%s3064_s11 + $0xc0] sm:$0xff] %v2307_v46  ;;  %v1082_v48 = vshra.s32 %v1080_v45, 16  ;;  %v1081_v53 = vand.u32 65535, %v1080_v45 }
 0xb19   : > { %v1084_v49 = vcvt.s32.f32 %v1082_v48  ;;  %v1083_v5 = vcvt.s32.f32 %v1081_v53 }
 0xb1b   : > { %v1041_v50 = vpop.xlane.xlu0 %1040  ;;  %1085 = vmin.xlane.f32.xlu0 %v1084_v49 }
 0xb1c   : > { %vm1045_vm5 = vcmp.le.f32.partialorder %v3384_v43, %v1041_v50 }
 0xb1d   : > { %v1049_v51 = vsel %vm1045_vm5, %v2968_v30, 32 }
 0xb1e   : > { %v1095_v52 = vsel %vm301_vm3, %v1049_v51, 2147483647  ;;  %v2310_v47 = vpop.f32.mrf.mxu1 }
 0xb1f   : > { %2452 = vst [vmem:[%s3064_s11 + $0xc8] sm:$0xff] %v2310_v47  ;;  %v1097_v54 = vshra.s32 %v1095_v52, 16  ;;  %v1096_v7 = vand.u32 65535, %v1095_v52 }
 0xb21   : > { %v1099_v55 = vcvt.s32.f32 %v1097_v54  ;;  %v1098_v9 = vcvt.s32.f32 %v1096_v7 }
 0xb23   : > { %1100 = vmin.xlane.f32.xlu1 %v1099_v55 }
 0xb26   : > { %v2313_v57 = vpop.f32.mrf.mxu1 }
 0xb27   : > { %2453 = vst [vmem:[%s3064_s11 + $0xd0] sm:$0xff] %v2313_v57 }
 0xb2e   : > { %v2316_v58 = vpop.f32.mrf.mxu1 }
 0xb2f   : > { %2454 = vst [vmem:[%s3064_s11 + $0xd8] sm:$0xff] %v2316_v58 }
 0xb7e   : > { %v1056_v61 = vpop.xlane.xlu1 %1055 }
 0xb7f   : > { %vm1057_vm6 = vcmp.eq.f32.partialorder %v1054_v37, %v1056_v61  ;;  %v1062_v12 = vcvt.f32.s32 %v1056_v61 }
 0xb80   : > { %v1058_v62 = vsel %vm1057_vm6, %v1053_v27, inf }
 0xb81   : > { %1059 = vmin.xlane.f32.xlu2 %v1058_v62  ;;  %v1063_v14 = vshll.u32 %v1062_v12, 16 }
 0xb86   : > { %v1071_v0 = vpop.xlane.xlu2 %1070 }
 0xb87   : > { %vm1072_vm7 = vcmp.eq.f32.partialorder %v1069_v42, %v1071_v0  ;;  %v1077_v20 = vcvt.f32.s32 %v1071_v0 }
 0xb88   : > { %v1073_v2 = vsel %vm1072_vm7, %v1068_v1, inf }
 0xb89   : > { %1074 = vmin.xlane.f32.xlu0 %v1073_v2  ;;  %v1078_v28 = vshll.u32 %v1077_v20, 16 }
 0xb8e   : > { %v1086_v4 = vpop.xlane.xlu0 %1085 }
 0xb8f   : > { %vm1087_vm8 = vcmp.eq.f32.partialorder %v1084_v49, %v1086_v4  ;;  %v1092_v32 = vcvt.f32.s32 %v1086_v4 }
 0xb90   : > { %v1088_v6 = vsel %vm1087_vm8, %v1083_v5, inf }
 0xb91   : > { %1089 = vmin.xlane.f32.xlu1 %v1088_v6  ;;  %v1093_v39 = vshll.u32 %v1092_v32, 16 }
 0xb96   : > { %v1101_v8 = vpop.xlane.xlu1 %1100 }
 0xb97   : > { %vm1102_vm9 = vcmp.eq.f32.partialorder %v1099_v55, %v1101_v8  ;;  %v1107_v42 = vcvt.f32.s32 %v1101_v8 }
 0xb98   : > { %v1103_v11 = vsel %vm1102_vm9, %v1098_v9, inf }
 0xb99   : > { %1104 = vmin.xlane.f32.xlu2 %v1103_v11  ;;  %v1108_v49 = vshll.u32 %v1107_v42, 16 }
 0xbf4   : > { %v1060_v35 = vpop.xlane.xlu2 %1059 }
 0xbf5   : > { %v1061_v16 = vcvt.f32.s32 %v1060_v35 }
 0xbf7   : > { %v1064_v18 = vadd.s32 %v1063_v14, %v1061_v16 }
 0xbf9   : > { %vm1110_vm10 = vcmp.eq.s32.totalorder %v2968_v30, %v1064_v18 }
 0xbfa   : > { %v3411_v22 = vsel %vm1110_vm10, inf, %v3355_v59  ;;  %v2640_v24 = vsel %vm1110_vm10, 1.0, %v2866_v10 }
 0xbfb   : > { %v1134_v25 = vsel %vm301_vm3, %v3411_v22, inf  ;;  %v1122_v26 = vadd.f32 %v2640_v24, %v2996_v17 }
 0xbfc   : > { %v1075_v23 = vpop.xlane.xlu0 %1074  ;;  %1135 = vmin.xlane.f32.xlu0 %v1134_v25 }
 0xbfd   : > { %v1076_v29 = vcvt.f32.s32 %v1075_v23  ;;  %1126 = vst.msk [vmem:[#allocation2 + $0xe0] sm:$0xff] %vm301_vm3, %v1122_v26 }
 0xbff   : > { %v1079_v31 = vadd.s32 %v1078_v28, %v1076_v29 }
 0xc01   : > { %vm1111_vm11 = vcmp.eq.s32.totalorder %v2968_v30, %v1079_v31 }
 0xc02   : > { %v3420_v59 = vsel %vm1111_vm11, inf, %v3364_v15  ;;  %v2641_v13 = vsel %vm1111_vm11, 1.0, %v2866_v10 }
 0xc03   : > { %v1137_v34 = vsel %vm301_vm3, %v3420_v59, inf  ;;  %v1123_v36 = vadd.f32 %v2641_v13, %v3009_v33 }
 0xc04   : > { %v1090_v37 = vpop.xlane.xlu1 %1089  ;;  %1138 = vmin.xlane.f32.xlu1 %v1137_v34  ;;  %v1990_v38 = vld [vmem:[#allocation2 + $0xe0] sm:$0xff] }
 0xc05   : > { %v1091_v40 = vcvt.f32.s32 %v1090_v37  ;;  %1127 = vst.msk [vmem:[#allocation2 + $0xe8] sm:$0xff] %vm301_vm3, %v1123_v36  ;;  %2704 = vmatmul.msk.f32.gmra.mxu1 %vm301_vm3, %v1990_v38 }
 0xc07   : > { %v1094_v41 = vadd.s32 %v1093_v39, %v1091_v40 }
 0xc09   : > { %vm1112_vm12 = vcmp.eq.s32.totalorder %v2968_v30, %v1094_v41 }
 0xc0a   : > { %v3430_v15 = vsel %vm1112_vm12, inf, %v3374_v3  ;;  %v2642_v21 = vsel %vm1112_vm12, 1.0, %v2866_v10 }
 0xc0b   : > { %v1140_v44 = vsel %vm301_vm3, %v3430_v15, inf  ;;  %v1124_v45 = vadd.f32 %v2642_v21, %v3024_v19 }
 0xc0c   : > { %1141 = vmin.xlane.f32.xlu2 %v1140_v44  ;;  %v1105_v46 = vpop.xlane.xlu2 %1104  ;;  %v1991_v48 = vld [vmem:[#allocation2 + $0xe8] sm:$0xff] }
 0xc0d   : > { %1128 = vst.msk [vmem:[#allocation2 + $0xf0] sm:$0xff] %vm301_vm3, %v1124_v45  ;;  %v1106_v50 = vcvt.f32.s32 %v1105_v46  ;;  %2705 = vmatmul.msk.f32.gmra.mxu1 %vm301_vm3, %v1991_v48 }
 0xc0f   : > { %v1109_v51 = vadd.s32 %v1108_v49, %v1106_v50 }
 0xc11   : > { %vm1113_vm13 = vcmp.eq.s32.totalorder %v2968_v30, %v1109_v51 }
 0xc12   : > { %v3440_v3 = vsel %vm1113_vm13, inf, %v3384_v43  ;;  %v2643_v52 = vsel %vm1113_vm13, 1.0, %v2866_v10 }
 0xc13   : > { %v1143_v47 = vsel %vm301_vm3, %v3440_v3, inf  ;;  %v1125_v54 = vadd.f32 %v2643_v52, %v3039_v56 }
 0xc14   : > { %1144 = vmin.xlane.f32.xlu0 %v1143_v47  ;;  %v1992_v55 = vld [vmem:[#allocation2 + $0xf0] sm:$0xff] }
 0xc15   : > { %1129 = vst.msk [vmem:[#allocation2 + $0xf8] sm:$0xff] %vm301_vm3, %v1125_v54  ;;  %2706 = vmatmul.msk.f32.vlgmr.msra.gmra.mxu2 %vm301_vm3, %v1992_v55 }
 0xc1c   : > { %v1993_v57 = vld [vmem:[#allocation2 + $0xf8] sm:$0xff] }
 0xc1d   : > { %2707 = vmatmul.msk.f32.gmra.mxu2 %vm301_vm3, %v1993_v57 }
 0xc6f   : > { %v1136_v58 = vpop.xlane.xlu0 %1135 }
 0xc70   : > { %vm1146_vm14 = vcmp.le.f32.partialorder %v3411_v22, %v1136_v58 }
 0xc71   : > { %v1150_v43 = vsel %vm1146_vm14, %v2968_v30, 32 }
 0xc72   : > { %v1154_v60 = vsel %vm301_vm3, %v1150_v43, 2147483647 }
 0xc73   : > { %v1156_v61 = vshra.s32 %v1154_v60, 16  ;;  %v1155_v24 = vand.u32 65535, %v1154_v60 }
 0xc75   : > { %v1158_v27 = vcvt.s32.f32 %v1156_v61  ;;  %v1157_v26 = vcvt.s32.f32 %v1155_v24 }
 0xc77   : > { %v1139_v62 = vpop.xlane.xlu1 %1138  ;;  %1159 = vmin.xlane.f32.xlu1 %v1158_v27 }
 0xc78   : > { %vm1147_vm15 = vcmp.le.f32.partialorder %v3420_v59, %v1139_v62 }
 0xc79   : > { %v1151_v63 = vsel %vm1147_vm15, %v2968_v30, 32 }
 0xc7a   : > { %v1169_v0 = vsel %vm301_vm3, %v1151_v63, 2147483647 }
 0xc7b   : > { %v1171_v1 = vshra.s32 %v1169_v0, 16  ;;  %v1170_v28 = vand.u32 65535, %v1169_v0 }
 0xc7d   : > { %v1173_v2 = vcvt.s32.f32 %v1171_v1  ;;  %v1172_v31 = vcvt.s32.f32 %v1170_v28 }
 0xc7f   : > { %1174 = vmin.xlane.f32.xlu2 %v1173_v2  ;;  %v1142_v53 = vpop.xlane.xlu2 %1141 }
 0xc80   : > { %vm1148_vm0 = vcmp.le.f32.partialorder %v3430_v15, %v1142_v53 }
 0xc81   : > { %v1152_v4 = vsel %vm1148_vm0, %v2968_v30, 32 }
 0xc82   : > { %v1184_v5 = vsel %vm301_vm3, %v1152_v4, 2147483647  ;;  %v2319_v6 = vpop.f32.mrf.mxu1 }
 0xc83   : > { %2455 = vst [vmem:[%s3064_s11 + $0xe0] sm:$0xff] %v2319_v6  ;;  %v1186_v7 = vshra.s32 %v1184_v5, 16  ;;  %v1185_v13 = vand.u32 65535, %v1184_v5 }
 0xc85   : > { %v1188_v8 = vcvt.s32.f32 %v1186_v7  ;;  %v1187_v36 = vcvt.s32.f32 %v1185_v13 }
 0xc87   : > { %v1145_v9 = vpop.xlane.xlu0 %1144  ;;  %1189 = vmin.xlane.f32.xlu0 %v1188_v8 }
 0xc88   : > { %vm1149_vm1 = vcmp.le.f32.partialorder %v3440_v3, %v1145_v9 }
 0xc89   : > { %v1153_v11 = vsel %vm1149_vm1, %v2968_v30, 32 }
 0xc8a   : > { %v1199_v12 = vsel %vm301_vm3, %v1153_v11, 2147483647  ;;  %v2322_v35 = vpop.f32.mrf.mxu1 }
 0xc8b   : > { %2456 = vst [vmem:[%s3064_s11 + $0xe8] sm:$0xff] %v2322_v35  ;;  %v1201_v14 = vshra.s32 %v1199_v12, 16  ;;  %v1200_v38 = vand.u32 65535, %v1199_v12 }
 0xc8d   : > { %v1203_v16 = vcvt.s32.f32 %v1201_v14  ;;  %v1202_v40 = vcvt.s32.f32 %v1200_v38 }
 0xc8f   : > { %1204 = vmin.xlane.f32.xlu1 %v1203_v16 }
 0xc98   : > { %v2325_v18 = vpop.f32.mrf.mxu2 }
 0xc99   : > { %2457 = vst [vmem:[%s3064_s11 + $0xf0] sm:$0xff] %v2325_v18 }
 0xca0   : > { %v2328_v20 = vpop.f32.mrf.mxu2 }
 0xca1   : > { %2458 = vst [vmem:[%s3064_s11 + $0xf8] sm:$0xff] %v2328_v20 }
 0xcea   : > { %v1160_v25 = vpop.xlane.xlu1 %1159 }
 0xceb   : > { %vm1161_vm2 = vcmp.eq.f32.partialorder %v1158_v27, %v1160_v25  ;;  %v1166_v42 = vcvt.f32.s32 %v1160_v25 }
 0xcec   : > { %v1162_v23 = vsel %vm1161_vm2, %v1157_v26, inf }
 0xced   : > { %1163 = vmin.xlane.f32.xlu2 %v1162_v23  ;;  %v1167_v44 = vshll.u32 %v1166_v42, 16 }
 0xcf2   : > { %v1175_v29 = vpop.xlane.xlu2 %1174 }
 0xcf3   : > { %vm1176_vm4 = vcmp.eq.f32.partialorder %v1173_v2, %v1175_v29  ;;  %v1181_v48 = vcvt.f32.s32 %v1175_v29 }
 0xcf4   : > { %v1177_v32 = vsel %vm1176_vm4, %v1172_v31, inf }
 0xcf5   : > { %1178 = vmin.xlane.f32.xlu0 %v1177_v32  ;;  %v1182_v54 = vshll.u32 %v1181_v48, 16 }
 0xcfa   : > { %v1190_v34 = vpop.xlane.xlu0 %1189 }
 0xcfb   : > { %vm1191_vm5 = vcmp.eq.f32.partialorder %v1188_v8, %v1190_v34  ;;  %v1196_v58 = vcvt.f32.s32 %v1190_v34 }
 0xcfc   : > { %v1192_v37 = vsel %vm1191_vm5, %v1187_v36, inf }
 0xcfd   : > { %1193 = vmin.xlane.f32.xlu1 %v1192_v37  ;;  %v1197_v63 = vshll.u32 %v1196_v58, 16 }
 0xd02   : > { %v1205_v39 = vpop.xlane.xlu1 %1204 }
 0xd03   : > { %vm1206_vm6 = vcmp.eq.f32.partialorder %v1203_v16, %v1205_v39  ;;  %v1211_v2 = vcvt.f32.s32 %v1205_v39 }
 0xd04   : > { %v1207_v41 = vsel %vm1206_vm6, %v1202_v40, inf }
 0xd05   : > { %1208 = vmin.xlane.f32.xlu2 %v1207_v41  ;;  %v1212_v8 = vshll.u32 %v1211_v2, 16 }
 0xd60   : > { %v1164_v21 = vpop.xlane.xlu2 %1163 }
 0xd61   : > { %v1165_v45 = vcvt.f32.s32 %v1164_v21 }
 0xd63   : > { %v1168_v46 = vadd.s32 %v1167_v44, %v1165_v45 }
 0xd65   : > { %vm1214_vm7 = vcmp.eq.s32.totalorder %v2968_v30, %v1168_v46 }
 0xd66   : > { %v3467_v49 = vsel %vm1214_vm7, inf, %v3411_v22  ;;  %v2644_v50 = vsel %vm1214_vm7, 1.0, %v2866_v10 }
 0xd67   : > { %v1238_v51 = vsel %vm301_vm3, %v3467_v49, inf  ;;  %v1226_v52 = vadd.f32 %v2644_v50, %v2996_v17 }
 0xd68   : > { %v1179_v47 = vpop.xlane.xlu0 %1178  ;;  %1239 = vmin.xlane.f32.xlu0 %v1238_v51 }
 0xd69   : > { %v1180_v55 = vcvt.f32.s32 %v1179_v47  ;;  %1230 = vst.msk [vmem:[#allocation2 + $0x100] sm:$0xff] %vm301_vm3, %v1226_v52 }
 0xd6b   : > { %v1183_v57 = vadd.s32 %v1182_v54, %v1180_v55 }
 0xd6d   : > { %vm1215_vm8 = vcmp.eq.s32.totalorder %v2968_v30, %v1183_v57 }
 0xd6e   : > { %v3476_v22 = vsel %vm1215_vm8, inf, %v3420_v59  ;;  %v2645_v43 = vsel %vm1215_vm8, 1.0, %v2866_v10 }
 0xd6f   : > { %v1241_v60 = vsel %vm301_vm3, %v3476_v22, inf  ;;  %v1227_v61 = vadd.f32 %v2645_v43, %v3009_v33 }
 0xd70   : > { %v1194_v27 = vpop.xlane.xlu1 %1193  ;;  %1242 = vmin.xlane.f32.xlu1 %v1241_v60  ;;  %v1994_v62 = vld [vmem:[#allocation2 + $0x100] sm:$0xff] }
 0xd71   : > { %v1195_v0 = vcvt.f32.s32 %v1194_v27  ;;  %1231 = vst.msk [vmem:[#allocation2 + $0x108] sm:$0xff] %vm301_vm3, %v1227_v61  ;;  %2708 = vmatmul.msk.f32.gmra.mxu2 %vm301_vm3, %v1994_v62 }
 0xd73   : > { %v1198_v1 = vadd.s32 %v1197_v63, %v1195_v0 }
 0xd75   : > { %vm1216_vm9 = vcmp.eq.s32.totalorder %v2968_v30, %v1198_v1 }
 0xd76   : > { %v3486_v59 = vsel %vm1216_vm9, inf, %v3430_v15  ;;  %v2646_v53 = vsel %vm1216_vm9, 1.0, %v2866_v10 }
 0xd77   : > { %v1244_v4 = vsel %vm301_vm3, %v3486_v59, inf  ;;  %v1228_v5 = vadd.f32 %v2646_v53, %v3024_v19 }
 0xd78   : > { %1245 = vmin.xlane.f32.xlu2 %v1244_v4  ;;  %v1209_v6 = vpop.xlane.xlu2 %1208  ;;  %v1995_v7 = vld [vmem:[#allocation2 + $0x108] sm:$0xff] }
 0xd79   : > { %1232 = vst.msk [vmem:[#allocation2 + $0x110] sm:$0xff] %vm301_vm3, %v1228_v5  ;;  %v1210_v9 = vcvt.f32.s32 %v1209_v6  ;;  %2709 = vmatmul.msk.f32.gmra.mxu2 %vm301_vm3, %v1995_v7 }
 0xd7b   : > { %v1213_v11 = vadd.s32 %v1212_v8, %v1210_v9 }
 0xd7d   : > { %vm1217_vm10 = vcmp.eq.s32.totalorder %v2968_v30, %v1213_v11 }
 0xd7e   : > { %v3496_v15 = vsel %vm1217_vm10, inf, %v3440_v3  ;;  %v2647_v12 = vsel %vm1217_vm10, 1.0, %v2866_v10 }
 0xd7f   : > { %v1247_v35 = vsel %vm301_vm3, %v3496_v15, inf  ;;  %v1229_v14 = vadd.f32 %v2647_v12, %v3039_v56 }
 0xd80   : > { %1248 = vmin.xlane.f32.xlu0 %v1247_v35  ;;  %v1996_v16 = vld [vmem:[#allocation2 + $0x110] sm:$0xff] }
 0xd81   : > { %1233 = vst.msk [vmem:[#allocation2 + $0x118] sm:$0xff] %vm301_vm3, %v1229_v14  ;;  %2710 = vmatmul.msk.f32.gmra.mxu2 %vm301_vm3, %v1996_v16 }
 0xd88   : > { %v1997_v18 = vld [vmem:[#allocation2 + $0x118] sm:$0xff] }
 0xd89   : > { %2711 = vmatmul.msk.f32.gmra.mxu2 %vm301_vm3, %v1997_v18 }
 0xddb   : > { %v1240_v20 = vpop.xlane.xlu0 %1239 }
 0xddc   : > { %vm1250_vm11 = vcmp.le.f32.partialorder %v3467_v49, %v1240_v20 }
 0xddd   : > { %v1254_v3 = vsel %vm1250_vm11, %v2968_v30, 32 }
 0xdde   : > { %v1258_v24 = vsel %vm301_vm3, %v1254_v3, 2147483647 }
 0xddf   : > { %v1260_v25 = vshra.s32 %v1258_v24, 16  ;;  %v1259_v50 = vand.u32 65535, %v1258_v24 }
 0xde1   : > { %v1262_v26 = vcvt.s32.f32 %v1260_v25  ;;  %v1261_v52 = vcvt.s32.f32 %v1259_v50 }
 0xde3   : > { %v1243_v23 = vpop.xlane.xlu1 %1242  ;;  %1263 = vmin.xlane.f32.xlu1 %v1262_v26 }
 0xde4   : > { %vm1251_vm12 = vcmp.le.f32.partialorder %v3476_v22, %v1243_v23 }
 0xde5   : > { %v1255_v28 = vsel %vm1251_vm12, %v2968_v30, 32 }
 0xde6   : > { %v1273_v29 = vsel %vm301_vm3, %v1255_v28, 2147483647 }
 0xde7   : > { %v1275_v31 = vshra.s32 %v1273_v29, 16  ;;  %v1274_v54 = vand.u32 65535, %v1273_v29 }
 0xde9   : > { %v1277_v32 = vcvt.s32.f32 %v1275_v31  ;;  %v1276_v57 = vcvt.s32.f32 %v1274_v54 }
 0xdeb   : > { %1278 = vmin.xlane.f32.xlu2 %v1277_v32  ;;  %v1246_v13 = vpop.xlane.xlu2 %1245 }
 0xdec   : > { %vm1252_vm13 = vcmp.le.f32.partialorder %v3486_v59, %v1246_v13 }
 0xded   : > { %v1256_v34 = vsel %vm1252_vm13, %v2968_v30, 32 }
 0xdee   : > { %v1288_v36 = vsel %vm301_vm3, %v1256_v34, 2147483647 }
 0xdef   : > { %v1290_v37 = vshra.s32 %v1288_v36, 16  ;;  %v1289_v43 = vand.u32 65535, %v1288_v36 }
 0xdf1   : > { %v1292_v38 = vcvt.s32.f32 %v1290_v37  ;;  %v1291_v61 = vcvt.s32.f32 %v1289_v43 }
 0xdf3   : > { %v1249_v39 = vpop.xlane.xlu0 %1248  ;;  %1293 = vmin.xlane.f32.xlu0 %v1292_v38 }
 0xdf4   : > { %vm1253_vm14 = vcmp.le.f32.partialorder %v3496_v15, %v1249_v39  ;;  %v2331_v40 = vpop.f32.mrf.mxu2 }
 0xdf5   : > { %v1257_v41 = vsel %vm1253_vm14, %v2968_v30, 32  ;;  %2459 = vst [vmem:[%s3064_s11 + $0x100] sm:$0xff] %v2331_v40 }
 0xdf6   : > { %v1303_v42 = vsel %vm301_vm3, %v1257_v41, 2147483647 }
 0xdf7   : > { %v1305_v21 = vshra.s32 %v1303_v42, 16  ;;  %v1304_v62 = vand.u32 65535, %v1303_v42 }
 0xdf9   : > { %v1307_v44 = vcvt.s32.f32 %v1305_v21  ;;  %v1306_v0 = vcvt.s32.f32 %v1304_v62 }
 0xdfb   : > { %1308 = vmin.xlane.f32.xlu1 %v1307_v44 }
 0xdfc   : > { %v2334_v45 = vpop.f32.mrf.mxu2 }
 0xdfd   : > { %2460 = vst [vmem:[%s3064_s11 + $0x108] sm:$0xff] %v2334_v45 }
 0xe04   : > { %v2337_v46 = vpop.f32.mrf.mxu2 }
 0xe05   : > { %2461 = vst [vmem:[%s3064_s11 + $0x110] sm:$0xff] %v2337_v46 }
 0xe0c   : > { %v2340_v48 = vpop.f32.mrf.mxu2 }
 0xe0d   : > { %2462 = vst [vmem:[%s3064_s11 + $0x118] sm:$0xff] %v2340_v48 }
 0xe56   : > { %v1264_v51 = vpop.xlane.xlu1 %1263 }
 0xe57   : > { %vm1265_vm15 = vcmp.eq.f32.partialorder %v1262_v26, %v1264_v51  ;;  %v1270_v2 = vcvt.f32.s32 %v1264_v51 }
 0xe58   : > { %v1266_v47 = vsel %vm1265_vm15, %v1261_v52, inf }
 0xe59   : > { %1267 = vmin.xlane.f32.xlu2 %v1266_v47  ;;  %v1271_v4 = vshll.u32 %v1270_v2, 16 }
 0xe5e   : > { %v1279_v55 = vpop.xlane.xlu2 %1278 }
 0xe5f   : > { %vm1280_vm0 = vcmp.eq.f32.partialorder %v1277_v32, %v1279_v55  ;;  %v1285_v7 = vcvt.f32.s32 %v1279_v55 }
 0xe60   : > { %v1281_v58 = vsel %vm1280_vm0, %v1276_v57, inf }
 0xe61   : > { %1282 = vmin.xlane.f32.xlu0 %v1281_v58  ;;  %v1286_v14 = vshll.u32 %v1285_v7, 16 }
 0xe66   : > { %v1294_v60 = vpop.xlane.xlu0 %1293 }
 0xe67   : > { %vm1295_vm1 = vcmp.eq.f32.partialorder %v1292_v38, %v1294_v60  ;;  %v1300_v20 = vcvt.f32.s32 %v1294_v60 }
 0xe68   : > { %v1296_v27 = vsel %vm1295_vm1, %v1291_v61, inf }
 0xe69   : > { %1297 = vmin.xlane.f32.xlu1 %v1296_v27  ;;  %v1301_v28 = vshll.u32 %v1300_v20, 16 }
 0xe6e   : > { %v1309_v63 = vpop.xlane.xlu1 %1308 }
 0xe6f   : > { %vm1310_vm2 = vcmp.eq.f32.partialorder %v1307_v44, %v1309_v63  ;;  %v1315_v32 = vcvt.f32.s32 %v1309_v63 }
 0xe70   : > { %v1311_v1 = vsel %vm1310_vm2, %v1306_v0, inf }
 0xe71   : > { %1312 = vmin.xlane.f32.xlu2 %v1311_v1  ;;  %v1316_v39 = vshll.u32 %v1315_v32, 16 }
 0xecc   : > { %v1268_v53 = vpop.xlane.xlu2 %1267 }
 0xecd   : > { %v1269_v5 = vcvt.f32.s32 %v1268_v53 }
 0xecf   : > { %v1272_v6 = vadd.s32 %v1271_v4, %v1269_v5 }
 0xed1   : > { %vm1318_vm4 = vcmp.eq.s32.totalorder %v2968_v30, %v1272_v6 }
 0xed2   : > { %v3523_v8 = vsel %vm1318_vm4, inf, %v3467_v49  ;;  %v2648_v9 = vsel %vm1318_vm4, 1.0, %v2866_v10 }
 0xed3   : > { %v1342_v11 = vsel %vm301_vm3, %v3523_v8, inf  ;;  %v1330_v12 = vadd.f32 %v2648_v9, %v2996_v17 }
 0xed4   : > { %v1283_v35 = vpop.xlane.xlu0 %1282  ;;  %1343 = vmin.xlane.f32.xlu0 %v1342_v11 }
 0xed5   : > { %v1284_v16 = vcvt.f32.s32 %v1283_v35  ;;  %1334 = vst.msk [vmem:[#allocation2 + $0x120] sm:$0xff] %vm301_vm3, %v1330_v12 }
 0xed7   : > { %v1287_v18 = vadd.s32 %v1286_v14, %v1284_v16 }
 0xed9   : > { %vm1319_vm5 = vcmp.eq.s32.totalorder %v2968_v30, %v1287_v18 }
 0xeda   : > { %v3532_v49 = vsel %vm1319_vm5, inf, %v3476_v22  ;;  %v2649_v3 = vsel %vm1319_vm5, 1.0, %v2866_v10 }
 0xedb   : > { %v1345_v24 = vsel %vm301_vm3, %v3532_v49, inf  ;;  %v1331_v25 = vadd.f32 %v2649_v3, %v3009_v33 }
 0xedc   : > { %v1298_v26 = vpop.xlane.xlu1 %1297  ;;  %1346 = vmin.xlane.f32.xlu1 %v1345_v24  ;;  %v1998_v23 = vld [vmem:[#allocation2 + $0x120] sm:$0xff] }
 0xedd   : > { %v1299_v29 = vcvt.f32.s32 %v1298_v26  ;;  %1335 = vst.msk [vmem:[#allocation2 + $0x128] sm:$0xff] %vm301_vm3, %v1331_v25  ;;  %2712 = vmatmul.msk.f32.gmra.mxu2 %vm301_vm3, %v1998_v23 }
 0xedf   : > { %v1302_v31 = vadd.s32 %v1301_v28, %v1299_v29 }
 0xee1   : > { %vm1320_vm6 = vcmp.eq.s32.totalorder %v2968_v30, %v1302_v31 }
 0xee2   : > { %v3542_v22 = vsel %vm1320_vm6, inf, %v3486_v59  ;;  %v2650_v13 = vsel %vm1320_vm6, 1.0, %v2866_v10 }
 0xee3   : > { %v1348_v34 = vsel %vm301_vm3, %v3542_v22, inf  ;;  %v1332_v36 = vadd.f32 %v2650_v13, %v3024_v19 }
 0xee4   : > { %1349 = vmin.xlane.f32.xlu2 %v1348_v34  ;;  %v1313_v37 = vpop.xlane.xlu2 %1312  ;;  %v1999_v38 = vld [vmem:[#allocation2 + $0x128] sm:$0xff] }
 0xee5   : > { %1336 = vst.msk [vmem:[#allocation2 + $0x130] sm:$0xff] %vm301_vm3, %v1332_v36  ;;  %v1314_v40 = vcvt.f32.s32 %v1313_v37  ;;  %2713 = vmatmul.msk.f32.gmra.mxu2 %vm301_vm3, %v1999_v38 }
 0xee7   : > { %v1317_v41 = vadd.s32 %v1316_v39, %v1314_v40 }
 0xee9   : > { %vm1321_vm7 = vcmp.eq.s32.totalorder %v2968_v30, %v1317_v41 }
 0xeea   : > { %v3552_v59 = vsel %vm1321_vm7, inf, %v3496_v15  ;;  %v2651_v42 = vsel %vm1321_vm7, 1.0, %v2866_v10 }
 0xeeb   : > { %v1351_v21 = vsel %vm301_vm3, %v3552_v59, inf  ;;  %v1333_v44 = vadd.f32 %v2651_v42, %v3039_v56 }
 0xeec   : > { %1352 = vmin.xlane.f32.xlu0 %v1351_v21  ;;  %v2000_v45 = vld [vmem:[#allocation2 + $0x130] sm:$0xff] }
 0xeed   : > { %1337 = vst.msk [vmem:[#allocation2 + $0x138] sm:$0xff] %vm301_vm3, %v1333_v44  ;;  %2714 = vmatmul.msk.f32.gmra.mxu2 %vm301_vm3, %v2000_v45 }
 0xef4   : > { %v2001_v46 = vld [vmem:[#allocation2 + $0x138] sm:$0xff] }
 0xef5   : > { %2715 = vmatmul.msk.f32.gmra.mxu2 %vm301_vm3, %v2001_v46 }
 0xf47   : > { %v1344_v48 = vpop.xlane.xlu0 %1343 }
 0xf48   : > { %vm1354_vm8 = vcmp.le.f32.partialorder %v3523_v8, %v1344_v48 }
 0xf49   : > { %v1358_v15 = vsel %vm1354_vm8, %v2968_v30, 32 }
 0xf4a   : > { %v1362_v50 = vsel %vm301_vm3, %v1358_v15, 2147483647 }
 0xf4b   : > { %v1364_v51 = vshra.s32 %v1362_v50, 16  ;;  %v1363_v9 = vand.u32 65535, %v1362_v50 }
 0xf4d   : > { %v1366_v52 = vcvt.s32.f32 %v1364_v51  ;;  %v1365_v12 = vcvt.s32.f32 %v1363_v9 }
 0xf4f   : > { %v1347_v47 = vpop.xlane.xlu1 %1346  ;;  %1367 = vmin.xlane.f32.xlu1 %v1366_v52 }
 0xf50   : > { %vm1355_vm9 = vcmp.le.f32.partialorder %v3532_v49, %v1347_v47 }
 0xf51   : > { %v1359_v54 = vsel %vm1355_vm9, %v2968_v30, 32 }
 0xf52   : > { %v1377_v55 = vsel %vm301_vm3, %v1359_v54, 2147483647 }
 0xf53   : > { %v1379_v57 = vshra.s32 %v1377_v55, 16  ;;  %v1378_v14 = vand.u32 65535, %v1377_v55 }
 0xf55   : > { %v1381_v58 = vcvt.s32.f32 %v1379_v57  ;;  %v1380_v18 = vcvt.s32.f32 %v1378_v14 }
 0xf57   : > { %1382 = vmin.xlane.f32.xlu2 %v1381_v58  ;;  %v1350_v43 = vpop.xlane.xlu2 %1349 }
 0xf58   : > { %vm1356_vm10 = vcmp.le.f32.partialorder %v3542_v22, %v1350_v43 }
 0xf59   : > { %v1360_v60 = vsel %vm1356_vm10, %v2968_v30, 32 }
 0xf5a   : > { %v1392_v61 = vsel %vm301_vm3, %v1360_v60, 2147483647 }
 0xf5b   : > { %v1394_v27 = vshra.s32 %v1392_v61, 16  ;;  %v1393_v3 = vand.u32 65535, %v1392_v61 }
 0xf5d   : > { %v1396_v62 = vcvt.s32.f32 %v1394_v27  ;;  %v1395_v25 = vcvt.s32.f32 %v1393_v3 }
 0xf5f   : > { %v1353_v63 = vpop.xlane.xlu0 %1352  ;;  %1397 = vmin.xlane.f32.xlu0 %v1396_v62 }
 0xf60   : > { %vm1357_vm11 = vcmp.le.f32.partialorder %v3552_v59, %v1353_v63  ;;  %v2343_v0 = vpop.f32.mrf.mxu2 }
 0xf61   : > { %v1361_v1 = vsel %vm1357_vm11, %v2968_v30, 32  ;;  %2463 = vst [vmem:[%s3064_s11 + $0x120] sm:$0xff] %v2343_v0 }
 0xf62   : > { %v1407_v2 = vsel %vm301_vm3, %v1361_v1, 2147483647 }
 0xf63   : > { %v1409_v53 = vshra.s32 %v1407_v2, 16  ;;  %v1408_v23 = vand.u32 65535, %v1407_v2 }
 0xf65   : > { %v1411_v4 = vcvt.s32.f32 %v1409_v53  ;;  %v1410_v29 = vcvt.s32.f32 %v1408_v23 }
 0xf67   : > { %1412 = vmin.xlane.f32.xlu1 %v1411_v4 }
 0xf68   : > { %v2346_v5 = vpop.f32.mrf.mxu2 }
 0xf69   : > { %2464 = vst [vmem:[%s3064_s11 + $0x128] sm:$0xff] %v2346_v5 }
 0xf70   : > { %v2349_v6 = vpop.f32.mrf.mxu2 }
 0xf71   : > { %2465 = vst [vmem:[%s3064_s11 + $0x130] sm:$0xff] %v2349_v6 }
 0xf78   : > { %v2352_v7 = vpop.f32.mrf.mxu2 }
 0xf79   : > { %2466 = vst [vmem:[%s3064_s11 + $0x138] sm:$0xff] %v2352_v7 }
 0xfc2   : > { %v1368_v11 = vpop.xlane.xlu1 %1367 }
 0xfc3   : > { %vm1369_vm12 = vcmp.eq.f32.partialorder %v1366_v52, %v1368_v11  ;;  %v1374_v32 = vcvt.f32.s32 %v1368_v11 }
 0xfc4   : > { %v1370_v35 = vsel %vm1369_vm12, %v1365_v12, inf }
 0xfc5   : > { %1371 = vmin.xlane.f32.xlu2 %v1370_v35  ;;  %v1375_v34 = vshll.u32 %v1374_v32, 16 }
 0xfca   : > { %v1383_v16 = vpop.xlane.xlu2 %1382 }
 0xfcb   : > { %vm1384_vm13 = vcmp.eq.f32.partialorder %v1381_v58, %v1383_v16  ;;  %v1389_v38 = vcvt.f32.s32 %v1383_v16 }
 0xfcc   : > { %v1385_v20 = vsel %vm1384_vm13, %v1380_v18, inf }
 0xfcd   : > { %1386 = vmin.xlane.f32.xlu0 %v1385_v20  ;;  %v1390_v44 = vshll.u32 %v1389_v38, 16 }
 0xfd2   : > { %v1398_v24 = vpop.xlane.xlu0 %1397 }
 0xfd3   : > { %vm1399_vm14 = vcmp.eq.f32.partialorder %v1396_v62, %v1398_v24  ;;  %v1404_v48 = vcvt.f32.s32 %v1398_v24 }
 0xfd4   : > { %v1400_v26 = vsel %vm1399_vm14, %v1395_v25, inf }
 0xfd5   : > { %1401 = vmin.xlane.f32.xlu1 %v1400_v26  ;;  %v1405_v54 = vshll.u32 %v1404_v48, 16 }
 0xfda   : > { %v1413_v28 = vpop.xlane.xlu1 %1412 }
 0xfdb   : > { %vm1414_vm15 = vcmp.eq.f32.partialorder %v1411_v4, %v1413_v28  ;;  %v1419_v58 = vcvt.f32.s32 %v1413_v28 }
 0xfdc   : > { %v1415_v31 = vsel %vm1414_vm15, %v1410_v29, inf }
 0xfdd   : > { %1416 = vmin.xlane.f32.xlu2 %v1415_v31  ;;  %v1420_v63 = vshll.u32 %v1419_v58, 16 }
0x1038   : > { %v1372_v13 = vpop.xlane.xlu2 %1371 }
0x1039   : > { %v1373_v36 = vcvt.f32.s32 %v1372_v13 }
0x103b   : > { %v1376_v37 = vadd.s32 %v1375_v34, %v1373_v36 }
0x103d   : > { %vm1422_vm0 = vcmp.eq.s32.totalorder %v2968_v30, %v1376_v37 }
0x103e   : > { %v3579_v39 = vsel %vm1422_vm0, inf, %v3523_v8  ;;  %v2652_v40 = vsel %vm1422_vm0, 1.0, %v2866_v10 }
0x103f   : > { %v1446_v41 = vsel %vm301_vm3, %v3579_v39, inf  ;;  %v1434_v42 = vadd.f32 %v2652_v40, %v2996_v17 }
0x1040   : > { %v1387_v21 = vpop.xlane.xlu0 %1386  ;;  %1447 = vmin.xlane.f32.xlu0 %v1446_v41 }
0x1041   : > { %v1388_v45 = vcvt.f32.s32 %v1387_v21  ;;  %1438 = vst.msk [vmem:[#allocation2 + $0x140] sm:$0xff] %vm301_vm3, %v1434_v42 }
0x1043   : > { %v1391_v46 = vadd.s32 %v1390_v44, %v1388_v45 }
0x1045   : > { %vm1423_vm1 = vcmp.eq.s32.totalorder %v2968_v30, %v1391_v46 }
0x1046   : > { %v3588_v8 = vsel %vm1423_vm1, inf, %v3532_v49  ;;  %v2653_v15 = vsel %vm1423_vm1, 1.0, %v2866_v10 }
0x1047   : > { %v1449_v50 = vsel %vm301_vm3, %v3588_v8, inf  ;;  %v1435_v51 = vadd.f32 %v2653_v15, %v3009_v33 }
0x1048   : > { %v1402_v52 = vpop.xlane.xlu1 %1401  ;;  %1450 = vmin.xlane.f32.xlu1 %v1449_v50  ;;  %v2002_v47 = vld [vmem:[#allocation2 + $0x140] sm:$0xff] }
0x1049   : > { %v1403_v55 = vcvt.f32.s32 %v1402_v52  ;;  %1439 = vst.msk [vmem:[#allocation2 + $0x148] sm:$0xff] %vm301_vm3, %v1435_v51  ;;  %2716 = vmatmul.msk.f32.gmra.mxu2 %vm301_vm3, %v2002_v47 }
0x104b   : > { %v1406_v57 = vadd.s32 %v1405_v54, %v1403_v55 }
0x104d   : > { %vm1424_vm2 = vcmp.eq.s32.totalorder %v2968_v30, %v1406_v57 }
0x104e   : > { %v3598_v49 = vsel %vm1424_vm2, inf, %v3542_v22  ;;  %v2654_v43 = vsel %vm1424_vm2, 1.0, %v2866_v10 }
0x104f   : > { %v1452_v60 = vsel %vm301_vm3, %v3598_v49, inf  ;;  %v1436_v61 = vadd.f32 %v2654_v43, %v3024_v19 }
0x1050   : > { %1453 = vmin.xlane.f32.xlu2 %v1452_v60  ;;  %v1417_v27 = vpop.xlane.xlu2 %1416  ;;  %v2003_v62 = vld [vmem:[#allocation2 + $0x148] sm:$0xff] }
0x1051   : > { %1440 = vst.msk [vmem:[#allocation2 + $0x150] sm:$0xff] %vm301_vm3, %v1436_v61  ;;  %v1418_v0 = vcvt.f32.s32 %v1417_v27  ;;  %2717 = vmatmul.msk.f32.gmra.mxu2 %vm301_vm3, %v2003_v62 }
0x1053   : > { %v1421_v1 = vadd.s32 %v1420_v63, %v1418_v0 }
0x1055   : > { %vm1425_vm4 = vcmp.eq.s32.totalorder %v2968_v30, %v1421_v1 }
0x1056   : > { %v3608_v22 = vsel %vm1425_vm4, inf, %v3552_v59  ;;  %v2655_v2 = vsel %vm1425_vm4, 1.0, %v2866_v10 }
0x1057   : > { %v1455_v53 = vsel %vm301_vm3, %v3608_v22, inf  ;;  %v1437_v4 = vadd.f32 %v2655_v2, %v3039_v56 }
0x1058   : > { %1456 = vmin.xlane.f32.xlu0 %v1455_v53  ;;  %v2004_v5 = vld [vmem:[#allocation2 + $0x150] sm:$0xff] }
0x1059   : > { %1441 = vst.msk [vmem:[#allocation2 + $0x158] sm:$0xff] %vm301_vm3, %v1437_v4  ;;  %2718 = vmatmul.msk.f32.gmra.mxu2 %vm301_vm3, %v2004_v5 }
0x1060   : > { %v2005_v6 = vld [vmem:[#allocation2 + $0x158] sm:$0xff] }
0x1061   : > { %2719 = vmatmul.msk.f32.gmra.mxu2 %vm301_vm3, %v2005_v6 }
0x10b3   : > { %v1448_v7 = vpop.xlane.xlu0 %1447 }
0x10b4   : > { %vm1458_vm5 = vcmp.le.f32.partialorder %v3579_v39, %v1448_v7 }
0x10b5   : > { %v1462_v59 = vsel %vm1458_vm5, %v2968_v30, 32 }
0x10b6   : > { %v1466_v9 = vsel %vm301_vm3, %v1462_v59, 2147483647 }
0x10b7   : > { %v1468_v11 = vshra.s32 %v1466_v9, 16  ;;  %v1467_v40 = vand.u32 65535, %v1466_v9 }
0x10b9   : > { %v1470_v12 = vcvt.s32.f32 %v1468_v11  ;;  %v1469_v42 = vcvt.s32.f32 %v1467_v40 }
0x10bb   : > { %v1451_v35 = vpop.xlane.xlu1 %1450  ;;  %1471 = vmin.xlane.f32.xlu1 %v1470_v12 }
0x10bc   : > { %vm1459_vm6 = vcmp.le.f32.partialorder %v3588_v8, %v1451_v35 }
0x10bd   : > { %v1463_v14 = vsel %vm1459_vm6, %v2968_v30, 32 }
0x10be   : > { %v1481_v16 = vsel %vm301_vm3, %v1463_v14, 2147483647 }
0x10bf   : > { %v1483_v18 = vshra.s32 %v1481_v16, 16  ;;  %v1482_v44 = vand.u32 65535, %v1481_v16 }
0x10c1   : > { %v1485_v20 = vcvt.s32.f32 %v1483_v18  ;;  %v1484_v46 = vcvt.s32.f32 %v1482_v44 }
0x10c3   : > { %1486 = vmin.xlane.f32.xlu2 %v1485_v20  ;;  %v1454_v3 = vpop.xlane.xlu2 %1453 }
0x10c4   : > { %vm1460_vm7 = vcmp.le.f32.partialorder %v3598_v49, %v1454_v3 }
0x10c5   : > { %v1464_v24 = vsel %vm1460_vm7, %v2968_v30, 32 }
0x10c6   : > { %v1496_v25 = vsel %vm301_vm3, %v1464_v24, 2147483647 }
0x10c7   : > { %v1498_v26 = vshra.s32 %v1496_v25, 16  ;;  %v1497_v15 = vand.u32 65535, %v1496_v25 }
0x10c9   : > { %v1500_v23 = vcvt.s32.f32 %v1498_v26  ;;  %v1499_v51 = vcvt.s32.f32 %v1497_v15 }
0x10cb   : > { %v1457_v28 = vpop.xlane.xlu0 %1456  ;;  %1501 = vmin.xlane.f32.xlu0 %v1500_v23 }
0x10cc   : > { %vm1461_vm8 = vcmp.le.f32.partialorder %v3608_v22, %v1457_v28  ;;  %v2355_v29 = vpop.f32.mrf.mxu2 }
0x10cd   : > { %v1465_v31 = vsel %vm1461_vm8, %v2968_v30, 32  ;;  %2467 = vst [vmem:[%s3064_s11 + $0x140] sm:$0xff] %v2355_v29 }
0x10ce   : > { %v1511_v32 = vsel %vm301_vm3, %v1465_v31, 2147483647 }
0x10cf   : > { %v1513_v13 = vshra.s32 %v1511_v32, 16  ;;  %v1512_v47 = vand.u32 65535, %v1511_v32 }
0x10d1   : > { %v1515_v34 = vcvt.s32.f32 %v1513_v13  ;;  %v1514_v55 = vcvt.s32.f32 %v1512_v47 }
0x10d3   : > { %1516 = vmin.xlane.f32.xlu1 %v1515_v34 }
0x10d4   : > { %v2358_v36 = vpop.f32.mrf.mxu2 }
0x10d5   : > { %2468 = vst [vmem:[%s3064_s11 + $0x148] sm:$0xff] %v2358_v36 }
0x10dc   : > { %v2361_v37 = vpop.f32.mrf.mxu2 }
0x10dd   : > { %2469 = vst [vmem:[%s3064_s11 + $0x150] sm:$0xff] %v2361_v37 }
0x10e4   : > { %v2364_v38 = vpop.f32.mrf.mxu2 }
0x10e5   : > { %2470 = vst [vmem:[%s3064_s11 + $0x158] sm:$0xff] %v2364_v38 }
0x112e   : > { %v1472_v41 = vpop.xlane.xlu1 %1471 }
0x112f   : > { %vm1473_vm9 = vcmp.eq.f32.partialorder %v1470_v12, %v1472_v41  ;;  %v1478_v58 = vcvt.f32.s32 %v1472_v41 }
0x1130   : > { %v1474_v21 = vsel %vm1473_vm9, %v1469_v42, inf }
0x1131   : > { %1475 = vmin.xlane.f32.xlu2 %v1474_v21  ;;  %v1479_v60 = vshll.u32 %v1478_v58, 16 }
0x1136   : > { %v1487_v45 = vpop.xlane.xlu2 %1486 }
0x1137   : > { %vm1488_vm10 = vcmp.eq.f32.partialorder %v1485_v20, %v1487_v45  ;;  %v1493_v62 = vcvt.f32.s32 %v1487_v45 }
0x1138   : > { %v1489_v48 = vsel %vm1488_vm10, %v1484_v46, inf }
0x1139   : > { %1490 = vmin.xlane.f32.xlu0 %v1489_v48  ;;  %v1494_v4 = vshll.u32 %v1493_v62, 16 }
0x113e   : > { %v1502_v50 = vpop.xlane.xlu0 %1501 }
0x113f   : > { %vm1503_vm11 = vcmp.eq.f32.partialorder %v1500_v23, %v1502_v50  ;;  %v1508_v7 = vcvt.f32.s32 %v1502_v50 }
0x1140   : > { %v1504_v52 = vsel %vm1503_vm11, %v1499_v51, inf }
0x1141   : > { %1505 = vmin.xlane.f32.xlu1 %v1504_v52  ;;  %v1509_v14 = vshll.u32 %v1508_v7, 16 }
0x1146   : > { %v1517_v54 = vpop.xlane.xlu1 %1516 }
0x1147   : > { %vm1518_vm12 = vcmp.eq.f32.partialorder %v1515_v34, %v1517_v54  ;;  %v1523_v20 = vcvt.f32.s32 %v1517_v54 }
0x1148   : > { %v1519_v57 = vsel %vm1518_vm12, %v1514_v55, inf }
0x1149   : > { %1520 = vmin.xlane.f32.xlu2 %v1519_v57  ;;  %v1524_v28 = vshll.u32 %v1523_v20, 16 }
0x11a4   : > { %v1476_v43 = vpop.xlane.xlu2 %1475 }
0x11a5   : > { %v1477_v61 = vcvt.f32.s32 %v1476_v43 }
0x11a7   : > { %v1480_v27 = vadd.s32 %v1479_v60, %v1477_v61 }
0x11a9   : > { %vm1526_vm13 = vcmp.eq.s32.totalorder %v2968_v30, %v1480_v27 }
0x11aa   : > { %v3635_v63 = vsel %vm1526_vm13, inf, %v3579_v39  ;;  %v2656_v0 = vsel %vm1526_vm13, 1.0, %v2866_v10 }
0x11ab   : > { %v1550_v1 = vsel %vm301_vm3, %v3635_v63, inf  ;;  %v1538_v2 = vadd.f32 %v2656_v0, %v2996_v17 }
0x11ac   : > { %v1491_v53 = vpop.xlane.xlu0 %1490  ;;  %1551 = vmin.xlane.f32.xlu0 %v1550_v1 }
0x11ad   : > { %v1492_v5 = vcvt.f32.s32 %v1491_v53  ;;  %1542 = vst.msk [vmem:[#allocation2 + $0x160] sm:$0xff] %vm301_vm3, %v1538_v2 }
0x11af   : > { %v1495_v6 = vadd.s32 %v1494_v4, %v1492_v5 }
0x11b1   : > { %vm1527_vm14 = vcmp.eq.s32.totalorder %v2968_v30, %v1495_v6 }
0x11b2   : > { %v3644_v39 = vsel %vm1527_vm14, inf, %v3588_v8  ;;  %v2657_v59 = vsel %vm1527_vm14, 1.0, %v2866_v10 }
0x11b3   : > { %v1553_v9 = vsel %vm301_vm3, %v3644_v39, inf  ;;  %v1539_v11 = vadd.f32 %v2657_v59, %v3009_v33 }
0x11b4   : > { %v1506_v12 = vpop.xlane.xlu1 %1505  ;;  %1554 = vmin.xlane.f32.xlu1 %v1553_v9  ;;  %v2006_v35 = vld [vmem:[#allocation2 + $0x160] sm:$0xff] }
0x11b5   : > { %v1507_v16 = vcvt.f32.s32 %v1506_v12  ;;  %1543 = vst.msk [vmem:[#allocation2 + $0x168] sm:$0xff] %vm301_vm3, %v1539_v11  ;;  %2720 = vmatmul.msk.f32.gmra.mxu2 %vm301_vm3, %v2006_v35 }
0x11b7   : > { %v1510_v18 = vadd.s32 %v1509_v14, %v1507_v16 }
0x11b9   : > { %vm1528_vm15 = vcmp.eq.s32.totalorder %v2968_v30, %v1510_v18 }
0x11ba   : > { %v3654_v8 = vsel %vm1528_vm15, inf, %v3598_v49  ;;  %v2658_v3 = vsel %vm1528_vm15, 1.0, %v2866_v10 }
0x11bb   : > { %v1556_v24 = vsel %vm301_vm3, %v3654_v8, inf  ;;  %v1540_v25 = vadd.f32 %v2658_v3, %v3024_v19 }
0x11bc   : > { %1557 = vmin.xlane.f32.xlu2 %v1556_v24  ;;  %v1521_v26 = vpop.xlane.xlu2 %1520  ;;  %v2007_v23 = vld [vmem:[#allocation2 + $0x168] sm:$0xff] }
0x11bd   : > { %1544 = vst.msk [vmem:[#allocation2 + $0x170] sm:$0xff] %vm301_vm3, %v1540_v25  ;;  %v1522_v29 = vcvt.f32.s32 %v1521_v26  ;;  %2721 = vmatmul.msk.f32.gmra.mxu2 %vm301_vm3, %v2007_v23 }
0x11bf   : > { %v1525_v31 = vadd.s32 %v1524_v28, %v1522_v29 }
0x11c1   : > { %vm1529_vm0 = vcmp.eq.s32.totalorder %v2968_v30, %v1525_v31 }
0x11c2   : > { %v2659_v49 = vsel %vm1529_vm0, 1.0, %v2866_v10  ;;  %v3665_v32 = vsel %vm1529_vm0, inf, %v3608_v22 }
0x11c3   : > { %v1541_v13 = vadd.f32 %v2659_v49, %v3039_v56  ;;  %v1559_v34 = vsel %vm301_vm3, %v3665_v32, inf }
0x11c4   : > { %1560 = vmin.xlane.f32.xlu0 %v1559_v34  ;;  %v2008_v36 = vld [vmem:[#allocation2 + $0x170] sm:$0xff] }
0x11c5   : > { %1545 = vst.msk [vmem:[#allocation2 + $0x178] sm:$0xff] %vm301_vm3, %v1541_v13  ;;  %2722 = vmatmul.msk.f32.gmra.mxu2 %vm301_vm3, %v2008_v36 }
0x11cc   : > { %v2009_v37 = vld [vmem:[#allocation2 + $0x178] sm:$0xff] }
0x11cd   : > { %2723 = vmatmul.msk.f32.vlgmr.msra.gmra.mxu3 %vm301_vm3, %v2009_v37 }
0x121f   : > { %v1552_v38 = vpop.xlane.xlu0 %1551 }
0x1220   : > { %vm1562_vm1 = vcmp.le.f32.partialorder %v3635_v63, %v1552_v38 }
0x1221   : > { %v1566_v22 = vsel %vm1562_vm1, %v2968_v30, 32 }
0x1222   : > { %v1570_v40 = vsel %vm301_vm3, %v1566_v22, 2147483647 }
0x1223   : > { %v1572_v41 = vshra.s32 %v1570_v40, 16  ;;  %v1571_v0 = vand.u32 65535, %v1570_v40 }
0x1225   : > { %v1574_v42 = vcvt.s32.f32 %v1572_v41  ;;  %v1573_v2 = vcvt.s32.f32 %v1571_v0 }
0x1227   : > { %v1555_v21 = vpop.xlane.xlu1 %1554  ;;  %1575 = vmin.xlane.f32.xlu1 %v1574_v42 }
0x1228   : > { %vm1563_vm2 = vcmp.le.f32.partialorder %v3644_v39, %v1555_v21 }
0x1229   : > { %v1567_v44 = vsel %vm1563_vm2, %v2968_v30, 32 }
0x122a   : > { %v1585_v45 = vsel %vm301_vm3, %v1567_v44, 2147483647 }
0x122b   : > { %v1587_v46 = vshra.s32 %v1585_v45, 16  ;;  %v1586_v4 = vand.u32 65535, %v1585_v45 }
0x122d   : > { %v1589_v48 = vcvt.s32.f32 %v1587_v46  ;;  %v1588_v6 = vcvt.s32.f32 %v1586_v4 }
0x122f   : > { %1590 = vmin.xlane.f32.xlu2 %v1589_v48  ;;  %v1558_v15 = vpop.xlane.xlu2 %1557 }
0x1230   : > { %vm1564_vm4 = vcmp.le.f32.partialorder %v3654_v8, %v1558_v15 }
0x1231   : > { %v1568_v50 = vsel %vm1564_vm4, %v2968_v30, 32 }
0x1232   : > { %v1600_v51 = vsel %vm301_vm3, %v1568_v50, 2147483647 }
0x1233   : > { %v1602_v52 = vshra.s32 %v1600_v51, 16  ;;  %v1601_v59 = vand.u32 65535, %v1600_v51 }
0x1235   : > { %v1604_v47 = vcvt.s32.f32 %v1602_v52  ;;  %v1603_v11 = vcvt.s32.f32 %v1601_v59 }
0x1237   : > { %v1561_v54 = vpop.xlane.xlu0 %1560  ;;  %1605 = vmin.xlane.f32.xlu0 %v1604_v47 }
0x1238   : > { %vm1565_vm5 = vcmp.le.f32.partialorder %v3665_v32, %v1561_v54  ;;  %v2367_v55 = vpop.f32.mrf.mxu2 }
0x1239   : > { %v1569_v57 = vsel %vm1565_vm5, %v2968_v30, 32  ;;  %2471 = vst [vmem:[%s3064_s11 + $0x160] sm:$0xff] %v2367_v55 }
0x123a   : > { %v1615_v58 = vsel %vm301_vm3, %v1569_v57, 2147483647 }
0x123b   : > { %v1617_v43 = vshra.s32 %v1615_v58, 16  ;;  %v1616_v35 = vand.u32 65535, %v1615_v58 }
0x123d   : > { %v1619_v60 = vcvt.s32.f32 %v1617_v43  ;;  %v1618_v16 = vcvt.s32.f32 %v1616_v35 }
0x123f   : > { %1620 = vmin.xlane.f32.xlu1 %v1619_v60 }
0x1240   : > { %v2370_v61 = vpop.f32.mrf.mxu2 }
0x1241   : > { %2472 = vst [vmem:[%s3064_s11 + $0x168] sm:$0xff] %v2370_v61 }
0x1248   : > { %v2373_v27 = vpop.f32.mrf.mxu2 }
0x1249   : > { %2473 = vst [vmem:[%s3064_s11 + $0x170] sm:$0xff] %v2373_v27 }
0x1250   : > { %v2376_v62 = vpop.f32.mrf.mxu3 }
0x1251   : > { %2474 = vst [vmem:[%s3064_s11 + $0x178] sm:$0xff] %v2376_v62 }
0x129a   : > { %v1576_v1 = vpop.xlane.xlu1 %1575 }
0x129b   : > { %vm1577_vm6 = vcmp.eq.f32.partialorder %v1574_v42, %v1576_v1  ;;  %v1582_v20 = vcvt.f32.s32 %v1576_v1 }
0x129c   : > { %v1578_v53 = vsel %vm1577_vm6, %v1573_v2, inf }
0x129d   : > { %1579 = vmin.xlane.f32.xlu2 %v1578_v53  ;;  %v1583_v24 = vshll.u32 %v1582_v20, 16 }
0x12a2   : > { %v1591_v5 = vpop.xlane.xlu2 %1590 }
0x12a3   : > { %vm1592_vm7 = vcmp.eq.f32.partialorder %v1589_v48, %v1591_v5  ;;  %v1597_v23 = vcvt.f32.s32 %v1591_v5 }
0x12a4   : > { %v1593_v7 = vsel %vm1592_vm7, %v1588_v6, inf }
0x12a5   : > { %1594 = vmin.xlane.f32.xlu0 %v1593_v7  ;;  %v1598_v34 = vshll.u32 %v1597_v23, 16 }
0x12aa   : > { %v1606_v9 = vpop.xlane.xlu0 %1605 }
0x12ab   : > { %vm1607_vm8 = vcmp.eq.f32.partialorder %v1604_v47, %v1606_v9  ;;  %v1612_v38 = vcvt.f32.s32 %v1606_v9 }
0x12ac   : > { %v1608_v12 = vsel %vm1607_vm8, %v1603_v11, inf }
0x12ad   : > { %1609 = vmin.xlane.f32.xlu1 %v1608_v12  ;;  %v1613_v44 = vshll.u32 %v1612_v38, 16 }
0x12b2   : > { %v1621_v14 = vpop.xlane.xlu1 %1620 }
0x12b3   : > { %vm1622_vm9 = vcmp.eq.f32.partialorder %v1619_v60, %v1621_v14  ;;  %v1627_v48 = vcvt.f32.s32 %v1621_v14 }
0x12b4   : > { %v1623_v18 = vsel %vm1622_vm9, %v1618_v16, inf }
0x12b5   : > { %1624 = vmin.xlane.f32.xlu2 %v1623_v18  ;;  %v1628_v54 = vshll.u32 %v1627_v48, 16 }
0x1310   : > { %v1580_v3 = vpop.xlane.xlu2 %1579 }
0x1311   : > { %v1581_v25 = vcvt.f32.s32 %v1580_v3 }
0x1313   : > { %v1584_v26 = vadd.s32 %v1583_v24, %v1581_v25 }
0x1315   : > { %vm1630_vm10 = vcmp.eq.s32.totalorder %v2968_v30, %v1584_v26 }
0x1316   : > { %v2660_v28 = vsel %vm1630_vm10, 1.0, %v2866_v10  ;;  %v3692_v29 = vsel %vm1630_vm10, inf, %v3635_v63 }
0x1317   : > { %v1642_v31 = vadd.f32 %v2660_v28, %v2996_v17  ;;  %v1654_v49 = vsel %vm301_vm3, %v3692_v29, inf }
0x1318   : > { %v1595_v13 = vpop.xlane.xlu0 %1594  ;;  %1655 = vmin.xlane.f32.xlu0 %v1654_v49 }
0x1319   : > { %1646 = vst.msk [vmem:[#allocation2 + $0x180] sm:$0xff] %vm301_vm3, %v1642_v31  ;;  %v1596_v36 = vcvt.f32.s32 %v1595_v13 }
0x131b   : > { %v1599_v37 = vadd.s32 %v1598_v34, %v1596_v36 }
0x131d   : > { %vm1631_vm11 = vcmp.eq.s32.totalorder %v2968_v30, %v1599_v37 }
0x131e   : > { %v2661_v22 = vsel %vm1631_vm11, 1.0, %v2866_v10  ;;  %v3701_v63 = vsel %vm1631_vm11, inf, %v3644_v39 }
0x131f   : > { %v1643_v40 = vadd.f32 %v2661_v22, %v3009_v33  ;;  %v1657_v41 = vsel %vm301_vm3, %v3701_v63, inf }
0x1320   : > { %v1610_v42 = vpop.xlane.xlu1 %1609  ;;  %1658 = vmin.xlane.f32.xlu1 %v1657_v41  ;;  %v2010_v21 = vld [vmem:[#allocation2 + $0x180] sm:$0xff] }
0x1321   : > { %1647 = vst.msk [vmem:[#allocation2 + $0x188] sm:$0xff] %vm301_vm3, %v1643_v40  ;;  %v1611_v45 = vcvt.f32.s32 %v1610_v42  ;;  %2724 = vmatmul.msk.f32.gmra.mxu3 %vm301_vm3, %v2010_v21 }
0x1323   : > { %v1614_v46 = vadd.s32 %v1613_v44, %v1611_v45 }
0x1325   : > { %vm1632_vm12 = vcmp.eq.s32.totalorder %v2968_v30, %v1614_v46 }
0x1326   : > { %v2662_v39 = vsel %vm1632_vm12, 1.0, %v2866_v10  ;;  %v3711_v15 = vsel %vm1632_vm12, inf, %v3654_v8 }
0x1327   : > { %v1644_v50 = vadd.f32 %v2662_v39, %v3024_v19  ;;  %v1660_v51 = vsel %vm301_vm3, %v3711_v15, inf }
0x1328   : > { %1661 = vmin.xlane.f32.xlu2 %v1660_v51  ;;  %v1625_v52 = vpop.xlane.xlu2 %1624  ;;  %v2011_v47 = vld [vmem:[#allocation2 + $0x188] sm:$0xff] }
0x1329   : > { %1648 = vst.msk [vmem:[#allocation2 + $0x190] sm:$0xff] %vm301_vm3, %v1644_v50  ;;  %v1626_v55 = vcvt.f32.s32 %v1625_v52  ;;  %2725 = vmatmul.msk.f32.gmra.mxu3 %vm301_vm3, %v2011_v47 }
0x132b   : > { %v1629_v57 = vadd.s32 %v1628_v54, %v1626_v55 }
0x132d   : > { %vm1633_vm13 = vcmp.eq.s32.totalorder %v2968_v30, %v1629_v57 }
0x132e   : > { %v2663_v8 = vsel %vm1633_vm13, 1.0, %v2866_v10  ;;  %v3721_v58 = vsel %vm1633_vm13, inf, %v3665_v32 }
0x132f   : > { %v1645_v43 = vadd.f32 %v2663_v8, %v3039_v56  ;;  %v1663_v60 = vsel %vm301_vm3, %v3721_v58, inf }
0x1330   : > { %1664 = vmin.xlane.f32.xlu0 %v1663_v60  ;;  %v2012_v61 = vld [vmem:[#allocation2 + $0x190] sm:$0xff] }
0x1331   : > { %1649 = vst.msk [vmem:[#allocation2 + $0x198] sm:$0xff] %vm301_vm3, %v1645_v43  ;;  %2726 = vmatmul.msk.f32.gmra.mxu3 %vm301_vm3, %v2012_v61 }
0x1338   : > { %v2013_v27 = vld [vmem:[#allocation2 + $0x198] sm:$0xff] }
0x1339   : > { %2727 = vmatmul.msk.f32.gmra.mxu3 %vm301_vm3, %v2013_v27 }
0x138b   : > { %v1656_v62 = vpop.xlane.xlu0 %1655 }
0x138c   : > { %vm1666_vm14 = vcmp.le.f32.partialorder %v3692_v29, %v1656_v62 }
0x138d   : > { %v1670_v32 = vsel %vm1666_vm14, %v2968_v30, 32 }
0x138e   : > { %v1674_v0 = vsel %vm301_vm3, %v1670_v32, 2147483647 }
0x138f   : > { %v1676_v1 = vshra.s32 %v1674_v0, 16  ;;  %v1675_v28 = vand.u32 65535, %v1674_v0 }
0x1391   : > { %v1678_v2 = vcvt.s32.f32 %v1676_v1  ;;  %v1677_v49 = vcvt.s32.f32 %v1675_v28 }
0x1393   : > { %v1659_v53 = vpop.xlane.xlu1 %1658  ;;  %1679 = vmin.xlane.f32.xlu1 %v1678_v2 }
0x1394   : > { %vm1667_vm15 = vcmp.le.f32.partialorder %v3701_v63, %v1659_v53 }
0x1395   : > { %v1671_v4 = vsel %vm1667_vm15, %v2968_v30, 32 }
0x1396   : > { %v1689_v5 = vsel %vm301_vm3, %v1671_v4, 2147483647 }
0x1397   : > { %v1691_v6 = vshra.s32 %v1689_v5, 16  ;;  %v1690_v34 = vand.u32 65535, %v1689_v5 }
0x1399   : > { %v1693_v7 = vcvt.s32.f32 %v1691_v6  ;;  %v1692_v37 = vcvt.s32.f32 %v1690_v34 }
0x139b   : > { %1694 = vmin.xlane.f32.xlu2 %v1693_v7  ;;  %v1662_v59 = vpop.xlane.xlu2 %1661 }
0x139c   : > { %vm1668_vm0 = vcmp.le.f32.partialorder %v3711_v15, %v1662_v59 }
0x139d   : > { %v1672_v9 = vsel %vm1668_vm0, %v2968_v30, 32 }
0x139e   : > { %v1704_v11 = vsel %vm301_vm3, %v1672_v9, 2147483647 }
0x139f   : > { %v1706_v12 = vshra.s32 %v1704_v11, 16  ;;  %v1705_v22 = vand.u32 65535, %v1704_v11 }
0x13a1   : > { %v1708_v35 = vcvt.s32.f32 %v1706_v12  ;;  %v1707_v41 = vcvt.s32.f32 %v1705_v22 }
0x13a3   : > { %v1665_v14 = vpop.xlane.xlu0 %1664  ;;  %1709 = vmin.xlane.f32.xlu0 %v1708_v35 }
0x13a4   : > { %vm1669_vm1 = vcmp.le.f32.partialorder %v3721_v58, %v1665_v14  ;;  %v2379_v16 = vpop.f32.mrf.mxu3 }
0x13a5   : > { %v1673_v18 = vsel %vm1669_vm1, %v2968_v30, 32  ;;  %2475 = vst [vmem:[%s3064_s11 + $0x180] sm:$0xff] %v2379_v16 }
0x13a6   : > { %v1719_v20 = vsel %vm301_vm3, %v1673_v18, 2147483647 }
0x13a7   : > { %v1721_v3 = vshra.s32 %v1719_v20, 16  ;;  %v1720_v21 = vand.u32 65535, %v1719_v20 }
0x13a9   : > { %v1723_v24 = vcvt.s32.f32 %v1721_v3  ;;  %v1722_v45 = vcvt.s32.f32 %v1720_v21 }
0x13ab   : > { %1724 = vmin.xlane.f32.xlu1 %v1723_v24 }
0x13ac   : > { %v2382_v25 = vpop.f32.mrf.mxu3 }
0x13ad   : > { %2476 = vst [vmem:[%s3064_s11 + $0x188] sm:$0xff] %v2382_v25 }
0x13b4   : > { %v2385_v26 = vpop.f32.mrf.mxu3 }
0x13b5   : > { %2477 = vst [vmem:[%s3064_s11 + $0x190] sm:$0xff] %v2385_v26 }
0x13bc   : > { %v2388_v23 = vpop.f32.mrf.mxu3 }
0x13bd   : > { %2478 = vst [vmem:[%s3064_s11 + $0x198] sm:$0xff] %v2388_v23 }
0x1406   : > { %v1680_v31 = vpop.xlane.xlu1 %1679 }
0x1407   : > { %vm1681_vm2 = vcmp.eq.f32.partialorder %v1678_v2, %v1680_v31  ;;  %v1686_v48 = vcvt.f32.s32 %v1680_v31 }
0x1408   : > { %v1682_v13 = vsel %vm1681_vm2, %v1677_v49, inf }
0x1409   : > { %1683 = vmin.xlane.f32.xlu2 %v1682_v13  ;;  %v1687_v50 = vshll.u32 %v1686_v48, 16 }
0x140e   : > { %v1695_v36 = vpop.xlane.xlu2 %1694 }
0x140f   : > { %vm1696_vm4 = vcmp.eq.f32.partialorder %v1693_v7, %v1695_v36  ;;  %v1701_v47 = vcvt.f32.s32 %v1695_v36 }
0x1410   : > { %v1697_v38 = vsel %vm1696_vm4, %v1692_v37, inf }
0x1411   : > { %1698 = vmin.xlane.f32.xlu0 %v1697_v38  ;;  %v1702_v60 = vshll.u32 %v1701_v47, 16 }
0x1416   : > { %v1710_v40 = vpop.xlane.xlu0 %1709 }
0x1417   : > { %vm1711_vm5 = vcmp.eq.f32.partialorder %v1708_v35, %v1710_v40  ;;  %v1716_v62 = vcvt.f32.s32 %v1710_v40 }
0x1418   : > { %v1712_v42 = vsel %vm1711_vm5, %v1707_v41, inf }
0x1419   : > { %1713 = vmin.xlane.f32.xlu1 %v1712_v42  ;;  %v1717_v4 = vshll.u32 %v1716_v62, 16 }
0x141e   : > { %v1725_v44 = vpop.xlane.xlu1 %1724 }
0x141f   : > { %vm1726_vm6 = vcmp.eq.f32.partialorder %v1723_v24, %v1725_v44  ;;  %v1731_v7 = vcvt.f32.s32 %v1725_v44 }
0x1420   : > { %v1727_v46 = vsel %vm1726_vm6, %v1722_v45, inf }
0x1421   : > { %1728 = vmin.xlane.f32.xlu2 %v1727_v46  ;;  %v1732_v14 = vshll.u32 %v1731_v7, 16 }
0x147c   : > { %v1684_v39 = vpop.xlane.xlu2 %1683 }
0x147d   : > { %v1685_v51 = vcvt.f32.s32 %v1684_v39 }
0x147f   : > { %v1688_v52 = vadd.s32 %v1687_v50, %v1685_v51 }
0x1481   : > { %vm1734_vm7 = vcmp.eq.s32.totalorder %v2968_v30, %v1688_v52 }
0x1482   : > { %v2664_v54 = vsel %vm1734_vm7, 1.0, %v2866_v10  ;;  %v3748_v55 = vsel %vm1734_vm7, inf, %v3692_v29 }
0x1483   : > { %v1746_v57 = vadd.f32 %v2664_v54, %v2996_v17  ;;  %v1758_v8 = vsel %vm301_vm3, %v3748_v55, inf }
0x1484   : > { %v1699_v43 = vpop.xlane.xlu0 %1698  ;;  %1759 = vmin.xlane.f32.xlu0 %v1758_v8 }
0x1485   : > { %1750 = vst.msk [vmem:[#allocation2 + $0x1a0] sm:$0xff] %vm301_vm3, %v1746_v57  ;;  %v1700_v61 = vcvt.f32.s32 %v1699_v43 }
0x1487   : > { %v1703_v27 = vadd.s32 %v1702_v60, %v1700_v61 }
0x1489   : > { %vm1735_vm8 = vcmp.eq.s32.totalorder %v2968_v30, %v1703_v27 }
0x148a   : > { %v2665_v32 = vsel %vm1735_vm8, 1.0, %v2866_v10  ;;  %v3757_v29 = vsel %vm1735_vm8, inf, %v3701_v63 }
0x148b   : > { %v1747_v0 = vadd.f32 %v2665_v32, %v3009_v33  ;;  %v1761_v1 = vsel %vm301_vm3, %v3757_v29, inf }
0x148c   : > { %v1714_v2 = vpop.xlane.xlu1 %1713  ;;  %1762 = vmin.xlane.f32.xlu1 %v1761_v1  ;;  %v2014_v53 = vld [vmem:[#allocation2 + $0x1a0] sm:$0xff] }
0x148d   : > { %1751 = vst.msk [vmem:[#allocation2 + $0x1a8] sm:$0xff] %vm301_vm3, %v1747_v0  ;;  %v1715_v5 = vcvt.f32.s32 %v1714_v2  ;;  %2728 = vmatmul.msk.f32.gmra.mxu3 %vm301_vm3, %v2014_v53 }
0x148f   : > { %v1718_v6 = vadd.s32 %v1717_v4, %v1715_v5 }
0x1491   : > { %vm1736_vm9 = vcmp.eq.s32.totalorder %v2968_v30, %v1718_v6 }
0x1492   : > { %v2666_v63 = vsel %vm1736_vm9, 1.0, %v2866_v10  ;;  %v3767_v59 = vsel %vm1736_vm9, inf, %v3711_v15 }
0x1493   : > { %v1748_v9 = vadd.f32 %v2666_v63, %v3024_v19  ;;  %v1764_v11 = vsel %vm301_vm3, %v3767_v59, inf }
0x1494   : > { %1765 = vmin.xlane.f32.xlu2 %v1764_v11  ;;  %v1729_v12 = vpop.xlane.xlu2 %1728  ;;  %v2015_v35 = vld [vmem:[#allocation2 + $0x1a8] sm:$0xff] }
0x1495   : > { %1752 = vst.msk [vmem:[#allocation2 + $0x1b0] sm:$0xff] %vm301_vm3, %v1748_v9  ;;  %v1730_v16 = vcvt.f32.s32 %v1729_v12  ;;  %2729 = vmatmul.msk.f32.gmra.mxu3 %vm301_vm3, %v2015_v35 }
0x1497   : > { %v1733_v18 = vadd.s32 %v1732_v14, %v1730_v16 }
0x1499   : > { %vm1737_vm10 = vcmp.eq.s32.totalorder %v2968_v30, %v1733_v18 }
0x149a   : > { %v2667_v15 = vsel %vm1737_vm10, 1.0, %v2866_v10  ;;  %v3777_v20 = vsel %vm1737_vm10, inf, %v3721_v58 }
0x149b   : > { %v1749_v3 = vadd.f32 %v2667_v15, %v3039_v56  ;;  %v1767_v24 = vsel %vm301_vm3, %v3777_v20, inf }
0x149c   : > { %1768 = vmin.xlane.f32.xlu0 %v1767_v24  ;;  %v2016_v25 = vld [vmem:[#allocation2 + $0x1b0] sm:$0xff] }
0x149d   : > { %1753 = vst.msk [vmem:[#allocation2 + $0x1b8] sm:$0xff] %vm301_vm3, %v1749_v3  ;;  %2730 = vmatmul.msk.f32.gmra.mxu3 %vm301_vm3, %v2016_v25 }
0x14a4   : > { %v2017_v26 = vld [vmem:[#allocation2 + $0x1b8] sm:$0xff] }
0x14a5   : > { %2731 = vmatmul.msk.f32.gmra.mxu3 %vm301_vm3, %v2017_v26 }
0x14f7   : > { %v1760_v23 = vpop.xlane.xlu0 %1759 }
0x14f8   : > { %vm1770_vm11 = vcmp.le.f32.partialorder %v3748_v55, %v1760_v23 }
0x14f9   : > { %v1774_v58 = vsel %vm1770_vm11, %v2968_v30, 32 }
0x14fa   : > { %v1778_v28 = vsel %vm301_vm3, %v1774_v58, 2147483647 }
0x14fb   : > { %v1780_v31 = vshra.s32 %v1778_v28, 16  ;;  %v1779_v54 = vand.u32 65535, %v1778_v28 }
0x14fd   : > { %v1782_v49 = vcvt.s32.f32 %v1780_v31  ;;  %v1781_v8 = vcvt.s32.f32 %v1779_v54 }
0x14ff   : > { %v1763_v13 = vpop.xlane.xlu1 %1762  ;;  %1783 = vmin.xlane.f32.xlu1 %v1782_v49 }
0x1500   : > { %vm1771_vm12 = vcmp.le.f32.partialorder %v3757_v29, %v1763_v13 }
0x1501   : > { %v1775_v34 = vsel %vm1771_vm12, %v2968_v30, 32 }
0x1502   : > { %v1793_v36 = vsel %vm301_vm3, %v1775_v34, 2147483647 }
0x1503   : > { %v1795_v37 = vshra.s32 %v1793_v36, 16  ;;  %v1794_v60 = vand.u32 65535, %v1793_v36 }
0x1505   : > { %v1797_v38 = vcvt.s32.f32 %v1795_v37  ;;  %v1796_v27 = vcvt.s32.f32 %v1794_v60 }
0x1507   : > { %1798 = vmin.xlane.f32.xlu2 %v1797_v38  ;;  %v1766_v22 = vpop.xlane.xlu2 %1765 }
0x1508   : > { %vm1772_vm13 = vcmp.le.f32.partialorder %v3767_v59, %v1766_v22 }
0x1509   : > { %v1776_v40 = vsel %vm1772_vm13, %v2968_v30, 32 }
0x150a   : > { %v1808_v41 = vsel %vm301_vm3, %v1776_v40, 2147483647 }
0x150b   : > { %v1810_v42 = vshra.s32 %v1808_v41, 16  ;;  %v1809_v32 = vand.u32 65535, %v1808_v41 }
0x150d   : > { %v1812_v21 = vcvt.s32.f32 %v1810_v42  ;;  %v1811_v1 = vcvt.s32.f32 %v1809_v32 }
0x150f   : > { %v1769_v44 = vpop.xlane.xlu0 %1768  ;;  %1813 = vmin.xlane.f32.xlu0 %v1812_v21 }
0x1510   : > { %vm1773_vm14 = vcmp.le.f32.partialorder %v3777_v20, %v1769_v44  ;;  %v2391_v45 = vpop.f32.mrf.mxu3 }
0x1511   : > { %v1777_v46 = vsel %vm1773_vm14, %v2968_v30, 32  ;;  %2479 = vst [vmem:[%s3064_s11 + $0x1a0] sm:$0xff] %v2391_v45 }
0x1512   : > { %v1823_v48 = vsel %vm301_vm3, %v1777_v46, 2147483647 }
0x1513   : > { %v1825_v39 = vshra.s32 %v1823_v48, 16  ;;  %v1824_v53 = vand.u32 65535, %v1823_v48 }
0x1515   : > { %v1827_v50 = vcvt.s32.f32 %v1825_v39  ;;  %v1826_v5 = vcvt.s32.f32 %v1824_v53 }
0x1517   : > { %1828 = vmin.xlane.f32.xlu1 %v1827_v50 }
0x1518   : > { %v2394_v51 = vpop.f32.mrf.mxu3 }
0x1519   : > { %2480 = vst [vmem:[%s3064_s11 + $0x1a8] sm:$0xff] %v2394_v51 }
0x1520   : > { %v2397_v52 = vpop.f32.mrf.mxu3 }
0x1521   : > { %2481 = vst [vmem:[%s3064_s11 + $0x1b0] sm:$0xff] %v2397_v52 }
0x1528   : > { %v2400_v47 = vpop.f32.mrf.mxu3 }
0x1529   : > { %2482 = vst [vmem:[%s3064_s11 + $0x1b8] sm:$0xff] %v2400_v47 }
0x1572   : > { %v1784_v57 = vpop.xlane.xlu1 %1783 }
0x1573   : > { %vm1785_vm15 = vcmp.eq.f32.partialorder %v1782_v49, %v1784_v57  ;;  %v1790_v7 = vcvt.f32.s32 %v1784_v57 }
0x1574   : > { %v1786_v43 = vsel %vm1785_vm15, %v1781_v8, inf }
0x1575   : > { %1787 = vmin.xlane.f32.xlu2 %v1786_v43  ;;  %v1791_v9 = vshll.u32 %v1790_v7, 16 }
0x157a   : > { %v1799_v61 = vpop.xlane.xlu2 %1798 }
0x157b   : > { %vm1800_vm0 = vcmp.eq.f32.partialorder %v1797_v38, %v1799_v61  ;;  %v1805_v35 = vcvt.f32.s32 %v1799_v61 }
0x157c   : > { %v1801_v62 = vsel %vm1800_vm0, %v1796_v27, inf }
0x157d   : > { %1802 = vmin.xlane.f32.xlu0 %v1801_v62  ;;  %v1806_v24 = vshll.u32 %v1805_v35, 16 }
0x1582   : > { %v1814_v0 = vpop.xlane.xlu0 %1813 }
0x1583   : > { %vm1815_vm1 = vcmp.eq.f32.partialorder %v1812_v21, %v1814_v0  ;;  %v1820_v23 = vcvt.f32.s32 %v1814_v0 }
0x1584   : > { %v1816_v2 = vsel %vm1815_vm1, %v1811_v1, inf }
0x1585   : > { %1817 = vmin.xlane.f32.xlu1 %v1816_v2  ;;  %v1821_v34 = vshll.u32 %v1820_v23, 16 }
0x158a   : > { %v1829_v4 = vpop.xlane.xlu1 %1828 }
0x158b   : > { %vm1830_vm2 = vcmp.eq.f32.partialorder %v1827_v50, %v1829_v4  ;;  %v1835_v38 = vcvt.f32.s32 %v1829_v4 }
0x158c   : > { %v1831_v6 = vsel %vm1830_vm2, %v1826_v5, inf }
0x158d   : > { %1832 = vmin.xlane.f32.xlu2 %v1831_v6  ;;  %v1836_v44 = vshll.u32 %v1835_v38, 16 }
0x15e8   : > { %v1788_v63 = vpop.xlane.xlu2 %1787 }
0x15e9   : > { %v1789_v11 = vcvt.f32.s32 %v1788_v63 }
0x15eb   : > { %v1792_v12 = vadd.s32 %v1791_v9, %v1789_v11 }
0x15ed   : > { %vm1838_vm4 = vcmp.eq.s32.totalorder %v2968_v30, %v1792_v12 }
0x15ee   : > { %v1858_v14 = vsel %vm1838_vm4, inf, %v3748_v55  ;;  %v2668_v16 = vsel %vm1838_vm4, 1.0, %v2866_v10 }
0x15ef   : > { %v1862_v18 = vsel %vm301_vm3, %v1858_v14, inf  ;;  %v1850_v15 = vadd.f32 %v2668_v16, %v2996_v17 }
0x15f0   : > { %v1803_v3 = vpop.xlane.xlu0 %1802  ;;  %1863 = vmin.xlane.f32.xlu0 %v1862_v18 }
0x15f1   : > { %v1804_v25 = vcvt.f32.s32 %v1803_v3  ;;  %1854 = vst.msk [vmem:[#allocation2 + $0x1c0] sm:$0xff] %vm301_vm3, %v1850_v15 }
0x15f3   : > { %v1807_v26 = vadd.s32 %v1806_v24, %v1804_v25 }
0x15f5   : > { %vm1839_vm5 = vcmp.eq.s32.totalorder %v2968_v30, %v1807_v26 }
0x15f6   : > { %v1859_v58 = vsel %vm1839_vm5, inf, %v3757_v29  ;;  %v2669_v55 = vsel %vm1839_vm5, 1.0, %v2866_v10 }
0x15f7   : > { %v1865_v28 = vsel %vm301_vm3, %v1859_v58, inf  ;;  %v1851_v31 = vadd.f32 %v2669_v55, %v3009_v33 }
0x15f8   : > { %v1818_v49 = vpop.xlane.xlu1 %1817  ;;  %1866 = vmin.xlane.f32.xlu1 %v1865_v28  ;;  %v2018_v13 = vld [vmem:[#allocation2 + $0x1c0] sm:$0xff] }
0x15f9   : > { %v1819_v36 = vcvt.f32.s32 %v1818_v49  ;;  %1855 = vst.msk [vmem:[#allocation2 + $0x1c8] sm:$0xff] %vm301_vm3, %v1851_v31  ;;  %2732 = vmatmul.msk.f32.gmra.mxu3 %vm301_vm3, %v2018_v13 }
0x15fb   : > { %v1822_v37 = vadd.s32 %v1821_v34, %v1819_v36 }
0x15fd   : > { %vm1840_vm6 = vcmp.eq.s32.totalorder %v2968_v30, %v1822_v37 }
0x15fe   : > { %v1860_v29 = vsel %vm1840_vm6, inf, %v3767_v59  ;;  %v2670_v22 = vsel %vm1840_vm6, 1.0, %v2866_v10 }
0x15ff   : > { %v1868_v40 = vsel %vm301_vm3, %v1860_v29, inf  ;;  %v1852_v41 = vadd.f32 %v2670_v22, %v3024_v19 }
0x1600   : > { %1869 = vmin.xlane.f32.xlu2 %v1868_v40  ;;  %v1833_v42 = vpop.xlane.xlu2 %1832  ;;  %v2019_v21 = vld [vmem:[#allocation2 + $0x1c8] sm:$0xff] }
0x1601   : > { %1856 = vst.msk [vmem:[#allocation2 + $0x1d0] sm:$0xff] %vm301_vm3, %v1852_v41  ;;  %v1834_v45 = vcvt.f32.s32 %v1833_v42  ;;  %2733 = vmatmul.msk.f32.gmra.mxu3 %vm301_vm3, %v2019_v21 }
0x1603   : > { %v1837_v46 = vadd.s32 %v1836_v44, %v1834_v45 }
0x1605   : > { %vm1841_vm7 = vcmp.eq.s32.totalorder %v2968_v30, %v1837_v46 }
0x1606   : > { %v1861_v59 = vsel %vm1841_vm7, inf, %v3777_v20  ;;  %v2671_v48 = vsel %vm1841_vm7, 1.0, %v2866_v10 }
0x1607   : > { %v1871_v39 = vsel %vm301_vm3, %v1861_v59, inf  ;;  %v1853_v50 = vadd.f32 %v2671_v48, %v3039_v56 }
0x1608   : > { %1872 = vmin.xlane.f32.xlu0 %v1871_v39  ;;  %v2020_v51 = vld [vmem:[#allocation2 + $0x1d0] sm:$0xff] }
0x1609   : > { %1857 = vst.msk [vmem:[#allocation2 + $0x1d8] sm:$0xff] %vm301_vm3, %v1853_v50  ;;  %2734 = vmatmul.msk.f32.gmra.mxu3 %vm301_vm3, %v2020_v51 }
0x1610   : > { %v2021_v52 = vld [vmem:[#allocation2 + $0x1d8] sm:$0xff] }
0x1611   : > { %2735 = vmatmul.msk.f32.gmra.mxu3 %vm301_vm3, %v2021_v52 }
0x1663   : > { %v1864_v47 = vpop.xlane.xlu0 %1863 }
0x1664   : > { %vm1874_vm8 = vcmp.le.f32.partialorder %v1858_v14, %v1864_v47 }
0x1665   : > { %v1878_v54 = vsel %vm1874_vm8, %v2968_v30, 32 }
0x1666   : > { %v1882_v20 = vsel %vm301_vm3, %v1878_v54, 2147483647 }
0x1667   : > { %v1884_v57 = vshra.s32 %v1882_v20, 16  ;;  %v1883_v14 = vand.u32 65535, %v1882_v20 }
0x1669   : > { %v1886_v8 = vcvt.s32.f32 %v1884_v57  ;;  %v1885_v18 = vcvt.s32.f32 %v1883_v14 }
0x166b   : > { %v1867_v43 = vpop.xlane.xlu1 %1866  ;;  %1887 = vmin.xlane.f32.xlu1 %v1886_v8 }
0x166c   : > { %vm1875_vm9 = vcmp.le.f32.partialorder %v1859_v58, %v1867_v43 }
0x166d   : > { %v1879_v60 = vsel %vm1875_vm9, %v2968_v30, 32 }
0x166e   : > { %v1897_v61 = vsel %vm301_vm3, %v1879_v60, 2147483647 }
0x166f   : > { %v1899_v27 = vshra.s32 %v1897_v61, 16  ;;  %v1898_v3 = vand.u32 65535, %v1897_v61 }
0x1671   : > { %v1901_v62 = vcvt.s32.f32 %v1899_v27  ;;  %v1900_v25 = vcvt.s32.f32 %v1898_v3 }
0x1673   : > { %1902 = vmin.xlane.f32.xlu2 %v1901_v62  ;;  %v1870_v32 = vpop.xlane.xlu2 %1869 }
0x1674   : > { %vm1876_vm10 = vcmp.le.f32.partialorder %v1860_v29, %v1870_v32 }
0x1675   : > { %v1880_v0 = vsel %vm1876_vm10, %v2968_v30, 32 }
0x1676   : > { %v1912_v1 = vsel %vm301_vm3, %v1880_v0, 2147483647 }
0x1677   : > { %v1914_v2 = vshra.s32 %v1912_v1, 16  ;;  %v1913_v23 = vand.u32 65535, %v1912_v1 }
0x1679   : > { %v1916_v53 = vcvt.s32.f32 %v1914_v2  ;;  %v1915_v55 = vcvt.s32.f32 %v1913_v23 }
0x167b   : > { %v1873_v4 = vpop.xlane.xlu0 %1872  ;;  %1917 = vmin.xlane.f32.xlu0 %v1916_v53 }
0x167c   : > { %vm1877_vm11 = vcmp.le.f32.partialorder %v1861_v59, %v1873_v4  ;;  %v2403_v5 = vpop.f32.mrf.mxu3 }
0x167d   : > { %v1881_v6 = vsel %vm1877_vm11, %v2968_v30, 32  ;;  %2483 = vst [vmem:[%s3064_s11 + $0x1c0] sm:$0xff] %v2403_v5 }
0x167e   : > { %v1927_v7 = vsel %vm301_vm3, %v1881_v6, 2147483647 }
0x167f   : > { %v1929_v63 = vshra.s32 %v1927_v7, 16  ;;  %v1928_v31 = vand.u32 65535, %v1927_v7 }
0x1681   : > { %v1931_v9 = vcvt.s32.f32 %v1929_v63  ;;  %v1930_v13 = vcvt.s32.f32 %v1928_v31 }
0x1683   : > { %1932 = vmin.xlane.f32.xlu1 %v1931_v9 }
0x1684   : > { %v2406_v11 = vpop.f32.mrf.mxu3 }
0x1685   : > { %2484 = vst [vmem:[%s3064_s11 + $0x1c8] sm:$0xff] %v2406_v11 }
0x168c   : > { %v2409_v12 = vpop.f32.mrf.mxu3 }
0x168d   : > { %2485 = vst [vmem:[%s3064_s11 + $0x1d0] sm:$0xff] %v2409_v12 }
0x1694   : > { %v2412_v35 = vpop.f32.mrf.mxu3 }
0x1695   : > { %2486 = vst [vmem:[%s3064_s11 + $0x1d8] sm:$0xff] %v2412_v35 }
0x16de   : > { %v1888_v16 = vpop.xlane.xlu1 %1887 }
0x16df   : > { %vm1889_vm12 = vcmp.eq.f32.partialorder %v1886_v8, %v1888_v16  ;;  %v1894_v36 = vcvt.f32.s32 %v1888_v16 }
0x16e0   : > { %v1890_v15 = vsel %vm1889_vm12, %v1885_v18, inf }
0x16e1   : > { %1891 = vmin.xlane.f32.xlu2 %v1890_v15  ;;  %v1895_v38 = vshll.u32 %v1894_v36, 16 }
0x16e6   : > { %v1903_v24 = vpop.xlane.xlu2 %1902 }
0x16e7   : > { %vm1904_vm13 = vcmp.eq.f32.partialorder %v1901_v62, %v1903_v24  ;;  %v1909_v40 = vcvt.f32.s32 %v1903_v24 }
0x16e8   : > { %v1905_v26 = vsel %vm1904_vm13, %v1900_v25, inf }
0x16e9   : > { %1906 = vmin.xlane.f32.xlu0 %v1905_v26  ;;  %v1910_v44 = vshll.u32 %v1909_v40, 16 }
0x16ee   : > { %v1918_v58 = vpop.xlane.xlu0 %1917 }
0x16ef   : > { %vm1919_vm14 = vcmp.eq.f32.partialorder %v1916_v53, %v1918_v58  ;;  %v1924_v59 = vcvt.f32.s32 %v1918_v58 }
0x16f0   : > { %v1920_v28 = vsel %vm1919_vm14, %v1915_v55, inf }
0x16f1   : > { %1921 = vmin.xlane.f32.xlu1 %v1920_v28  ;;  %v1925_v52 = vshll.u32 %v1924_v59, 16 }
0x16f6   : > { %v1933_v49 = vpop.xlane.xlu1 %1932 }
0x16f7   : > { %vm1934_vm15 = vcmp.eq.f32.partialorder %v1931_v9, %v1933_v49  ;;  %v1939_v54 = vcvt.f32.s32 %v1933_v49 }
0x16f8   : > { %v1935_v34 = vsel %vm1934_vm15, %v1930_v13, inf }
0x16f9   : > { %1936 = vmin.xlane.f32.xlu2 %v1935_v34 }
0x1754   : > { %v1892_v37 = vpop.xlane.xlu2 %1891 }
0x1755   : > { %v1893_v29 = vcvt.f32.s32 %v1892_v37 }
0x1757   : > { %v1896_v22 = vadd.s32 %v1895_v38, %v1893_v29 }
0x1759   : > { %vm1942_vm0 = vcmp.eq.s32.totalorder %v2968_v30, %v1896_v22 }
0x175a   : > { %v2672_v41 = vsel %vm1942_vm0, 1.0, %v2866_v10 }
0x175b   : > { %v1954_v42 = vadd.f32 %v2672_v41, %v2996_v17 }
0x175c   : > { %v1907_v21 = vpop.xlane.xlu0 %1906 }
0x175d   : > { %1958 = vst.msk [vmem:[#allocation2 + $0x1e0] sm:$0xff] %vm301_vm3, %v1954_v42  ;;  %v1908_v45 = vcvt.f32.s32 %v1907_v21 }
0x175f   : > { %v1911_v46 = vadd.s32 %v1910_v44, %v1908_v45 }
0x1761   : > { %vm1943_vm1 = vcmp.eq.s32.totalorder %v2968_v30, %v1911_v46 }
0x1762   : > { %v2673_v48 = vsel %vm1943_vm1, 1.0, %v2866_v10 }
0x1763   : > { %v1955_v39 = vadd.f32 %v2673_v48, %v3009_v33  ;;  %v1940_v33 = vshll.u32 %v1939_v54, 16 }
0x1764   : > { %v1922_v50 = vpop.xlane.xlu1 %1921  ;;  %v2022_v51 = vld [vmem:[#allocation2 + $0x1e0] sm:$0xff] }
0x1765   : > { %1959 = vst.msk [vmem:[#allocation2 + $0x1e8] sm:$0xff] %vm301_vm3, %v1955_v39  ;;  %v1923_v47 = vcvt.f32.s32 %v1922_v50  ;;  %2736 = vmatmul.msk.f32.gmra.mxu3 %vm301_vm3, %v2022_v51 }
0x1767   : > { %v1926_v17 = vadd.s32 %v1925_v52, %v1923_v47 }
0x1769   : > { %vm1944_vm2 = vcmp.eq.s32.totalorder %v2968_v30, %v1926_v17 }
0x176a   : > { %v2674_v20 = vsel %vm1944_vm2, 1.0, %v2866_v10 }
0x176b   : > { %v1956_v57 = vadd.f32 %v2674_v20, %v3024_v19 }
0x176c   : > { %v1937_v8 = vpop.xlane.xlu2 %1936  ;;  %v2023_v43 = vld [vmem:[#allocation2 + $0x1e8] sm:$0xff] }
0x176d   : > { %1960 = vst.msk [vmem:[#allocation2 + $0x1f0] sm:$0xff] %vm301_vm3, %v1956_v57  ;;  %v1938_v60 = vcvt.f32.s32 %v1937_v8  ;;  %2737 = vmatmul.msk.f32.gmra.mxu3 %vm301_vm3, %v2023_v43 }
0x176f   : > { %v1941_v61 = vadd.s32 %v1940_v33, %v1938_v60 }
0x1771   : > { %vm1945_vm4 = vcmp.eq.s32.totalorder %v2968_v30, %v1941_v61 }
0x1772   : > { %v2675_v27 = vsel %vm1945_vm4, 1.0, %v2866_v10 }
0x1773   : > { %v1957_v19 = vadd.f32 %v2675_v27, %v3039_v56 }
0x1774   : > { %v2024_v62 = vld [vmem:[#allocation2 + $0x1f0] sm:$0xff] }
0x1775   : > { %1961 = vst.msk [vmem:[#allocation2 + $0x1f8] sm:$0xff] %vm301_vm3, %v1957_v19  ;;  %2738 = vmatmul.msk.f32.gmra.mxu3 %vm301_vm3, %v2024_v62 }
0x177c   : > { %v2025_v32 = vld [vmem:[#allocation2 + $0x1f8] sm:$0xff] }
0x177d   : > { %2739 = vmatmul.msk.f32.gmra.mxu3 %vm301_vm3, %v2025_v32 }
0x17e8   : > { %v2415_v0 = vpop.f32.mrf.mxu3 }
0x17e9   : > { %2487 = vst [vmem:[%s3064_s11 + $0x1e0] sm:$0xff] %v2415_v0 }
0x17f0   : > { %v2418_v1 = vpop.f32.mrf.mxu3 }
0x17f1   : > { %2488 = vst [vmem:[%s3064_s11 + $0x1e8] sm:$0xff] %v2418_v1 }
0x17f8   : > { %v2421_v30 = vpop.f32.mrf.mxu3 }
0x17f9   : > { %2489 = vst [vmem:[%s3064_s11 + $0x1f0] sm:$0xff] %v2421_v30 }
0x1800   : > { %v2424_v10 = vpop.f32.mrf.mxu3 }
0x1801   : > { %2490 = vst [vmem:[%s3064_s11 + $0x1f8] sm:$0xff] %v2424_v10 }
0x1802   : > { %2829 = shalt.err (!%p2826_p3)
}
0x1803   : > { %s2867_s7 = smov 128   ;;  %s2868_s8 = smov 8  }
0x1804   : > { %2760 = dma.vmem_to_hbm [thread:$0]  (%p2927_p5), %s2505_s25, 8192, %s2507_s26, %s2492_s27, %s2867_s7, %s2867_s7, %s2868_s8  }
0x1805 PF: > { %p2766_p4 = scmp.ge.s32.totalorder %s2864_s15, 2  ;;  %s2521_s9 = sand.u32 1, %s2852_s12  }
0x1806   : > { %s2522_s10 = scalar_lea.sflag [#allocation4], %s2521_s9 }
0x1807   : > { %p2763_p7 = pnand %p2766_p4, %p2931_p6 }
0x1809   : > { %p2764_p8 = pneg %p2763_p7 }
0x180b   : > { %2847 = dma.done.wait (%p2764_p8), %s2522_s10, 8192  }
0x180c   : > { %2849 = vsyncadd (%p2764_p8), %s2522_s10, 4294959104  ;;  %p13_p9 = scmp.ge.s32.totalorder %s2914_s18, 4   ;;  %s3905_s12 = smov %s2856_s13 }
0x180d   : > { %s3906_s13 = smov %s2860_s14  ;;  %s3907_s14 = smov %s2925_s21 }
0x180e   : > { %s3908_s15 = smov %s2914_s18  ;;  %15 = sbr.rel (!%p13_p9) target bundleno = 3 (0x3), region = 73 }
0x1813   :  { %2528 = vsyncpa [#allocation4], 1 }
0x1814   :  { %2530 = vsyncpa [#allocation4 + $0x1], 1 }

</bundles_post_ra>
